<compile_context>
chip_gen: v5e
topology: v5e:2x2
jax: 0.10.0
libtpu: 0.0.40
codegen_flags: <defaults>
</compile_context>

<pallas_src>
import jax
import jax.numpy as jnp
from jax.experimental import pallas as pl
from jax.experimental.pallas import tpu as pltpu


# ----------------------------------------------------------------------------
# Fused Conv5x5(pad=2) + BN(eval) + ReLU + MaxPool2x2 kernel
# ----------------------------------------------------------------------------
def conv_bn_relu_pool_kernel(xq_ref, w_ref, s_ref, b_ref, o_ref):
    # xq_ref: (1, 4, TMP, K) bf16 — im2col patches for the 4 pool-window positions
    #         of TMP pooled output pixels (K = 5*5*Cin).
    # w_ref : (K, Cout) bf16 — conv weight flattened in (dy, dx, cin) order.
    # s_ref / b_ref: (1, Cout) f32 — folded BatchNorm scale / (bias + conv bias).
    # o_ref : (1, TMP, Cout) bf16 — pooled activations.
    _, nq, tmp, k = xq_ref.shape
    cout = o_ref.shape[-1]

    # One large-K matmul for all 4 pool positions of this tile (M = 4*TMP).
    x = xq_ref[0].reshape(nq * tmp, k)
    y = jnp.dot(x, w_ref[...], preferred_element_type=jnp.float32)   # (4*TMP, Cout) f32

    # Folded conv-bias + BatchNorm (eval) affine, in f32.
    y = y.reshape(nq, tmp, cout) * s_ref[...] + b_ref[...]

    # MaxPool2x2 == max over the 4 window positions; ReLU commutes with max.
    y = jnp.max(y, axis=0)                                            # (TMP, Cout)
    o_ref[0] = jnp.maximum(y, 0.0).astype(o_ref.dtype)                # ReLU


def conv_bn_relu_pool(x_nhwc, w_flat, scale, bias, *, tile_mp):
    """x_nhwc: (N,H,W,Cin); w_flat: (25*Cin, Cout). Returns (N, H//2, W//2, Cout)."""
    N, H, W, Cin = x_nhwc.shape
    K, Cout = w_flat.shape
    KH = KW = 5
    assert K == KH * KW * Cin
    Hp, Wp = H // 2, W // 2
    Mp = Hp * Wp
    assert Mp % tile_mp == 0 and tile_mp % 16 == 0

    # --- JAX glue: im2col (includes the pad=2 halo) split into pool quadrants ---
    xb = x_nhwc.astype(jnp.bfloat16)
    xpad = jnp.pad(xb, ((0, 0), (2, 2), (2, 2), (0, 0)))
    cols = [xpad[:, dy:dy + H, dx:dx + W, :] for dy in range(KH) for dx in range(KW)]
    patches = jnp.concatenate(cols, axis=-1)                  # (N, H, W, K), (dy,dx,cin)
    quads = jnp.stack([patches[:, a::2, b::2, :] for a in (0, 1) for b in (0, 1)],
                      axis=1)                                 # (N, 4, Hp, Wp, K)
    quads = quads.reshape(N, 4, Mp, K)

    out = pl.pallas_call(
        conv_bn_relu_pool_kernel,
        out_shape=jax.ShapeDtypeStruct((N, Mp, Cout), jnp.bfloat16),
        grid=(N, Mp // tile_mp),
        in_specs=[
            pl.BlockSpec((1, 4, tile_mp, K), lambda n, t: (n, 0, t, 0)),
            pl.BlockSpec((K, Cout), lambda n, t: (0, 0)),
            pl.BlockSpec((1, Cout), lambda n, t: (0, 0)),
            pl.BlockSpec((1, Cout), lambda n, t: (0, 0)),
        ],
        out_specs=pl.BlockSpec((1, tile_mp, Cout), lambda n, t: (n, t, 0)),
        compiler_params=pltpu.CompilerParams(
            dimension_semantics=("parallel", "parallel")),
    )(quads,
      w_flat.astype(jnp.bfloat16),
      scale.reshape(1, -1).astype(jnp.float32),
      bias.reshape(1, -1).astype(jnp.float32))

    return out.reshape(N, Hp, Wp, Cout)


# ----------------------------------------------------------------------------
# Final Linear layer: K-tiled matmul with VMEM f32 accumulator
# ----------------------------------------------------------------------------
def fc_kernel(x_ref, w_ref, b_ref, o_ref, acc_ref):
    @pl.when(pl.program_id(0) == 0)
    def _():
        acc_ref[...] = jnp.zeros_like(acc_ref)

    acc_ref[...] += jnp.dot(x_ref[...], w_ref[...],
                            preferred_element_type=jnp.float32)

    @pl.when(pl.program_id(0) == pl.num_programs(0) - 1)
    def _():
        o_ref[...] = acc_ref[...] + b_ref[...]


def fc(x, w, b, *, tile_k):
    M, K = x.shape
    _, Nc = w.shape
    assert K % tile_k == 0 and tile_k % 128 == 0
    return pl.pallas_call(
        fc_kernel,
        out_shape=jax.ShapeDtypeStruct((M, Nc), jnp.float32),
        grid=(K // tile_k,),
        in_specs=[
            pl.BlockSpec((M, tile_k), lambda k: (0, k)),
            pl.BlockSpec((tile_k, Nc), lambda k: (k, 0)),
            pl.BlockSpec((1, Nc), lambda k: (0, 0)),
        ],
        out_specs=pl.BlockSpec((M, Nc), lambda k: (0, 0)),
        scratch_shapes=[pltpu.VMEM((M, Nc), jnp.float32)],
        compiler_params=pltpu.CompilerParams(dimension_semantics=("arbitrary",)),
    )(x.astype(jnp.bfloat16), w.astype(jnp.bfloat16),
      b.reshape(1, -1).astype(jnp.float32))


# ----------------------------------------------------------------------------
# Parameters (deterministic, synthetic) and forward pass
# ----------------------------------------------------------------------------
def fold_bn(gamma, beta, mean, var, conv_bias, eps=1e-5):
    scale = gamma / jnp.sqrt(var + eps)
    bias = (conv_bias - mean) * scale + beta
    return scale, bias


def make_params(key, num_classes=7):
    ks = jax.random.split(key, 4)

    def conv_bn(k0, cin, cout):
        kk = jax.random.split(k0, 6)
        w_oihw = 0.05 * jax.random.normal(kk[0], (cout, cin, 5, 5), jnp.float32)
        cb = 0.05 * jax.random.normal(kk[1], (cout,), jnp.float32)
        gamma = 1.0 + 0.1 * jax.random.normal(kk[2], (cout,), jnp.float32)
        beta = 0.1 * jax.random.normal(kk[3], (cout,), jnp.float32)
        mean = 0.1 * jax.random.normal(kk[4], (cout,), jnp.float32)
        var = 0.5 + jax.random.uniform(kk[5], (cout,), jnp.float32)
        scale, bias = fold_bn(gamma, beta, mean, var, cb)
        # PyTorch OIHW -> HWIO -> (25*Cin, Cout): matches the im2col (dy, dx, cin) order.
        w_flat = jnp.transpose(w_oihw, (2, 3, 1, 0)).reshape(25 * cin, cout)
        return w_flat, scale, bias

    p = {}
    p["w1"], p["s1"], p["b1"] = conv_bn(ks[0], 1, 16)
    p["w2"], p["s2"], p["b2"] = conv_bn(ks[1], 16, 32)

    # PyTorch fc weight is (num_classes, 32*12*12) with rows flattened in NCHW
    # (c, h, w) order.  Permute once to (h, w, c) order so the NHWC activation can
    # be flattened directly (no activation transpose in the forward pass).
    fc_w_torch = 0.02 * jax.random.normal(ks[2], (num_classes, 32 * 12 * 12), jnp.float32)
    p["fc_w"] = jnp.transpose(fc_w_torch.reshape(num_classes, 32, 12, 12),
                              (2, 3, 1, 0)).reshape(12 * 12 * 32, num_classes)
    p["fc_b"] = 0.02 * jax.random.normal(ks[3], (num_classes,), jnp.float32)
    return p


@jax.jit
def convnet_forward(x_nchw, p):
    # NCHW -> NHWC (channels-last is the kernel layout).
    x = jnp.transpose(x_nchw, (0, 2, 3, 1)).astype(jnp.float32)

    # layer1: Conv(1->16,5,pad2) + BN + ReLU + MaxPool2  -> (N, 24, 24, 16)
    h = conv_bn_relu_pool(x, p["w1"], p["s1"], p["b1"], tile_mp=144)
    # layer2: Conv(16->32,5,pad2) + BN + ReLU + MaxPool2 -> (N, 12, 12, 32)
    h = conv_bn_relu_pool(h, p["w2"], p["s2"], p["b2"], tile_mp=144)

    # Flatten in (h, w, c) order; fc_w rows were permuted to match PyTorch's
    # NCHW flatten, so this is equivalent to out.reshape(N, -1) @ fc.weight.T.
    flat = h.reshape(h.shape[0], -1)                       # (N, 4608)

    # fc: Linear(12*12*32 -> num_classes)
    return fc(flat, p["fc_w"], p["fc_b"], tile_k=1152)


if __name__ == "__main__":
    key = jax.random.PRNGKey(0)
    k_x, k_p = jax.random.split(key)

    # fc expects 12*12*32 features => input spatial 48x48 (48 -> 24 -> 12), 1 channel.
    x = jax.random.normal(k_x, (2, 1, 48, 48), jnp.float32)     # NCHW, batch=2
    params = make_params(k_p, num_classes=7)

    logits = convnet_forward(x, params)
    jax.block_until_ready(logits)
    assert logits.shape == (2, 7), logits.shape
    print("KERNEL_OK")
</pallas_src>

<mosaic_0001>
module attributes {stable_mosaic.version = 11 : i64} {
  func.func @conv_bn_relu_pool_kernel(%arg0: i32, %arg1: i32, %arg2: memref<1x4x144x25xbf16, #tpu.memory_space<vmem>>, %arg3: memref<25x16xbf16, #tpu.memory_space<vmem>>, %arg4: memref<1x16xf32, #tpu.memory_space<vmem>>, %arg5: memref<1x16xf32, #tpu.memory_space<vmem>>, %arg6: memref<1x144x16xbf16, #tpu.memory_space<vmem>>) attributes {dimension_semantics = [#tpu.dimension_semantics<parallel>, #tpu.dimension_semantics<parallel>], iteration_bounds = array<i64: 2, 4>, scalar_prefetch = 0 : i64, scratch_operands = 0 : i64, tpu.core_type = #tpu.core_type<tc>, window_params = [{transform_indices = @transform_0, window_bounds = array<i64: 1, 4, 144, 25>}, {pipeline_mode = #tpu.pipeline_mode<synchronous>, transform_indices = @transform_1, window_bounds = array<i64: 25, 16>}, {pipeline_mode = #tpu.pipeline_mode<synchronous>, transform_indices = @transform_2, window_bounds = array<i64: 1, 16>}, {pipeline_mode = #tpu.pipeline_mode<synchronous>, transform_indices = @transform_3, window_bounds = array<i64: 1, 16>}, {transform_indices = @transform_4, window_bounds = array<i64: 1, 144, 16>}]} {
    %c0 = arith.constant 0 : index
    %c0_0 = arith.constant 0 : index
    %c0_1 = arith.constant 0 : index
    %c0_2 = arith.constant 0 : index
    %0 = vector.load %arg2[%c0, %c0_0, %c0_1, %c0_2] : memref<1x4x144x25xbf16, #tpu.memory_space<vmem>>, vector<1x4x144x25xbf16>
    %1 = vector.shape_cast %0 : vector<1x4x144x25xbf16> to vector<4x144x25xbf16>
    %2 = vector.shape_cast %1 : vector<4x144x25xbf16> to vector<576x25xbf16>
    %c0_3 = arith.constant 0 : index
    %c0_4 = arith.constant 0 : index
    %3 = vector.load %arg3[%c0_3, %c0_4] : memref<25x16xbf16, #tpu.memory_space<vmem>>, vector<25x16xbf16>
    %cst = arith.constant dense<0.000000e+00> : vector<576x16xf32>
    %4 = tpu.matmul %2, %3, %cst {dimension_numbers = #tpu.dot_dimension_numbers<[1], [0], [0], [1], [0, 0, 1, 1], [], []>} : vector<576x25xbf16>, vector<25x16xbf16>, vector<576x16xf32> -> vector<576x16xf32>
    %5 = vector.shape_cast %4 : vector<576x16xf32> to vector<4x144x16xf32>
    %c0_5 = arith.constant 0 : index
    %c0_6 = arith.constant 0 : index
    %6 = vector.load %arg4[%c0_5, %c0_6] : memref<1x16xf32, #tpu.memory_space<vmem>>, vector<1x16xf32>
    %7 = vector.shape_cast %6 : vector<1x16xf32> to vector<1x1x16xf32>
    %8 = vector.broadcast %7 : vector<1x1x16xf32> to vector<4x144x16xf32>
    %9 = arith.mulf %5, %8 : vector<4x144x16xf32>
    %c0_7 = arith.constant 0 : index
    %c0_8 = arith.constant 0 : index
    %10 = vector.load %arg5[%c0_7, %c0_8] : memref<1x16xf32, #tpu.memory_space<vmem>>, vector<1x16xf32>
    %11 = vector.shape_cast %10 : vector<1x16xf32> to vector<1x1x16xf32>
    %12 = vector.broadcast %11 : vector<1x1x16xf32> to vector<4x144x16xf32>
    %13 = arith.addf %9, %12 : vector<4x144x16xf32>
    %cst_9 = arith.constant dense<0xFF800000> : vector<144x16xf32>
    %14 = vector.multi_reduction <maximumf>, %13, %cst_9 [0] : vector<4x144x16xf32> to vector<144x16xf32>
    %cst_10 = arith.constant 0.000000e+00 : f32
    %15 = vector.broadcast %cst_10 : f32 to vector<144x16xf32>
    %16 = arith.maximumf %14, %15 : vector<144x16xf32>
    %17 = arith.truncf %16 : vector<144x16xf32> to vector<144x16xbf16>
    %c0_11 = arith.constant 0 : index
    %c0_12 = arith.constant 0 : index
    %c0_13 = arith.constant 0 : index
    %18 = vector.load %arg6[%c0_11, %c0_12, %c0_13] : memref<1x144x16xbf16, #tpu.memory_space<vmem>>, vector<1x144x16xbf16>
    %19 = vector.shape_cast %18 : vector<1x144x16xbf16> to vector<144x16xbf16>
    %20 = vector.shape_cast %17 : vector<144x16xbf16> to vector<1x144x16xbf16>
    tpu.vector_store %arg6[%c0_11, %c0_12, %c0_13], %20 {strides = array<i32>} : memref<1x144x16xbf16, #tpu.memory_space<vmem>>, vector<1x144x16xbf16>,
    return
  }
  func.func @transform_0(%arg0: i32, %arg1: i32) -> (i32, i32, i32, i32) {
    %c0_i32 = arith.constant 0 : i32
    %c0_i32_0 = arith.constant 0 : i32
    %c0_i32_1 = arith.constant 0 : i32
    return %arg0, %c0_i32, %arg1, %c0_i32_0 : i32, i32, i32, i32
  }
  func.func @transform_1(%arg0: i32, %arg1: i32) -> (i32, i32) {
    %c0_i32 = arith.constant 0 : i32
    %c0_i32_0 = arith.constant 0 : i32
    %c0_i32_1 = arith.constant 0 : i32
    return %c0_i32, %c0_i32_0 : i32, i32
  }
  func.func @transform_2(%arg0: i32, %arg1: i32) -> (i32, i32) {
    %c0_i32 = arith.constant 0 : i32
    %c0_i32_0 = arith.constant 0 : i32
    %c0_i32_1 = arith.constant 0 : i32
    return %c0_i32, %c0_i32_0 : i32, i32
  }
  func.func @transform_3(%arg0: i32, %arg1: i32) -> (i32, i32) {
    %c0_i32 = arith.constant 0 : i32
    %c0_i32_0 = arith.constant 0 : i32
    %c0_i32_1 = arith.constant 0 : i32
    return %c0_i32, %c0_i32_0 : i32, i32
  }
  func.func @transform_4(%arg0: i32, %arg1: i32) -> (i32, i32, i32) {
    %c0_i32 = arith.constant 0 : i32
    %c0_i32_0 = arith.constant 0 : i32
    return %arg0, %arg1, %c0_i32 : i32, i32, i32
  }
}

module attributes {stable_mosaic.version = 11 : i64} {
  func.func @conv_bn_relu_pool_kernel(%arg0: i32, %arg1: i32, %arg2: memref<1x4x144x400xbf16, #tpu.memory_space<vmem>>, %arg3: memref<400x32xbf16, #tpu.memory_space<vmem>>, %arg4: memref<1x32xf32, #tpu.memory_space<vmem>>, %arg5: memref<1x32xf32, #tpu.memory_space<vmem>>, %arg6: memref<1x144x32xbf16, #tpu.memory_space<vmem>>) attributes {dimension_semantics = [#tpu.dimension_semantics<parallel>, #tpu.dimension_semantics<parallel>], iteration_bounds = array<i64: 2, 1>, scalar_prefetch = 0 : i64, scratch_operands = 0 : i64, tpu.core_type = #tpu.core_type<tc>, window_params = [{transform_indices = @transform_0, window_bounds = array<i64: 1, 4, 144, 400>}, {pipeline_mode = #tpu.pipeline_mode<synchronous>, transform_indices = @transform_1, window_bounds = array<i64: 400, 32>}, {pipeline_mode = #tpu.pipeline_mode<synchronous>, transform_indices = @transform_2, window_bounds = array<i64: 1, 32>}, {pipeline_mode = #tpu.pipeline_mode<synchronous>, transform_indices = @transform_3, window_bounds = array<i64: 1, 32>}, {transform_indices = @transform_4, window_bounds = array<i64: 1, 144, 32>}]} {
    %c0 = arith.constant 0 : index
    %c0_0 = arith.constant 0 : index
    %c0_1 = arith.constant 0 : index
    %c0_2 = arith.constant 0 : index
    %0 = vector.load %arg2[%c0, %c0_0, %c0_1, %c0_2] : memref<1x4x144x400xbf16, #tpu.memory_space<vmem>>, vector<1x4x144x400xbf16>
    %1 = vector.shape_cast %0 : vector<1x4x144x400xbf16> to vector<4x144x400xbf16>
    %2 = vector.shape_cast %1 : vector<4x144x400xbf16> to vector<576x400xbf16>
    %c0_3 = arith.constant 0 : index
    %c0_4 = arith.constant 0 : index
    %3 = vector.load %arg3[%c0_3, %c0_4] : memref<400x32xbf16, #tpu.memory_space<vmem>>, vector<400x32xbf16>
    %cst = arith.constant dense<0.000000e+00> : vector<576x32xf32>
    %4 = tpu.matmul %2, %3, %cst {dimension_numbers = #tpu.dot_dimension_numbers<[1], [0], [0], [1], [0, 0, 1, 1], [], []>} : vector<576x400xbf16>, vector<400x32xbf16>, vector<576x32xf32> -> vector<576x32xf32>
    %5 = vector.shape_cast %4 : vector<576x32xf32> to vector<4x144x32xf32>
    %c0_5 = arith.constant 0 : index
    %c0_6 = arith.constant 0 : index
    %6 = vector.load %arg4[%c0_5, %c0_6] : memref<1x32xf32, #tpu.memory_space<vmem>>, vector<1x32xf32>
    %7 = vector.shape_cast %6 : vector<1x32xf32> to vector<1x1x32xf32>
    %8 = vector.broadcast %7 : vector<1x1x32xf32> to vector<4x144x32xf32>
    %9 = arith.mulf %5, %8 : vector<4x144x32xf32>
    %c0_7 = arith.constant 0 : index
    %c0_8 = arith.constant 0 : index
    %10 = vector.load %arg5[%c0_7, %c0_8] : memref<1x32xf32, #tpu.memory_space<vmem>>, vector<1x32xf32>
    %11 = vector.shape_cast %10 : vector<1x32xf32> to vector<1x1x32xf32>
    %12 = vector.broadcast %11 : vector<1x1x32xf32> to vector<4x144x32xf32>
    %13 = arith.addf %9, %12 : vector<4x144x32xf32>
    %cst_9 = arith.constant dense<0xFF800000> : vector<144x32xf32>
    %14 = vector.multi_reduction <maximumf>, %13, %cst_9 [0] : vector<4x144x32xf32> to vector<144x32xf32>
    %cst_10 = arith.constant 0.000000e+00 : f32
    %15 = vector.broadcast %cst_10 : f32 to vector<144x32xf32>
    %16 = arith.maximumf %14, %15 : vector<144x32xf32>
    %17 = arith.truncf %16 : vector<144x32xf32> to vector<144x32xbf16>
    %c0_11 = arith.constant 0 : index
    %c0_12 = arith.constant 0 : index
    %c0_13 = arith.constant 0 : index
    %18 = vector.load %arg6[%c0_11, %c0_12, %c0_13] : memref<1x144x32xbf16, #tpu.memory_space<vmem>>, vector<1x144x32xbf16>
    %19 = vector.shape_cast %18 : vector<1x144x32xbf16> to vector<144x32xbf16>
    %20 = vector.shape_cast %17 : vector<144x32xbf16> to vector<1x144x32xbf16>
    tpu.vector_store %arg6[%c0_11, %c0_12, %c0_13], %20 {strides = array<i32>} : memref<1x144x32xbf16, #tpu.memory_space<vmem>>, vector<1x144x32xbf16>,
    return
  }
  func.func @transform_0(%arg0: i32, %arg1: i32) -> (i32, i32, i32, i32) {
    %c0_i32 = arith.constant 0 : i32
    %c0_i32_0 = arith.constant 0 : i32
    %c0_i32_1 = arith.constant 0 : i32
    return %arg0, %c0_i32, %arg1, %c0_i32_0 : i32, i32, i32, i32
  }
  func.func @transform_1(%arg0: i32, %arg1: i32) -> (i32, i32) {
    %c0_i32 = arith.constant 0 : i32
    %c0_i32_0 = arith.constant 0 : i32
    %c0_i32_1 = arith.constant 0 : i32
    return %c0_i32, %c0_i32_0 : i32, i32
  }
  func.func @transform_2(%arg0: i32, %arg1: i32) -> (i32, i32) {
    %c0_i32 = arith.constant 0 : i32
    %c0_i32_0 = arith.constant 0 : i32
    %c0_i32_1 = arith.constant 0 : i32
    return %c0_i32, %c0_i32_0 : i32, i32
  }
  func.func @transform_3(%arg0: i32, %arg1: i32) -> (i32, i32) {
    %c0_i32 = arith.constant 0 : i32
    %c0_i32_0 = arith.constant 0 : i32
    %c0_i32_1 = arith.constant 0 : i32
    return %c0_i32, %c0_i32_0 : i32, i32
  }
  func.func @transform_4(%arg0: i32, %arg1: i32) -> (i32, i32, i32) {
    %c0_i32 = arith.constant 0 : i32
    %c0_i32_0 = arith.constant 0 : i32
    return %arg0, %arg1, %c0_i32 : i32, i32, i32
  }
}

module attributes {stable_mosaic.version = 11 : i64} {
  func.func @fc_kernel(%arg0: i32, %arg1: memref<2x1152xbf16, #tpu.memory_space<vmem>>, %arg2: memref<1152x7xbf16, #tpu.memory_space<vmem>>, %arg3: memref<1x7xf32, #tpu.memory_space<vmem>>, %arg4: memref<2x7xf32, #tpu.memory_space<vmem>>, %arg5: memref<2x7xf32, #tpu.memory_space<vmem>>) attributes {dimension_semantics = [#tpu.dimension_semantics<arbitrary>], iteration_bounds = array<i64: 4>, scalar_prefetch = 0 : i64, scratch_operands = 1 : i64, tpu.core_type = #tpu.core_type<tc>, window_params = [{transform_indices = @transform_0, window_bounds = array<i64: 2, 1152>}, {transform_indices = @transform_1, window_bounds = array<i64: 1152, 7>}, {pipeline_mode = #tpu.pipeline_mode<synchronous>, transform_indices = @transform_2, window_bounds = array<i64: 1, 7>}, {pipeline_mode = #tpu.pipeline_mode<synchronous>, transform_indices = @transform_3, window_bounds = array<i64: 2, 7>}]} {
    %c0_i32 = arith.constant 0 : i32
    %0 = arith.cmpi eq, %arg0, %c0_i32 : i32
    %1 = arith.extui %0 : i1 to i32
    %c0_i32_0 = arith.constant 0 : i32
    %2 = arith.cmpi ne, %1, %c0_i32_0 : i32
    scf.if %2 {
      %cst_9 = arith.constant 0.000000e+00 : f32
      %12 = vector.broadcast %cst_9 : f32 to vector<2x7xf32>
      %c0_10 = arith.constant 0 : index
      %c0_11 = arith.constant 0 : index
      %13 = vector.load %arg5[%c0_10, %c0_11] : memref<2x7xf32, #tpu.memory_space<vmem>>, vector<2x7xf32>
      tpu.vector_store %arg5[%c0_10, %c0_11], %12 {strides = array<i32>} : memref<2x7xf32, #tpu.memory_space<vmem>>, vector<2x7xf32>,
    } else {
    }
    %c0 = arith.constant 0 : index
    %c0_1 = arith.constant 0 : index
    %3 = vector.load %arg5[%c0, %c0_1] : memref<2x7xf32, #tpu.memory_space<vmem>>, vector<2x7xf32>
    %c0_2 = arith.constant 0 : index
    %c0_3 = arith.constant 0 : index
    %4 = vector.load %arg1[%c0_2, %c0_3] : memref<2x1152xbf16, #tpu.memory_space<vmem>>, vector<2x1152xbf16>
    %c0_4 = arith.constant 0 : index
    %c0_5 = arith.constant 0 : index
    %5 = vector.load %arg2[%c0_4, %c0_5] : memref<1152x7xbf16, #tpu.memory_space<vmem>>, vector<1152x7xbf16>
    %cst = arith.constant dense<0.000000e+00> : vector<2x7xf32>
    %6 = tpu.matmul %4, %5, %cst {dimension_numbers = #tpu.dot_dimension_numbers<[1], [0], [0], [1], [0, 0, 1, 1], [], []>} : vector<2x1152xbf16>, vector<1152x7xbf16>, vector<2x7xf32> -> vector<2x7xf32>
    %7 = arith.addf %3, %6 : vector<2x7xf32>
    %c0_6 = arith.constant 0 : index
    %c0_7 = arith.constant 0 : index
    %8 = vector.load %arg5[%c0_6, %c0_7] : memref<2x7xf32, #tpu.memory_space<vmem>>, vector<2x7xf32>
    tpu.vector_store %arg5[%c0_6, %c0_7], %7 {strides = array<i32>} : memref<2x7xf32, #tpu.memory_space<vmem>>, vector<2x7xf32>,
    %c3_i32 = arith.constant 3 : i32
    %9 = arith.cmpi eq, %arg0, %c3_i32 : i32
    %10 = arith.extui %9 : i1 to i32
    %c0_i32_8 = arith.constant 0 : i32
    %11 = arith.cmpi ne, %10, %c0_i32_8 : i32
    scf.if %11 {
      %c0_9 = arith.constant 0 : index
      %c0_10 = arith.constant 0 : index
      %12 = vector.load %arg5[%c0_9, %c0_10] : memref<2x7xf32, #tpu.memory_space<vmem>>, vector<2x7xf32>
      %c0_11 = arith.constant 0 : index
      %c0_12 = arith.constant 0 : index
      %13 = vector.load %arg3[%c0_11, %c0_12] : memref<1x7xf32, #tpu.memory_space<vmem>>, vector<1x7xf32>
      %14 = vector.broadcast %13 : vector<1x7xf32> to vector<2x7xf32>
      %15 = arith.addf %12, %14 : vector<2x7xf32>
      %c0_13 = arith.constant 0 : index
      %c0_14 = arith.constant 0 : index
      %16 = vector.load %arg4[%c0_13, %c0_14] : memref<2x7xf32, #tpu.memory_space<vmem>>, vector<2x7xf32>
      tpu.vector_store %arg4[%c0_13, %c0_14], %15 {strides = array<i32>} : memref<2x7xf32, #tpu.memory_space<vmem>>, vector<2x7xf32>,
    } else {
    }
    return
  }
  func.func @transform_0(%arg0: i32) -> (i32, i32) {
    %c0_i32 = arith.constant 0 : i32
    %c0_i32_0 = arith.constant 0 : i32
    return %c0_i32, %arg0 : i32, i32
  }
  func.func @transform_1(%arg0: i32) -> (i32, i32) {
    %c0_i32 = arith.constant 0 : i32
    %c0_i32_0 = arith.constant 0 : i32
    return %arg0, %c0_i32 : i32, i32
  }
  func.func @transform_2(%arg0: i32) -> (i32, i32) {
    %c0_i32 = arith.constant 0 : i32
    %c0_i32_0 = arith.constant 0 : i32
    %c0_i32_1 = arith.constant 0 : i32
    return %c0_i32, %c0_i32_0 : i32, i32
  }
  func.func @transform_3(%arg0: i32) -> (i32, i32) {
    %c0_i32 = arith.constant 0 : i32
    %c0_i32_0 = arith.constant 0 : i32
    %c0_i32_1 = arith.constant 0 : i32
    return %c0_i32, %c0_i32_0 : i32, i32
  }
}

</mosaic_0001>

<bundles_post_ra>
// kernel: convnet_forward.3
= control target key start
LH: loop header
LB: loop body
LE: loop exit
PB: predicated region body
PF: predicated region fallthrough
CT: control target
= control target key end

     0   :  { %s1940_s15 = smov 0   ;;  %s1942_s16 = smov 0   ;;  %s2453_s0 = inlined_call_operand.vmem [shape: bf16[2,4,576,25], index: 0, kind: input, shape index: {}]   ;;  %s2454_s1 = inlined_call_operand.vmem [shape: bf16[25,16], index: 1, kind: input, shape index: {}]   ;;  %s2455_s2 = inlined_call_operand.vmem [shape: f32[1,16], index: 2, kind: input, shape index: {}]   ;;  %s2456_s3 = inlined_call_operand.vmem [shape: f32[1,16], index: 3, kind: input, shape index: {}]   ;;  %s2457_s4 = inlined_call_operand.vmem [shape: bf16[2,576,16], index: 4, kind: output, shape index: {}]  }
   0x1   :  { %s1944_s17 = smov 0   ;;  %s1946_s18 = smov 0  }
   0x2   :  { %s1948_s19 = smov 0   ;;  %s1950_s20 = smov 0  }
   0x3   :  { %s1952_s21 = smov 0  }
   0x4 LB: > { %s23_s22 = sadd.s32 1, %s1904_s19  ;;  %s26_s23 = sadd.s32 1, %s1908_s20  ;;  %s1912_s21 = sphi %s1952_s21, %s14_s21   ;;  %s1908_s20 = sphi %s1950_s20, %s2463_s20   ;;  %s1904_s19 = sphi %s1948_s19, %s2462_s19   ;;  %s1900_s18 = sphi %s1946_s18, %s2461_s18   ;;  %s1896_s17 = sphi %s1944_s17, %s2460_s17   ;;  %s1892_s16 = sphi %s1942_s16, %s2459_s16   ;;  %s1888_s15 = sphi %s1940_s15, %s2458_s15  }
   0x5   : > { %p24_p0 = scmp.ge.s32.totalorder %s23_s22, 4  ;;  %p42_p1 = scmp.ne.s32.totalorder %s1892_s16, %s1888_s15 }
   0x6   : > { %p43_p2 = scmp.eq.s32.totalorder %s1912_s21, 0  ;;  %s35_s27 = sadd.s32 1, %s1892_s16 }
   0x7   : > { %s2465_s22 = smov (%p24_p0, %s23_s22), 0  ;;  %s2467_s23 = smov (!%p24_p0, %s26_s23), %s1908_s20 }
   0x8   : > { %p44_p3 = por %p43_p2, %p42_p1  ;;  %p28_p4 = scmp.ge.s32.totalorder %s2467_s23, 2 }
   0x9   : > { %s31_s24 = ssub.s32 %s1904_s19, %s2465_s22  ;;  %p1557_p6 = scmp.ge.s32.totalorder %s1912_s21, 8 }
   0xa   : > { %s2469_s23 = smov (%p28_p4, %s2467_s23), 0 }
   0xb   : > { %s30_s25 = ssub.s32 %s1908_s20, %s2469_s23  ;;  %168 = sbr.rel (%p1557_p6) target bundleno = 61 (0x3d), region = 28 }
   0xc   : > { %s32_s26 = sor.u32 %s31_s24, %s30_s25 }
   0xd   : > { %p33_p5 = scmp.eq.s32.totalorder %s32_s26, 0 }
   0xf   : > { %s1991_s28 = scalar_select %p33_p5, %s1892_s16, %s35_s27  }
  0x10   : > { %171 = sbr.rel (!%p44_p3) target bundleno = 61 (0x3d), region = 32  ;;  %s173_s29 = sand.u32 (%p44_p3), 1, %s1892_s16  }
  0x11   : > { %s176_s30 = smul.u32 (%p44_p3), 18, %s1904_s19 }
  0x12   : > { %s1795_s5 = smul.u32 (%p44_p3), 288, %s173_s29 }
  0x13   : > { %s1796_s6 = smul.u32 (%p44_p3), 288, %s1908_s20 }
  0x14   : > { %s2005_s12 = scalar_lea.vmem (%p44_p3), [#allocation2], %s1795_s5 }
  0x15   : > { %s178_s7 = sadd.s32 %s1796_s6, %s176_s30 }
  0x16   : > { %s1558_s8 = sshll.u32 %s178_s7, 2 }
  0x17   : > { %s2000_s11 = scalar_lea.vmem %s2453_s0, %s1558_s8 }
  0x18   : > { %v197_v0 = vld [vmem:[%s2000_s11] sm:$0xff]   ;;  %v201_v1 = vld [vmem:[%s2000_s11 + $0x8] sm:$0xff]   ;;  %v205_v2 = vld [vmem:[%s2000_s11 + $0x10] sm:$0xff]  }
  0x19   : > { %198 = vst [vmem:[%s2005_s12] sm:$0xff] %v197_v0   ;;  %v209_v3 = vld [vmem:[%s2000_s11 + $0x18] sm:$0xff]   ;;  %v213_v4 = vld [vmem:[%s2000_s11 + $0x20] sm:$0xff]   ;;  %v217_v5 = vld [vmem:[%s2000_s11 + $0x28] sm:$0xff]  }
  0x1a   : > { %202 = vst [vmem:[%s2005_s12 + $0x8] sm:$0xff] %v201_v1   ;;  %v221_v6 = vld [vmem:[%s2000_s11 + $0x30] sm:$0xff]   ;;  %v225_v7 = vld [vmem:[%s2000_s11 + $0x38] sm:$0xff]   ;;  %v229_v8 = vld [vmem:[%s2000_s11 + $0x40] sm:$0xff]  }
  0x1b   : > { %206 = vst [vmem:[%s2005_s12 + $0x10] sm:$0xff] %v205_v2   ;;  %v233_v9 = vld [vmem:[%s2000_s11 + $0x120] sm:$0xff]   ;;  %v237_v10 = vld [vmem:[%s2000_s11 + $0x128] sm:$0xff]   ;;  %v241_v11 = vld [vmem:[%s2000_s11 + $0x130] sm:$0xff]  }
  0x1c   : > { %210 = vst [vmem:[%s2005_s12 + $0x18] sm:$0xff] %v209_v3   ;;  %v245_v12 = vld [vmem:[%s2000_s11 + $0x138] sm:$0xff]   ;;  %v249_v13 = vld [vmem:[%s2000_s11 + $0x140] sm:$0xff]   ;;  %v253_v14 = vld [vmem:[%s2000_s11 + $0x148] sm:$0xff]  }
  0x1d   : > { %214 = vst [vmem:[%s2005_s12 + $0x20] sm:$0xff] %v213_v4   ;;  %v257_v15 = vld [vmem:[%s2000_s11 + $0x150] sm:$0xff]   ;;  %v261_v16 = vld [vmem:[%s2000_s11 + $0x158] sm:$0xff]   ;;  %v265_v17 = vld [vmem:[%s2000_s11 + $0x160] sm:$0xff]  }
  0x1e   : > { %218 = vst [vmem:[%s2005_s12 + $0x28] sm:$0xff] %v217_v5   ;;  %v269_v18 = vld [vmem:[%s2000_s11 + $0x240] sm:$0xff]   ;;  %v273_v19 = vld [vmem:[%s2000_s11 + $0x248] sm:$0xff]   ;;  %v277_v20 = vld [vmem:[%s2000_s11 + $0x250] sm:$0xff]  }
  0x1f   : > { %222 = vst [vmem:[%s2005_s12 + $0x30] sm:$0xff] %v221_v6   ;;  %v281_v21 = vld [vmem:[%s2000_s11 + $0x258] sm:$0xff]   ;;  %v285_v22 = vld [vmem:[%s2000_s11 + $0x260] sm:$0xff]   ;;  %v289_v23 = vld [vmem:[%s2000_s11 + $0x268] sm:$0xff]  }
  0x20   : > { %226 = vst [vmem:[%s2005_s12 + $0x38] sm:$0xff] %v225_v7   ;;  %v293_v24 = vld [vmem:[%s2000_s11 + $0x270] sm:$0xff]   ;;  %v297_v25 = vld [vmem:[%s2000_s11 + $0x278] sm:$0xff]   ;;  %v301_v26 = vld [vmem:[%s2000_s11 + $0x280] sm:$0xff]  }
  0x21   : > { %230 = vst [vmem:[%s2005_s12 + $0x40] sm:$0xff] %v229_v8   ;;  %v305_v27 = vld [vmem:[%s2000_s11 + $0x360] sm:$0xff]   ;;  %v309_v28 = vld [vmem:[%s2000_s11 + $0x368] sm:$0xff]   ;;  %v313_v29 = vld [vmem:[%s2000_s11 + $0x370] sm:$0xff]  }
  0x22   : > { %234 = vst [vmem:[%s2005_s12 + $0x48] sm:$0xff] %v233_v9   ;;  %v317_v30 = vld [vmem:[%s2000_s11 + $0x378] sm:$0xff]   ;;  %v321_v31 = vld [vmem:[%s2000_s11 + $0x380] sm:$0xff]   ;;  %v325_v32 = vld [vmem:[%s2000_s11 + $0x388] sm:$0xff]  }
  0x23   : > { %238 = vst [vmem:[%s2005_s12 + $0x50] sm:$0xff] %v237_v10   ;;  %v329_v33 = vld [vmem:[%s2000_s11 + $0x390] sm:$0xff]   ;;  %v333_v34 = vld [vmem:[%s2000_s11 + $0x398] sm:$0xff]   ;;  %v337_v35 = vld [vmem:[%s2000_s11 + $0x3a0] sm:$0xff]  }
  0x24   : > { %242 = vst [vmem:[%s2005_s12 + $0x58] sm:$0xff] %v241_v11  }
  0x25   : > { %246 = vst [vmem:[%s2005_s12 + $0x60] sm:$0xff] %v245_v12  }
  0x26   : > { %250 = vst [vmem:[%s2005_s12 + $0x68] sm:$0xff] %v249_v13  }
  0x27   : > { %254 = vst [vmem:[%s2005_s12 + $0x70] sm:$0xff] %v253_v14  }
  0x28   : > { %258 = vst [vmem:[%s2005_s12 + $0x78] sm:$0xff] %v257_v15  }
  0x29   : > { %262 = vst [vmem:[%s2005_s12 + $0x80] sm:$0xff] %v261_v16  }
  0x2a   : > { %266 = vst [vmem:[%s2005_s12 + $0x88] sm:$0xff] %v265_v17  }
  0x2b   : > { %270 = vst [vmem:[%s2005_s12 + $0x90] sm:$0xff] %v269_v18  }
  0x2c   : > { %274 = vst [vmem:[%s2005_s12 + $0x98] sm:$0xff] %v273_v19  }
  0x2d   : > { %278 = vst [vmem:[%s2005_s12 + $0xa0] sm:$0xff] %v277_v20  }
  0x2e   : > { %282 = vst [vmem:[%s2005_s12 + $0xa8] sm:$0xff] %v281_v21  }
  0x2f   : > { %286 = vst [vmem:[%s2005_s12 + $0xb0] sm:$0xff] %v285_v22  }
  0x30   : > { %290 = vst [vmem:[%s2005_s12 + $0xb8] sm:$0xff] %v289_v23  }
  0x31   : > { %294 = vst [vmem:[%s2005_s12 + $0xc0] sm:$0xff] %v293_v24  }
  0x32   : > { %298 = vst [vmem:[%s2005_s12 + $0xc8] sm:$0xff] %v297_v25  }
  0x33   : > { %302 = vst [vmem:[%s2005_s12 + $0xd0] sm:$0xff] %v301_v26  }
  0x34   : > { %306 = vst [vmem:[%s2005_s12 + $0xd8] sm:$0xff] %v305_v27  }
  0x35   : > { %310 = vst [vmem:[%s2005_s12 + $0xe0] sm:$0xff] %v309_v28  }
  0x36   : > { %314 = vst [vmem:[%s2005_s12 + $0xe8] sm:$0xff] %v313_v29  }
  0x37   : > { %318 = vst [vmem:[%s2005_s12 + $0xf0] sm:$0xff] %v317_v30  }
  0x38   : > { %322 = vst [vmem:[%s2005_s12 + $0xf8] sm:$0xff] %v321_v31  }
  0x39   : > { %326 = vst [vmem:[%s2005_s12 + $0x100] sm:$0xff] %v325_v32  }
  0x3a   : > { %330 = vst [vmem:[%s2005_s12 + $0x108] sm:$0xff] %v329_v33  }
  0x3b   : > { %334 = vst [vmem:[%s2005_s12 + $0x110] sm:$0xff] %v333_v34  }
  0x3c   : > { %338 = vst [vmem:[%s2005_s12 + $0x118] sm:$0xff] %v337_v35  }
  0x3d PF: > { %p1559_p7 = scmp.ge.s32.totalorder %s1912_s21, 1  ;;  %p507_p8 = scmp.lt.s32.totalorder %s1912_s21, 9 }
  0x3f   : > { %p508_p9 = pnand %p1559_p7, %p507_p8 }
  0x40   : > { %s514_s26 = sand.u32 (!%p508_p9), 1, %s1888_s15   ;;  %p545_p10 = scmp.lt.s32.totalorder (!%p508_p9), %s1900_s18, 1 }
  0x41   : > { %511 = sbr.rel (%p508_p9) target bundleno = 366 (0x16e), region = 73 }
  0x42   : > { %s1797_s27 = smul.u32 (!%p508_p9), 288, %s514_s26 }
  0x43   : > { %s544_s9 = smul.u32 (!%p508_p9), 18, %s1896_s17 }
  0x44   : > { %s2088_s5 = scalar_lea.vmem (!%p508_p9), [#allocation2], %s1797_s27 }
  0x45   : > { %p547_p11 = scmp.lt.s32.totalorder (!%p508_p9), %s544_s9, 71 }
  0x46   : > { %v1711_v36 = vld [vmem:[%s2454_s1 + $0x8] sm:$0xf]  ;;  %v1788_v37 = vld [vmem:[%s2454_s1 + $0x8] sm:$0x10]  ;;  %vm931_vm0 = vcmask 1043456   ;;  %vm932_vm1 = vcmask 1044480  }
  0x47   : > { %v1712_v38 = vor.u32 %v1788_v37, %v1711_v36  ;;  %v1914_v39 = vmov 65535   ;;  %v1787_v43 = vld [vmem:[%s2454_s1] sm:$0xff]  ;;  %v1760_v45 = vld [vmem:[%s2088_s5 + $0x48] sm:$0xff]  ;;  %vm822_vm2 = vcmask 203776   ;;  %v1769_v46 = vld [vmem:[%s2088_s5 + $0x90] sm:$0xff]  ;;  %vm1279_vm3 = vcmask 130048  }
  0x48   : > { %v933_v40 = vsel %vm931_vm0, 4294967295, %v1914_v39  ;;  %v1751_v44 = vld [vmem:[%s2088_s5] sm:$0xff]  ;;  %v1778_v47 = vld [vmem:[%s2088_s5 + $0xd8] sm:$0xff]  ;;  %v1752_v48 = vld [vmem:[%s2088_s5 + $0x8] sm:$0xff]  ;;  %s2471_s18 = smov (!%p545_p10, %s1900_s18), 1  ;;  %s2473_s9 = smov (!%p547_p11, %s544_s9), 71 }
  0x49   : > { %v934_v41 = vsel %vm932_vm1, %v933_v40, 0  ;;  %v1761_v49 = vld [vmem:[%s2088_s5 + $0x50] sm:$0xff]  ;;  %v1770_v50 = vld [vmem:[%s2088_s5 + $0x98] sm:$0xff]  ;;  %v1779_v51 = vld [vmem:[%s2088_s5 + $0xe0] sm:$0xff]  ;;  %s1798_s17 = smul.u32 72, %s2471_s18  ;;  %vm1442_vm4 = vcmask 125952  }
  0x4a   : > { %v936_v42 = vand.u32 %v1712_v38, %v934_v41  ;;  %v1753_v52 = vld [vmem:[%s2088_s5 + $0x10] sm:$0xff]  ;;  %v1762_v53 = vld [vmem:[%s2088_s5 + $0x58] sm:$0xff]  ;;  %v1771_v54 = vld [vmem:[%s2088_s5 + $0xa0] sm:$0xff] }
  0x4b   : > { %v1780_v55 = vld [vmem:[%s2088_s5 + $0xe8] sm:$0xff]  ;;  %v1754_v56 = vld [vmem:[%s2088_s5 + $0x18] sm:$0xff]  ;;  %v1763_v57 = vld [vmem:[%s2088_s5 + $0x60] sm:$0xff]  ;;  %s550_s18 = sadd.s32 %s1798_s17, %s2473_s9 }
  0x4c   : > { %944 = vmatpush.bf16.msra.mxu0 %v936_v42  ;;  %1789 = vmatpush.bf16.msra.mxu1 %v936_v42  ;;  %v1772_v58 = vld [vmem:[%s2088_s5 + $0xa8] sm:$0xff]  ;;  %v1781_v59 = vld [vmem:[%s2088_s5 + $0xf0] sm:$0xff]  ;;  %v1755_v60 = vld [vmem:[%s2088_s5 + $0x20] sm:$0xff]  ;;  %s1560_s10 = sshll.u32 %s550_s18, 2 }
  0x4d   : > { %1790 = vmatpush.bf16.msra.mxu2 %v936_v42  ;;  %1791 = vmatpush.bf16.msra.mxu3 %v936_v42  ;;  %v1764_v61 = vld [vmem:[%s2088_s5 + $0x68] sm:$0xff]  ;;  %v1773_v62 = vld [vmem:[%s2088_s5 + $0xb0] sm:$0xff]  ;;  %v1782_v63 = vld [vmem:[%s2088_s5 + $0xf8] sm:$0xff]  ;;  %s2200_s13 = scalar_lea.vmem %s2457_s4, %s1560_s10 }
  0x4e   : > { %v1756_v0 = vld [vmem:[%s2088_s5 + $0x28] sm:$0xff]  ;;  %v1765_v1 = vld [vmem:[%s2088_s5 + $0x70] sm:$0xff]  ;;  %v1774_v2 = vld [vmem:[%s2088_s5 + $0xb8] sm:$0xff] }
  0x4f   : > { %v1783_v3 = vld [vmem:[%s2088_s5 + $0x100] sm:$0xff]  ;;  %v1757_v4 = vld [vmem:[%s2088_s5 + $0x30] sm:$0xff]  ;;  %v1766_v5 = vld [vmem:[%s2088_s5 + $0x78] sm:$0xff] }
  0x50   : > { %945 = vmatpush.bf16.msra.mxu0 %v1787_v43  ;;  %1792 = vmatpush.bf16.msra.mxu1 %v1787_v43  ;;  %v1775_v6 = vld [vmem:[%s2088_s5 + $0xc0] sm:$0xff]  ;;  %v1784_v7 = vld [vmem:[%s2088_s5 + $0x108] sm:$0xff]  ;;  %v1758_v8 = vld [vmem:[%s2088_s5 + $0x38] sm:$0xff] }
  0x51   : > { %1793 = vmatpush.bf16.msra.mxu2 %v1787_v43  ;;  %1794 = vmatpush.bf16.msra.mxu3 %v1787_v43  ;;  %v1767_v9 = vld [vmem:[%s2088_s5 + $0x80] sm:$0xff]  ;;  %v1776_v10 = vld [vmem:[%s2088_s5 + $0xc8] sm:$0xff]  ;;  %v1785_v11 = vld [vmem:[%s2088_s5 + $0x110] sm:$0xff] }
  0x52   : > { %v2157_v12 = vld [vmem:[%s2455_s2] ss:$0 sm:$0xff]  ;;  %v1768_v15 = vld [vmem:[%s2088_s5 + $0x88] sm:$0xff]  ;;  %v1777_v18 = vld [vmem:[%s2088_s5 + $0xd0] sm:$0xff] }
  0x53   : > { %1713 = vmatmul.msk.bf16.vlgmr.msra.gmra.mxu0 %vm822_vm2, %v1751_v44  ;;  %1722 = vmatmul.msk.bf16.vlgmr.msra.gmra.mxu1 %vm822_vm2, %v1760_v45  ;;  %v2162_v13 = vld [vmem:[%s2456_s3] ss:$0 sm:$0xff]  ;;  %v1786_v19 = vld [vmem:[%s2088_s5 + $0x118] sm:$0xff] }
  0x54   : > { %1731 = vmatmul.msk.bf16.vlgmr.msra.gmra.mxu2 %vm822_vm2, %v1769_v46  ;;  %1740 = vmatmul.msk.bf16.vlgmr.msra.gmra.mxu3 %vm822_vm2, %v1778_v47  ;;  %v1759_v14 = vld [vmem:[%s2088_s5 + $0x40] sm:$0xff] }
  0x63   : > { %1714 = vmatmul.msk.bf16.gmra.mxu0 %vm822_vm2, %v1752_v48  ;;  %1723 = vmatmul.msk.bf16.gmra.mxu1 %vm822_vm2, %v1761_v49 }
  0x64   : > { %1732 = vmatmul.msk.bf16.gmra.mxu2 %vm822_vm2, %v1770_v50  ;;  %1741 = vmatmul.msk.bf16.gmra.mxu3 %vm822_vm2, %v1779_v51 }
  0x73   : > { %1715 = vmatmul.msk.bf16.gmra.mxu0 %vm822_vm2, %v1753_v52  ;;  %1724 = vmatmul.msk.bf16.gmra.mxu1 %vm822_vm2, %v1762_v53 }
  0x74   : > { %1733 = vmatmul.msk.bf16.gmra.mxu2 %vm822_vm2, %v1771_v54  ;;  %1742 = vmatmul.msk.bf16.gmra.mxu3 %vm822_vm2, %v1780_v55 }
  0x83   : > { %1716 = vmatmul.msk.bf16.gmra.mxu0 %vm822_vm2, %v1754_v56  ;;  %1725 = vmatmul.msk.bf16.gmra.mxu1 %vm822_vm2, %v1763_v57 }
  0x84   : > { %1734 = vmatmul.msk.bf16.gmra.mxu2 %vm822_vm2, %v1772_v58  ;;  %1743 = vmatmul.msk.bf16.gmra.mxu3 %vm822_vm2, %v1781_v59 }
  0x93   : > { %1717 = vmatmul.msk.bf16.gmra.mxu0 %vm822_vm2, %v1755_v60  ;;  %1726 = vmatmul.msk.bf16.gmra.mxu1 %vm822_vm2, %v1764_v61 }
  0x94   : > { %1735 = vmatmul.msk.bf16.gmra.mxu2 %vm822_vm2, %v1773_v62  ;;  %1744 = vmatmul.msk.bf16.gmra.mxu3 %vm822_vm2, %v1782_v63 }
  0xa3   : > { %1718 = vmatmul.msk.bf16.gmra.mxu0 %vm822_vm2, %v1756_v0  ;;  %1727 = vmatmul.msk.bf16.gmra.mxu1 %vm822_vm2, %v1765_v1 }
  0xa4   : > { %1736 = vmatmul.msk.bf16.gmra.mxu2 %vm822_vm2, %v1774_v2  ;;  %1745 = vmatmul.msk.bf16.gmra.mxu3 %vm822_vm2, %v1783_v3 }
  0xb3   : > { %1719 = vmatmul.msk.bf16.gmra.mxu0 %vm822_vm2, %v1757_v4  ;;  %1728 = vmatmul.msk.bf16.gmra.mxu1 %vm822_vm2, %v1766_v5 }
  0xb4   : > { %1737 = vmatmul.msk.bf16.gmra.mxu2 %vm822_vm2, %v1775_v6  ;;  %1746 = vmatmul.msk.bf16.gmra.mxu3 %vm822_vm2, %v1784_v7 }
  0xc3   : > { %1720 = vmatmul.msk.bf16.gmra.mxu0 %vm822_vm2, %v1758_v8  ;;  %1729 = vmatmul.msk.bf16.gmra.mxu1 %vm822_vm2, %v1767_v9 }
  0xc4   : > { %1738 = vmatmul.msk.bf16.gmra.mxu2 %vm822_vm2, %v1776_v10  ;;  %1747 = vmatmul.msk.bf16.gmra.mxu3 %vm822_vm2, %v1785_v11 }
  0xd0   : > { %v947_v16 = vpop.f32.mrf.mxu0  ;;  %v992_v17 = vpop.f32.mrf.mxu1 }
  0xd1   : > { %v1131_v20 = vmul.f32 %v2157_v12, %v947_v16  ;;  %v1149_v21 = vmul.f32 %v2157_v12, %v992_v17 }
  0xd3   : > { %v1207_v22 = vadd.f32 %v2162_v13, %v1131_v20  ;;  %v1225_v23 = vadd.f32 %v2162_v13, %v1149_v21  ;;  %1721 = vmatmul.msk.bf16.gmra.mxu0 %vm822_vm2, %v1759_v14  ;;  %1730 = vmatmul.msk.bf16.gmra.mxu1 %vm822_vm2, %v1768_v15 }
  0xd4   : > { %1739 = vmatmul.msk.bf16.gmra.mxu2 %vm822_vm2, %v1777_v18  ;;  %1748 = vmatmul.msk.bf16.gmra.mxu3 %vm822_vm2, %v1786_v19 }
  0xd5   : > { %v1280_v24 = vsel %vm1279_vm3, %v1207_v22, -inf  ;;  %v1281_v25 = vsel %vm1279_vm3, %v1225_v23, -inf }
  0xd6   : > { %v1282_v32 = vmax.f32 %v1280_v24, %v1281_v25 }
  0xd7   : > { %v1037_v26 = vpop.f32.mrf.mxu2  ;;  %v1082_v27 = vpop.f32.mrf.mxu3 }
  0xd8   : > { %v1167_v28 = vmul.f32 %v2157_v12, %v1037_v26  ;;  %v1185_v29 = vmul.f32 %v2157_v12, %v1082_v27  ;;  %v949_v30 = vpop.f32.mrf.mxu0  ;;  %v994_v31 = vpop.f32.mrf.mxu1 }
  0xd9   : > { %v1132_v33 = vmul.f32 %v2157_v12, %v949_v30  ;;  %v1150_v34 = vmul.f32 %v2157_v12, %v994_v31 }
  0xda   : > { %v1243_v35 = vadd.f32 %v2162_v13, %v1167_v28  ;;  %v1261_v36 = vadd.f32 %v2162_v13, %v1185_v29 }
  0xdb   : > { %v1208_v39 = vadd.f32 %v2162_v13, %v1132_v33  ;;  %v1226_v40 = vadd.f32 %v2162_v13, %v1150_v34 }
  0xdc   : > { %v1283_v37 = vsel %vm1279_vm3, %v1243_v35, -inf  ;;  %v1285_v38 = vsel %vm1279_vm3, %v1261_v36, -inf }
  0xdd   : > { %v1284_v41 = vmax.f32 %v1282_v32, %v1283_v37  ;;  %v1287_v45 = vsel %vm1279_vm3, %v1208_v39, -inf  ;;  %v1288_v46 = vsel %vm1279_vm3, %v1226_v40, -inf }
  0xde   : > { %v1289_v57 = vmax.f32 %v1287_v45, %v1288_v46 }
  0xdf   : > { %v1286_v42 = vmax.f32 %v1284_v41, %v1285_v38  ;;  %v1039_v43 = vpop.f32.mrf.mxu2  ;;  %v1084_v44 = vpop.f32.mrf.mxu3 }
  0xe0   : > { %v1168_v47 = vmul.f32 %v2157_v12, %v1039_v43  ;;  %v1186_v48 = vmul.f32 %v2157_v12, %v1084_v44  ;;  %v952_v49 = vpop.f32.mrf.mxu0  ;;  %v997_v50 = vpop.f32.mrf.mxu1 }
  0xe1   : > { %v1406_v51 = vmax.f32 %v1286_v42, 0.0  ;;  %v1133_v52 = vmul.f32 %v2157_v12, %v952_v49  ;;  %v1151_v53 = vmul.f32 %v2157_v12, %v997_v50 }
  0xe2   : > { %v1244_v54 = vadd.f32 %v2162_v13, %v1168_v47  ;;  %v1262_v55 = vadd.f32 %v2162_v13, %v1186_v48 }
  0xe3   : > { %v1424_v56 = vpack.c.bf16 %v1406_v51, %v1406_v51  ;;  %v1209_v58 = vadd.f32 %v2162_v13, %v1133_v52  ;;  %v1227_v59 = vadd.f32 %v2162_v13, %v1151_v53 }
  0xe4   : > { %v1290_v60 = vsel %vm1279_vm3, %v1244_v54, -inf  ;;  %v1292_v62 = vsel %vm1279_vm3, %v1262_v55, -inf }
  0xe5   : > { %1443 = vst.msk [vmem:[%s2200_s13] sm:$0xf] %vm1442_vm4, %v1424_v56  ;;  %v1291_v61 = vmax.f32 %v1289_v57, %v1290_v60  ;;  %v1294_v63 = vsel %vm1279_vm3, %v1209_v58, -inf  ;;  %v1295_v0 = vsel %vm1279_vm3, %v1227_v59, -inf }
  0xe6   : > { %v1296_v9 = vmax.f32 %v1294_v63, %v1295_v0 }
  0xe7   : > { %v1293_v1 = vmax.f32 %v1291_v61, %v1292_v62  ;;  %v1042_v2 = vpop.f32.mrf.mxu2  ;;  %v1087_v3 = vpop.f32.mrf.mxu3 }
  0xe8   : > { %v1169_v4 = vmul.f32 %v2157_v12, %v1042_v2  ;;  %v1187_v5 = vmul.f32 %v2157_v12, %v1087_v3  ;;  %v954_v6 = vpop.f32.mrf.mxu0  ;;  %v999_v7 = vpop.f32.mrf.mxu1 }
  0xe9   : > { %v1407_v8 = vmax.f32 %v1293_v1, 0.0  ;;  %v1134_v10 = vmul.f32 %v2157_v12, %v954_v6  ;;  %v1152_v11 = vmul.f32 %v2157_v12, %v999_v7 }
  0xea   : > { %v1245_v14 = vadd.f32 %v2162_v13, %v1169_v4  ;;  %v1263_v15 = vadd.f32 %v2162_v13, %v1187_v5 }
  0xeb   : > { %v1425_v16 = vpack.c.bf16 %v1407_v8, %v1407_v8  ;;  %v1210_v19 = vadd.f32 %v2162_v13, %v1134_v10  ;;  %v1228_v20 = vadd.f32 %v2162_v13, %v1152_v11 }
  0xec   : > { %v1297_v17 = vsel %vm1279_vm3, %v1245_v14, -inf  ;;  %v1299_v18 = vsel %vm1279_vm3, %v1263_v15, -inf }
  0xed   : > { %1444 = vst.msk [vmem:[%s2200_s13 + $0x4] sm:$0xf] %vm1442_vm4, %v1425_v16  ;;  %v1298_v21 = vmax.f32 %v1296_v9, %v1297_v17  ;;  %v1301_v25 = vsel %vm1279_vm3, %v1210_v19, -inf  ;;  %v1302_v26 = vsel %vm1279_vm3, %v1228_v20, -inf }
  0xee   : > { %v1303_v37 = vmax.f32 %v1301_v25, %v1302_v26 }
  0xef   : > { %v1300_v22 = vmax.f32 %v1298_v21, %v1299_v18  ;;  %v1044_v23 = vpop.f32.mrf.mxu2  ;;  %v1089_v24 = vpop.f32.mrf.mxu3 }
  0xf0   : > { %v1170_v27 = vmul.f32 %v2157_v12, %v1044_v23  ;;  %v1188_v28 = vmul.f32 %v2157_v12, %v1089_v24  ;;  %v957_v29 = vpop.f32.mrf.mxu0  ;;  %v1002_v30 = vpop.f32.mrf.mxu1 }
  0xf1   : > { %v1408_v31 = vmax.f32 %v1300_v22, 0.0  ;;  %v1135_v32 = vmul.f32 %v2157_v12, %v957_v29  ;;  %v1153_v33 = vmul.f32 %v2157_v12, %v1002_v30 }
  0xf2   : > { %v1246_v34 = vadd.f32 %v2162_v13, %v1170_v27  ;;  %v1264_v35 = vadd.f32 %v2162_v13, %v1188_v28 }
  0xf3   : > { %v1426_v36 = vpack.c.bf16 %v1408_v31, %v1408_v31  ;;  %v1211_v38 = vadd.f32 %v2162_v13, %v1135_v32  ;;  %v1229_v39 = vadd.f32 %v2162_v13, %v1153_v33 }
  0xf4   : > { %v1304_v40 = vsel %vm1279_vm3, %v1246_v34, -inf  ;;  %v1306_v42 = vsel %vm1279_vm3, %v1264_v35, -inf }
  0xf5   : > { %1445 = vst.msk [vmem:[%s2200_s13 + $0x8] sm:$0xf] %vm1442_vm4, %v1426_v36  ;;  %v1305_v41 = vmax.f32 %v1303_v37, %v1304_v40  ;;  %v1308_v43 = vsel %vm1279_vm3, %v1211_v38, -inf  ;;  %v1309_v44 = vsel %vm1279_vm3, %v1229_v39, -inf }
  0xf6   : > { %v1310_v53 = vmax.f32 %v1308_v43, %v1309_v44 }
  0xf7   : > { %v1307_v45 = vmax.f32 %v1305_v41, %v1306_v42  ;;  %v1047_v46 = vpop.f32.mrf.mxu2  ;;  %v1092_v47 = vpop.f32.mrf.mxu3 }
  0xf8   : > { %v1171_v48 = vmul.f32 %v2157_v12, %v1047_v46  ;;  %v1189_v49 = vmul.f32 %v2157_v12, %v1092_v47  ;;  %v959_v50 = vpop.f32.mrf.mxu0  ;;  %v1004_v51 = vpop.f32.mrf.mxu1 }
  0xf9   : > { %v1409_v52 = vmax.f32 %v1307_v45, 0.0  ;;  %v1136_v54 = vmul.f32 %v2157_v12, %v959_v50  ;;  %v1154_v55 = vmul.f32 %v2157_v12, %v1004_v51 }
  0xfa   : > { %v1247_v56 = vadd.f32 %v2162_v13, %v1171_v48  ;;  %v1265_v57 = vadd.f32 %v2162_v13, %v1189_v49 }
  0xfb   : > { %v1427_v58 = vpack.c.bf16 %v1409_v52, %v1409_v52  ;;  %v1212_v61 = vadd.f32 %v2162_v13, %v1136_v54  ;;  %v1230_v62 = vadd.f32 %v2162_v13, %v1154_v55 }
  0xfc   : > { %v1311_v59 = vsel %vm1279_vm3, %v1247_v56, -inf  ;;  %v1313_v60 = vsel %vm1279_vm3, %v1265_v57, -inf }
  0xfd   : > { %1446 = vst.msk [vmem:[%s2200_s13 + $0xc] sm:$0xf] %vm1442_vm4, %v1427_v58  ;;  %v1312_v63 = vmax.f32 %v1310_v53, %v1311_v59  ;;  %v1315_v3 = vsel %vm1279_vm3, %v1212_v61, -inf  ;;  %v1316_v4 = vsel %vm1279_vm3, %v1230_v62, -inf }
  0xfe   : > { %v1317_v17 = vmax.f32 %v1315_v3, %v1316_v4 }
  0xff   : > { %v1314_v0 = vmax.f32 %v1312_v63, %v1313_v60  ;;  %v1049_v1 = vpop.f32.mrf.mxu2  ;;  %v1094_v2 = vpop.f32.mrf.mxu3 }
 0x100   : > { %v1172_v5 = vmul.f32 %v2157_v12, %v1049_v1  ;;  %v1190_v6 = vmul.f32 %v2157_v12, %v1094_v2  ;;  %v962_v7 = vpop.f32.mrf.mxu0  ;;  %v1007_v8 = vpop.f32.mrf.mxu1 }
 0x101   : > { %v1410_v9 = vmax.f32 %v1314_v0, 0.0  ;;  %v1137_v10 = vmul.f32 %v2157_v12, %v962_v7  ;;  %v1155_v11 = vmul.f32 %v2157_v12, %v1007_v8 }
 0x102   : > { %v1248_v14 = vadd.f32 %v2162_v13, %v1172_v5  ;;  %v1266_v15 = vadd.f32 %v2162_v13, %v1190_v6 }
 0x103   : > { %v1428_v16 = vpack.c.bf16 %v1410_v9, %v1410_v9  ;;  %v1213_v18 = vadd.f32 %v2162_v13, %v1137_v10  ;;  %v1231_v19 = vadd.f32 %v2162_v13, %v1155_v11 }
 0x104   : > { %v1318_v20 = vsel %vm1279_vm3, %v1248_v14, -inf  ;;  %v1320_v22 = vsel %vm1279_vm3, %v1266_v15, -inf }
 0x105   : > { %1447 = vst.msk [vmem:[%s2200_s13 + $0x10] sm:$0xf] %vm1442_vm4, %v1428_v16  ;;  %v1319_v21 = vmax.f32 %v1317_v17, %v1318_v20  ;;  %v1322_v23 = vsel %vm1279_vm3, %v1213_v18, -inf  ;;  %v1323_v24 = vsel %vm1279_vm3, %v1231_v19, -inf }
 0x106   : > { %v1324_v33 = vmax.f32 %v1322_v23, %v1323_v24 }
 0x107   : > { %v1321_v25 = vmax.f32 %v1319_v21, %v1320_v22  ;;  %v1052_v26 = vpop.f32.mrf.mxu2  ;;  %v1097_v27 = vpop.f32.mrf.mxu3 }
 0x108   : > { %v1173_v28 = vmul.f32 %v2157_v12, %v1052_v26  ;;  %v1191_v29 = vmul.f32 %v2157_v12, %v1097_v27  ;;  %v964_v30 = vpop.f32.mrf.mxu0  ;;  %v1009_v31 = vpop.f32.mrf.mxu1 }
 0x109   : > { %v1411_v32 = vmax.f32 %v1321_v25, 0.0  ;;  %v1138_v34 = vmul.f32 %v2157_v12, %v964_v30  ;;  %v1156_v35 = vmul.f32 %v2157_v12, %v1009_v31 }
 0x10a   : > { %v1249_v36 = vadd.f32 %v2162_v13, %v1173_v28  ;;  %v1267_v37 = vadd.f32 %v2162_v13, %v1191_v29 }
 0x10b   : > { %v1429_v38 = vpack.c.bf16 %v1411_v32, %v1411_v32  ;;  %v1214_v41 = vadd.f32 %v2162_v13, %v1138_v34  ;;  %v1232_v42 = vadd.f32 %v2162_v13, %v1156_v35 }
 0x10c   : > { %v1325_v39 = vsel %vm1279_vm3, %v1249_v36, -inf  ;;  %v1327_v40 = vsel %vm1279_vm3, %v1267_v37, -inf }
 0x10d   : > { %1448 = vst.msk [vmem:[%s2200_s13 + $0x14] sm:$0xf] %vm1442_vm4, %v1429_v38  ;;  %v1326_v43 = vmax.f32 %v1324_v33, %v1325_v39  ;;  %v1329_v47 = vsel %vm1279_vm3, %v1214_v41, -inf  ;;  %v1330_v48 = vsel %vm1279_vm3, %v1232_v42, -inf }
 0x10e   : > { %v1331_v59 = vmax.f32 %v1329_v47, %v1330_v48 }
 0x10f   : > { %v1328_v44 = vmax.f32 %v1326_v43, %v1327_v40  ;;  %v1054_v45 = vpop.f32.mrf.mxu2  ;;  %v1099_v46 = vpop.f32.mrf.mxu3 }
 0x110   : > { %v1174_v49 = vmul.f32 %v2157_v12, %v1054_v45  ;;  %v1192_v50 = vmul.f32 %v2157_v12, %v1099_v46  ;;  %v967_v51 = vpop.f32.mrf.mxu0  ;;  %v1012_v52 = vpop.f32.mrf.mxu1 }
 0x111   : > { %v1412_v53 = vmax.f32 %v1328_v44, 0.0  ;;  %v1139_v54 = vmul.f32 %v2157_v12, %v967_v51  ;;  %v1157_v55 = vmul.f32 %v2157_v12, %v1012_v52 }
 0x112   : > { %v1250_v56 = vadd.f32 %v2162_v13, %v1174_v49  ;;  %v1268_v57 = vadd.f32 %v2162_v13, %v1192_v50 }
 0x113   : > { %v1430_v58 = vpack.c.bf16 %v1412_v53, %v1412_v53  ;;  %v1215_v60 = vadd.f32 %v2162_v13, %v1139_v54  ;;  %v1233_v61 = vadd.f32 %v2162_v13, %v1157_v55 }
 0x114   : > { %v1332_v62 = vsel %vm1279_vm3, %v1250_v56, -inf  ;;  %v1334_v0 = vsel %vm1279_vm3, %v1268_v57, -inf }
 0x115   : > { %1449 = vst.msk [vmem:[%s2200_s13 + $0x18] sm:$0xf] %vm1442_vm4, %v1430_v58  ;;  %v1333_v63 = vmax.f32 %v1331_v59, %v1332_v62  ;;  %v1336_v1 = vsel %vm1279_vm3, %v1215_v60, -inf  ;;  %v1337_v2 = vsel %vm1279_vm3, %v1233_v61, -inf }
 0x116   : > { %v1338_v11 = vmax.f32 %v1336_v1, %v1337_v2 }
 0x117   : > { %v1335_v3 = vmax.f32 %v1333_v63, %v1334_v0  ;;  %v1057_v4 = vpop.f32.mrf.mxu2  ;;  %v1102_v5 = vpop.f32.mrf.mxu3 }
 0x118   : > { %v1175_v6 = vmul.f32 %v2157_v12, %v1057_v4  ;;  %v1193_v7 = vmul.f32 %v2157_v12, %v1102_v5  ;;  %v969_v8 = vpop.f32.mrf.mxu0  ;;  %v1014_v9 = vpop.f32.mrf.mxu1 }
 0x119   : > { %v1413_v10 = vmax.f32 %v1335_v3, 0.0  ;;  %v1140_v14 = vmul.f32 %v2157_v12, %v969_v8  ;;  %v1158_v15 = vmul.f32 %v2157_v12, %v1014_v9 }
 0x11a   : > { %v1251_v16 = vadd.f32 %v2162_v13, %v1175_v6  ;;  %v1269_v17 = vadd.f32 %v2162_v13, %v1193_v7 }
 0x11b   : > { %v1431_v18 = vpack.c.bf16 %v1413_v10, %v1413_v10  ;;  %v1216_v21 = vadd.f32 %v2162_v13, %v1140_v14  ;;  %v1234_v22 = vadd.f32 %v2162_v13, %v1158_v15 }
 0x11c   : > { %v1339_v19 = vsel %vm1279_vm3, %v1251_v16, -inf  ;;  %v1341_v20 = vsel %vm1279_vm3, %v1269_v17, -inf }
 0x11d   : > { %1450 = vst.msk [vmem:[%s2200_s13 + $0x1c] sm:$0xf] %vm1442_vm4, %v1431_v18  ;;  %v1340_v23 = vmax.f32 %v1338_v11, %v1339_v19  ;;  %v1343_v27 = vsel %vm1279_vm3, %v1216_v21, -inf  ;;  %v1344_v28 = vsel %vm1279_vm3, %v1234_v22, -inf }
 0x11e   : > { %v1345_v39 = vmax.f32 %v1343_v27, %v1344_v28 }
 0x11f   : > { %v1342_v24 = vmax.f32 %v1340_v23, %v1341_v20  ;;  %v1059_v25 = vpop.f32.mrf.mxu2  ;;  %v1104_v26 = vpop.f32.mrf.mxu3 }
 0x120   : > { %v1176_v29 = vmul.f32 %v2157_v12, %v1059_v25  ;;  %v1194_v30 = vmul.f32 %v2157_v12, %v1104_v26  ;;  %v972_v31 = vpop.f32.mrf.mxu0  ;;  %v1017_v32 = vpop.f32.mrf.mxu1 }
 0x121   : > { %v1414_v33 = vmax.f32 %v1342_v24, 0.0  ;;  %v1141_v34 = vmul.f32 %v2157_v12, %v972_v31  ;;  %v1159_v35 = vmul.f32 %v2157_v12, %v1017_v32 }
 0x122   : > { %v1252_v36 = vadd.f32 %v2162_v13, %v1176_v29  ;;  %v1270_v37 = vadd.f32 %v2162_v13, %v1194_v30 }
 0x123   : > { %v1432_v38 = vpack.c.bf16 %v1414_v33, %v1414_v33  ;;  %v1217_v40 = vadd.f32 %v2162_v13, %v1141_v34  ;;  %v1235_v41 = vadd.f32 %v2162_v13, %v1159_v35 }
 0x124   : > { %v1346_v42 = vsel %vm1279_vm3, %v1252_v36, -inf  ;;  %v1348_v44 = vsel %vm1279_vm3, %v1270_v37, -inf }
 0x125   : > { %1451 = vst.msk [vmem:[%s2200_s13 + $0x20] sm:$0xf] %vm1442_vm4, %v1432_v38  ;;  %v1347_v43 = vmax.f32 %v1345_v39, %v1346_v42  ;;  %v1350_v45 = vsel %vm1279_vm3, %v1217_v40, -inf  ;;  %v1351_v46 = vsel %vm1279_vm3, %v1235_v41, -inf }
 0x126   : > { %v1352_v55 = vmax.f32 %v1350_v45, %v1351_v46 }
 0x127   : > { %v1349_v47 = vmax.f32 %v1347_v43, %v1348_v44  ;;  %v1062_v48 = vpop.f32.mrf.mxu2  ;;  %v1107_v49 = vpop.f32.mrf.mxu3 }
 0x128   : > { %v1177_v50 = vmul.f32 %v2157_v12, %v1062_v48  ;;  %v1195_v51 = vmul.f32 %v2157_v12, %v1107_v49  ;;  %v974_v52 = vpop.f32.mrf.mxu0  ;;  %v1019_v53 = vpop.f32.mrf.mxu1 }
 0x129   : > { %v1415_v54 = vmax.f32 %v1349_v47, 0.0  ;;  %v1142_v56 = vmul.f32 %v2157_v12, %v974_v52  ;;  %v1160_v57 = vmul.f32 %v2157_v12, %v1019_v53 }
 0x12a   : > { %v1253_v58 = vadd.f32 %v2162_v13, %v1177_v50  ;;  %v1271_v59 = vadd.f32 %v2162_v13, %v1195_v51 }
 0x12b   : > { %v1433_v60 = vpack.c.bf16 %v1415_v54, %v1415_v54  ;;  %v1218_v63 = vadd.f32 %v2162_v13, %v1142_v56  ;;  %v1236_v0 = vadd.f32 %v2162_v13, %v1160_v57 }
 0x12c   : > { %v1353_v61 = vsel %vm1279_vm3, %v1253_v58, -inf  ;;  %v1355_v62 = vsel %vm1279_vm3, %v1271_v59, -inf }
 0x12d   : > { %1452 = vst.msk [vmem:[%s2200_s13 + $0x24] sm:$0xf] %vm1442_vm4, %v1433_v60  ;;  %v1354_v1 = vmax.f32 %v1352_v55, %v1353_v61  ;;  %v1357_v5 = vsel %vm1279_vm3, %v1218_v63, -inf  ;;  %v1358_v6 = vsel %vm1279_vm3, %v1236_v0, -inf }
 0x12e   : > { %v1359_v19 = vmax.f32 %v1357_v5, %v1358_v6 }
 0x12f   : > { %v1356_v2 = vmax.f32 %v1354_v1, %v1355_v62  ;;  %v1064_v3 = vpop.f32.mrf.mxu2  ;;  %v1109_v4 = vpop.f32.mrf.mxu3 }
 0x130   : > { %v1178_v7 = vmul.f32 %v2157_v12, %v1064_v3  ;;  %v1196_v8 = vmul.f32 %v2157_v12, %v1109_v4  ;;  %v977_v9 = vpop.f32.mrf.mxu0  ;;  %v1022_v10 = vpop.f32.mrf.mxu1 }
 0x131   : > { %v1416_v11 = vmax.f32 %v1356_v2, 0.0  ;;  %v1143_v14 = vmul.f32 %v2157_v12, %v977_v9  ;;  %v1161_v15 = vmul.f32 %v2157_v12, %v1022_v10 }
 0x132   : > { %v1254_v16 = vadd.f32 %v2162_v13, %v1178_v7  ;;  %v1272_v17 = vadd.f32 %v2162_v13, %v1196_v8 }
 0x133   : > { %v1434_v18 = vpack.c.bf16 %v1416_v11, %v1416_v11  ;;  %v1219_v20 = vadd.f32 %v2162_v13, %v1143_v14  ;;  %v1237_v21 = vadd.f32 %v2162_v13, %v1161_v15 }
 0x134   : > { %v1360_v22 = vsel %vm1279_vm3, %v1254_v16, -inf  ;;  %v1362_v24 = vsel %vm1279_vm3, %v1272_v17, -inf }
 0x135   : > { %1453 = vst.msk [vmem:[%s2200_s13 + $0x28] sm:$0xf] %vm1442_vm4, %v1434_v18  ;;  %v1361_v23 = vmax.f32 %v1359_v19, %v1360_v22  ;;  %v1364_v25 = vsel %vm1279_vm3, %v1219_v20, -inf  ;;  %v1365_v26 = vsel %vm1279_vm3, %v1237_v21, -inf }
 0x136   : > { %v1366_v35 = vmax.f32 %v1364_v25, %v1365_v26 }
 0x137   : > { %v1363_v27 = vmax.f32 %v1361_v23, %v1362_v24  ;;  %v1067_v28 = vpop.f32.mrf.mxu2  ;;  %v1112_v29 = vpop.f32.mrf.mxu3 }
 0x138   : > { %v1179_v30 = vmul.f32 %v2157_v12, %v1067_v28  ;;  %v1197_v31 = vmul.f32 %v2157_v12, %v1112_v29  ;;  %v979_v32 = vpop.f32.mrf.mxu0  ;;  %v1024_v33 = vpop.f32.mrf.mxu1 }
 0x139   : > { %v1417_v34 = vmax.f32 %v1363_v27, 0.0  ;;  %v1144_v36 = vmul.f32 %v2157_v12, %v979_v32  ;;  %v1162_v37 = vmul.f32 %v2157_v12, %v1024_v33 }
 0x13a   : > { %v1255_v38 = vadd.f32 %v2162_v13, %v1179_v30  ;;  %v1273_v39 = vadd.f32 %v2162_v13, %v1197_v31 }
 0x13b   : > { %v1435_v40 = vpack.c.bf16 %v1417_v34, %v1417_v34  ;;  %v1220_v43 = vadd.f32 %v2162_v13, %v1144_v36  ;;  %v1238_v44 = vadd.f32 %v2162_v13, %v1162_v37 }
 0x13c   : > { %v1367_v41 = vsel %vm1279_vm3, %v1255_v38, -inf  ;;  %v1369_v42 = vsel %vm1279_vm3, %v1273_v39, -inf }
 0x13d   : > { %1454 = vst.msk [vmem:[%s2200_s13 + $0x2c] sm:$0xf] %vm1442_vm4, %v1435_v40  ;;  %v1368_v45 = vmax.f32 %v1366_v35, %v1367_v41  ;;  %v1371_v49 = vsel %vm1279_vm3, %v1220_v43, -inf  ;;  %v1372_v50 = vsel %vm1279_vm3, %v1238_v44, -inf }
 0x13e   : > { %v1373_v61 = vmax.f32 %v1371_v49, %v1372_v50 }
 0x13f   : > { %v1370_v46 = vmax.f32 %v1368_v45, %v1369_v42  ;;  %v1069_v47 = vpop.f32.mrf.mxu2  ;;  %v1114_v48 = vpop.f32.mrf.mxu3 }
 0x140   : > { %v1180_v51 = vmul.f32 %v2157_v12, %v1069_v47  ;;  %v1198_v52 = vmul.f32 %v2157_v12, %v1114_v48  ;;  %v982_v53 = vpop.f32.mrf.mxu0  ;;  %v1027_v54 = vpop.f32.mrf.mxu1 }
 0x141   : > { %v1418_v55 = vmax.f32 %v1370_v46, 0.0  ;;  %v1145_v56 = vmul.f32 %v2157_v12, %v982_v53  ;;  %v1163_v57 = vmul.f32 %v2157_v12, %v1027_v54 }
 0x142   : > { %v1256_v58 = vadd.f32 %v2162_v13, %v1180_v51  ;;  %v1274_v59 = vadd.f32 %v2162_v13, %v1198_v52 }
 0x143   : > { %v1436_v60 = vpack.c.bf16 %v1418_v55, %v1418_v55  ;;  %v1221_v62 = vadd.f32 %v2162_v13, %v1145_v56  ;;  %v1239_v63 = vadd.f32 %v2162_v13, %v1163_v57 }
 0x144   : > { %v1374_v0 = vsel %vm1279_vm3, %v1256_v58, -inf  ;;  %v1376_v2 = vsel %vm1279_vm3, %v1274_v59, -inf }
 0x145   : > { %1455 = vst.msk [vmem:[%s2200_s13 + $0x30] sm:$0xf] %vm1442_vm4, %v1436_v60  ;;  %v1375_v1 = vmax.f32 %v1373_v61, %v1374_v0  ;;  %v1378_v3 = vsel %vm1279_vm3, %v1221_v62, -inf  ;;  %v1379_v4 = vsel %vm1279_vm3, %v1239_v63, -inf }
 0x146   : > { %v1380_v15 = vmax.f32 %v1378_v3, %v1379_v4 }
 0x147   : > { %v1377_v5 = vmax.f32 %v1375_v1, %v1376_v2  ;;  %v1072_v6 = vpop.f32.mrf.mxu2  ;;  %v1117_v7 = vpop.f32.mrf.mxu3 }
 0x148   : > { %v1181_v8 = vmul.f32 %v2157_v12, %v1072_v6  ;;  %v1199_v9 = vmul.f32 %v2157_v12, %v1117_v7  ;;  %v984_v10 = vpop.f32.mrf.mxu0  ;;  %v1029_v11 = vpop.f32.mrf.mxu1 }
 0x149   : > { %v1419_v14 = vmax.f32 %v1377_v5, 0.0  ;;  %v1146_v16 = vmul.f32 %v2157_v12, %v984_v10  ;;  %v1164_v17 = vmul.f32 %v2157_v12, %v1029_v11 }
 0x14a   : > { %v1257_v18 = vadd.f32 %v2162_v13, %v1181_v8  ;;  %v1275_v19 = vadd.f32 %v2162_v13, %v1199_v9 }
 0x14b   : > { %v1437_v20 = vpack.c.bf16 %v1419_v14, %v1419_v14  ;;  %v1222_v23 = vadd.f32 %v2162_v13, %v1146_v16  ;;  %v1240_v24 = vadd.f32 %v2162_v13, %v1164_v17 }
 0x14c   : > { %v1381_v21 = vsel %vm1279_vm3, %v1257_v18, -inf  ;;  %v1383_v22 = vsel %vm1279_vm3, %v1275_v19, -inf }
 0x14d   : > { %1456 = vst.msk [vmem:[%s2200_s13 + $0x34] sm:$0xf] %vm1442_vm4, %v1437_v20  ;;  %v1382_v25 = vmax.f32 %v1380_v15, %v1381_v21  ;;  %v1385_v29 = vsel %vm1279_vm3, %v1222_v23, -inf  ;;  %v1386_v30 = vsel %vm1279_vm3, %v1240_v24, -inf }
 0x14e   : > { %v1387_v41 = vmax.f32 %v1385_v29, %v1386_v30 }
 0x14f   : > { %v1384_v26 = vmax.f32 %v1382_v25, %v1383_v22  ;;  %v1074_v27 = vpop.f32.mrf.mxu2  ;;  %v1119_v28 = vpop.f32.mrf.mxu3 }
 0x150   : > { %v1182_v31 = vmul.f32 %v2157_v12, %v1074_v27  ;;  %v1200_v32 = vmul.f32 %v2157_v12, %v1119_v28  ;;  %v987_v33 = vpop.f32.mrf.mxu0  ;;  %v1032_v34 = vpop.f32.mrf.mxu1 }
 0x151   : > { %v1420_v35 = vmax.f32 %v1384_v26, 0.0  ;;  %v1147_v36 = vmul.f32 %v2157_v12, %v987_v33  ;;  %v1165_v37 = vmul.f32 %v2157_v12, %v1032_v34 }
 0x152   : > { %v1258_v38 = vadd.f32 %v2162_v13, %v1182_v31  ;;  %v1276_v39 = vadd.f32 %v2162_v13, %v1200_v32 }
 0x153   : > { %v1438_v40 = vpack.c.bf16 %v1420_v35, %v1420_v35  ;;  %v1223_v42 = vadd.f32 %v2162_v13, %v1147_v36  ;;  %v1241_v43 = vadd.f32 %v2162_v13, %v1165_v37 }
 0x154   : > { %v1388_v44 = vsel %vm1279_vm3, %v1258_v38, -inf  ;;  %v1390_v46 = vsel %vm1279_vm3, %v1276_v39, -inf }
 0x155   : > { %1457 = vst.msk [vmem:[%s2200_s13 + $0x38] sm:$0xf] %vm1442_vm4, %v1438_v40  ;;  %v1389_v45 = vmax.f32 %v1387_v41, %v1388_v44  ;;  %v1392_v47 = vsel %vm1279_vm3, %v1223_v42, -inf  ;;  %v1393_v48 = vsel %vm1279_vm3, %v1241_v43, -inf }
 0x156   : > { %v1394_v57 = vmax.f32 %v1392_v47, %v1393_v48 }
 0x157   : > { %v1391_v49 = vmax.f32 %v1389_v45, %v1390_v46  ;;  %v1077_v50 = vpop.f32.mrf.mxu2  ;;  %v1122_v51 = vpop.f32.mrf.mxu3 }
 0x158   : > { %v1183_v52 = vmul.f32 %v2157_v12, %v1077_v50  ;;  %v1201_v53 = vmul.f32 %v2157_v12, %v1122_v51  ;;  %v989_v54 = vpop.f32.mrf.mxu0  ;;  %v1034_v55 = vpop.f32.mrf.mxu1 }
 0x159   : > { %v1421_v56 = vmax.f32 %v1391_v49, 0.0  ;;  %v1148_v58 = vmul.f32 %v2157_v12, %v989_v54  ;;  %v1166_v59 = vmul.f32 %v2157_v12, %v1034_v55 }
 0x15a   : > { %v1259_v60 = vadd.f32 %v2162_v13, %v1183_v52  ;;  %v1277_v61 = vadd.f32 %v2162_v13, %v1201_v53 }
 0x15b   : > { %v1439_v62 = vpack.c.bf16 %v1421_v56, %v1421_v56  ;;  %v1224_v1 = vadd.f32 %v2162_v13, %v1148_v58  ;;  %v1242_v2 = vadd.f32 %v2162_v13, %v1166_v59 }
 0x15c   : > { %v1395_v63 = vsel %vm1279_vm3, %v1259_v60, -inf  ;;  %v1397_v0 = vsel %vm1279_vm3, %v1277_v61, -inf }
 0x15d   : > { %1458 = vst.msk [vmem:[%s2200_s13 + $0x3c] sm:$0xf] %vm1442_vm4, %v1439_v62  ;;  %v1396_v3 = vmax.f32 %v1394_v57, %v1395_v63  ;;  %v1399_v7 = vsel %vm1279_vm3, %v1224_v1, -inf  ;;  %v1400_v8 = vsel %vm1279_vm3, %v1242_v2, -inf }
 0x15e   : > { %v1401_v17 = vmax.f32 %v1399_v7, %v1400_v8 }
 0x15f   : > { %v1398_v4 = vmax.f32 %v1396_v3, %v1397_v0  ;;  %v1079_v5 = vpop.f32.mrf.mxu2  ;;  %v1124_v6 = vpop.f32.mrf.mxu3 }
 0x160   : > { %v1184_v9 = vmul.f32 %v2157_v12, %v1079_v5  ;;  %v1202_v10 = vmul.f32 %v2157_v12, %v1124_v6 }
 0x161   : > { %v1422_v11 = vmax.f32 %v1398_v4, 0.0 }
 0x162   : > { %v1260_v14 = vadd.f32 %v2162_v13, %v1184_v9  ;;  %v1278_v15 = vadd.f32 %v2162_v13, %v1202_v10 }
 0x163   : > { %v1440_v16 = vpack.c.bf16 %v1422_v11, %v1422_v11 }
 0x164   : > { %v1402_v18 = vsel %vm1279_vm3, %v1260_v14, -inf  ;;  %v1404_v20 = vsel %vm1279_vm3, %v1278_v15, -inf }
 0x165   : > { %1459 = vst.msk [vmem:[%s2200_s13 + $0x40] sm:$0xf] %vm1442_vm4, %v1440_v16  ;;  %v1403_v19 = vmax.f32 %v1401_v17, %v1402_v18 }
 0x167   : > { %v1405_v21 = vmax.f32 %v1403_v19, %v1404_v20 }
 0x169   : > { %v1423_v22 = vmax.f32 %v1405_v21, 0.0 }
 0x16b   : > { %v1441_v23 = vpack.c.bf16 %v1423_v22, %v1423_v22 }
 0x16d   : > { %1460 = vst.msk [vmem:[%s2200_s13 + $0x44] sm:$0xf] %vm1442_vm4, %v1441_v23 }
 0x16e PF: > { %s14_s21 = sadd.s32 1, %s1912_s21   ;;  %s2458_s15 = smov %s1892_s16 }
 0x16f   : > { %p11_p12 = scmp.ge.s32.totalorder %s14_s21, 10   ;;  %s2459_s16 = smov %s1991_s28 }
 0x170   : > { %s2460_s17 = smov %s1904_s19  ;;  %s2461_s18 = smov %s1908_s20 }
 0x171   : > { %s2462_s19 = smov %s2465_s22  ;;  %s2463_s20 = smov %s2469_s23 }
 0x172   :  { %13 = sbr.rel (!%p11_p12) target bundleno = 4 (0x4), region = 112 }

// kernel: convnet_forward.4
= control target key start
LH: loop header
LB: loop body
LE: loop exit
PB: predicated region body
PF: predicated region fallthrough
CT: control target
= control target key end

     0   :  { %s3527_s15 = smov 0   ;;  %s3529_s16 = smov 0   ;;  %s4566_s0 = inlined_call_operand.vmem [shape: bf16[2,4,144,400], index: 0, kind: input, shape index: {}]   ;;  %s4567_s1 = inlined_call_operand.vmem [shape: bf16[400,32], index: 1, kind: input, shape index: {}]   ;;  %s4568_s2 = inlined_call_operand.vmem [shape: f32[1,32], index: 2, kind: input, shape index: {}]   ;;  %s4569_s3 = inlined_call_operand.vmem [shape: f32[1,32], index: 3, kind: input, shape index: {}]   ;;  %s4570_s4 = inlined_call_operand.vmem [shape: bf16[2,144,32], index: 4, kind: output, shape index: {}]  }
   0x1   :  { %s3531_s17 = smov 0  }
   0x2 LB: > { %s26_s18 = sadd.s32 1, %s3496_s16  ;;  %p2562_p0 = scmp.ge.s32.totalorder %s3500_s17, 1  ;;  %s3500_s17 = sphi %s3531_s17, %s14_s17   ;;  %s3496_s16 = sphi %s3529_s16, %s4587_s16   ;;  %s3492_s15 = sphi %s3527_s15, %s4586_s15  }
   0x3   : > { %p28_p1 = scmp.ge.s32.totalorder %s26_s18, 2  ;;  %p184_p2 = scmp.lt.s32.totalorder %s3500_s17, 3 }
   0x5   : > { %s4589_s18 = smov (%p28_p1, %s26_s18), 0  ;;  %p185_p3 = pnand %p2562_p0, %p184_p2 }
   0x6   : > { %p220_p4 = scmp.lt.s32.totalorder (!%p185_p3), %s3492_s15, 1 }
   0x7   : > { %188 = sbr.rel (%p185_p3) target bundleno = 762 (0x2fa), region = 36 }
   0xc   : > { %v3430_v0 = vld [vmem:[%s4567_s1 + $0x38] sm:$0xff]  ;;  %v3429_v3 = vld [vmem:[%s4567_s1 + $0x30] sm:$0xff]  ;;  %s4591_s15 = smov (!%p220_p4, %s3492_s15), 1  ;;  %v3428_v6 = vld [vmem:[%s4567_s1 + $0x28] sm:$0xff]  ;;  %vm1269_vm0 = vcmask 130048   ;;  %vm2286_vm1 = vcmask 261120  }
   0xd   : > { %v3438_v1 = vld [vmem:[%s4567_s1 + $0x78] sm:$0xff]  ;;  %1378 = vmatpush.bf16.msra.mxu0 %v3430_v0  ;;  %v3437_v4 = vld [vmem:[%s4567_s1 + $0x70] sm:$0xff]  ;;  %s3448_s5 = smul.u32 1152, %s4591_s15  ;;  %v3436_v7 = vld [vmem:[%s4567_s1 + $0x68] sm:$0xff]  ;;  %vm2449_vm2 = vcmask 257024  }
   0xe   : > { %v3446_v2 = vld [vmem:[%s4567_s1 + $0xb8] sm:$0xff]  ;;  %1567 = vmatpush.bf16.msra.mxu1 %v3438_v1  ;;  %v3445_v5 = vld [vmem:[%s4567_s1 + $0xb0] sm:$0xff]  ;;  %v3447_v8 = vld [vmem:[%s4567_s1 + $0xc0] sm:$0xff] }
   0xf   : > { %1756 = vmatpush.bf16.msra.mxu2 %v3446_v2  ;;  %s3578_s14 = scalar_lea.vmem %s4566_s0, %s3448_s5  ;;  %v3444_v9 = vld [vmem:[%s4567_s1 + $0xa8] sm:$0xff]  ;;  %1952 = vmatpush.bf16.msra.mxu3 %v3447_v8  ;;  %v3427_v13 = vld [vmem:[%s4567_s1 + $0x20] sm:$0xff]  ;;  %v3426_v16 = vld [vmem:[%s4567_s1 + $0x18] sm:$0xff] }
  0x10   : > { %v3280_v10 = vld [vmem:[%s3578_s14 + $0xc] sm:$0xf]  ;;  %v2577_v11 = vld [vmem:[%s3578_s14 + $0x18] sm:$0xf0]  ;;  %v3435_v14 = vld [vmem:[%s4567_s1 + $0x60] sm:$0xff] }
  0x11   : > { %1379 = vmatpush.bf16.msra.mxu0 %v3429_v3  ;;  %v2580_v12 = vor.u32 %v3280_v10, %v2577_v11  ;;  %v3443_v15 = vld [vmem:[%s4567_s1 + $0xa0] sm:$0xff]  ;;  %v3434_v17 = vld [vmem:[%s4567_s1 + $0x58] sm:$0xff]  ;;  %v3425_v19 = vld [vmem:[%s4567_s1 + $0x10] sm:$0xff] }
  0x12   : > { %1568 = vmatpush.bf16.msra.mxu1 %v3437_v4  ;;  %v3442_v18 = vld [vmem:[%s4567_s1 + $0x98] sm:$0xff]  ;;  %v3433_v20 = vld [vmem:[%s4567_s1 + $0x50] sm:$0xff]  ;;  %v3284_v22 = vld [vmem:[%s3578_s14 + $0x2c] sm:$0xf] }
  0x13   : > { %1757 = vmatpush.bf16.msra.mxu2 %v3445_v5  ;;  %3241 = vmatmul.msk.bf16.vlgmr.msra.gmra.mxu3 %vm1269_vm0, %v2580_v12  ;;  %v3441_v21 = vld [vmem:[%s4567_s1 + $0x90] sm:$0xff]  ;;  %v2593_v23 = vld [vmem:[%s3578_s14 + $0x38] sm:$0xf0]  ;;  %v3424_v24 = vld [vmem:[%s4567_s1 + $0x8] sm:$0xff] }
  0x14   : > { %v3432_v25 = vld [vmem:[%s4567_s1 + $0x48] sm:$0xff]  ;;  %v2596_v27 = vor.u32 %v3284_v22, %v2593_v23  ;;  %v3423_v28 = vld [vmem:[%s4567_s1] sm:$0xff]  ;;  %v3281_v31 = vld [vmem:[%s3578_s14 + $0xc] sm:$0xf0] }
  0x15   : > { %1380 = vmatpush.bf16.msra.mxu0 %v3428_v6  ;;  %v3440_v26 = vld [vmem:[%s4567_s1 + $0x88] sm:$0xff]  ;;  %v3431_v29 = vld [vmem:[%s4567_s1 + $0x40] sm:$0xff]  ;;  %v2569_v33 = vld [vmem:[%s3578_s14 + $0x10] sm:$0xf0] }
  0x16   : > { %1569 = vmatpush.bf16.msra.mxu1 %v3436_v7  ;;  %v2567_v30 = vld [vmem:[%s3578_s14] sm:$0xf]  ;;  %v3279_v32 = vld [vmem:[%s3578_s14 + $0x4] sm:$0xf]  ;;  %v2575_v35 = vld [vmem:[%s3578_s14 + $0x8] sm:$0xf] }
  0x17   : > { %1758 = vmatpush.bf16.msra.mxu2 %v3444_v9  ;;  %v3439_v34 = vld [vmem:[%s4567_s1 + $0x80] sm:$0xff]  ;;  %v3282_v36 = vld [vmem:[%s3578_s14 + $0x14] sm:$0xf0]  ;;  %v2568_v37 = vor.u32 %v3281_v31, %v2567_v30  ;;  %v2572_v38 = vor.u32 %v3279_v32, %v2569_v33  ;;  %v3288_v40 = vld [vmem:[%s3578_s14 + $0x4c] sm:$0xf] }
  0x18   : > { %v2576_v39 = vor.u32 %v3282_v36, %v2575_v35  ;;  %v2609_v41 = vld [vmem:[%s3578_s14 + $0x58] sm:$0xf0]  ;;  %v2583_v43 = vld [vmem:[%s3578_s14 + $0x20] sm:$0xf]  ;;  %v3285_v44 = vld [vmem:[%s3578_s14 + $0x2c] sm:$0xf0] }
  0x19   : > { %1381 = vmatpush.bf16.msra.mxu0 %v3427_v13  ;;  %v2612_v42 = vor.u32 %v3288_v40, %v2609_v41  ;;  %v3283_v45 = vld [vmem:[%s3578_s14 + $0x24] sm:$0xf]  ;;  %v2585_v46 = vld [vmem:[%s3578_s14 + $0x30] sm:$0xf0]  ;;  %v2591_v47 = vld [vmem:[%s3578_s14 + $0x28] sm:$0xf]  ;;  %v2584_v49 = vor.u32 %v3285_v44, %v2583_v43 }
  0x1a   : > { %1570 = vmatpush.bf16.msra.mxu1 %v3435_v14  ;;  %v3286_v48 = vld [vmem:[%s3578_s14 + $0x34] sm:$0xf0]  ;;  %v2588_v50 = vor.u32 %v3283_v45, %v2585_v46  ;;  %v3292_v52 = vld [vmem:[%s3578_s14 + $0x6c] sm:$0xf]  ;;  %v2625_v53 = vld [vmem:[%s3578_s14 + $0x78] sm:$0xf0] }
  0x1b   : > { %1759 = vmatpush.bf16.msra.mxu2 %v3443_v15  ;;  %v2592_v51 = vor.u32 %v3286_v48, %v2591_v47  ;;  %v2628_v54 = vor.u32 %v3292_v52, %v2625_v53  ;;  %v2599_v55 = vld [vmem:[%s3578_s14 + $0x40] sm:$0xf]  ;;  %v3289_v56 = vld [vmem:[%s3578_s14 + $0x4c] sm:$0xf0]  ;;  %v3287_v57 = vld [vmem:[%s3578_s14 + $0x44] sm:$0xf] }
  0x1c   : > { %v2601_v58 = vld [vmem:[%s3578_s14 + $0x50] sm:$0xf0]  ;;  %v2607_v59 = vld [vmem:[%s3578_s14 + $0x48] sm:$0xf]  ;;  %v3290_v60 = vld [vmem:[%s3578_s14 + $0x54] sm:$0xf0]  ;;  %v2600_v61 = vor.u32 %v3289_v56, %v2599_v55 }
  0x1d   : > { %1382 = vmatpush.bf16.msra.mxu0 %v3426_v16  ;;  %v2604_v62 = vor.u32 %v3287_v57, %v2601_v58  ;;  %v2608_v63 = vor.u32 %v3290_v60, %v2607_v59  ;;  %v3296_v0 = vld [vmem:[%s3578_s14 + $0x8c] sm:$0xf]  ;;  %v2641_v1 = vld [vmem:[%s3578_s14 + $0x98] sm:$0xf0]  ;;  %v2615_v3 = vld [vmem:[%s3578_s14 + $0x60] sm:$0xf] }
  0x1e   : > { %1571 = vmatpush.bf16.msra.mxu1 %v3434_v17  ;;  %v2644_v2 = vor.u32 %v3296_v0, %v2641_v1  ;;  %v3293_v4 = vld [vmem:[%s3578_s14 + $0x6c] sm:$0xf0]  ;;  %v3291_v5 = vld [vmem:[%s3578_s14 + $0x64] sm:$0xf]  ;;  %v2617_v6 = vld [vmem:[%s3578_s14 + $0x70] sm:$0xf0] }
  0x1f   : > { %1760 = vmatpush.bf16.msra.mxu2 %v3442_v18  ;;  %v2623_v7 = vld [vmem:[%s3578_s14 + $0x68] sm:$0xf]  ;;  %v3294_v8 = vld [vmem:[%s3578_s14 + $0x74] sm:$0xf0]  ;;  %v2616_v9 = vor.u32 %v3293_v4, %v2615_v3  ;;  %v2620_v10 = vor.u32 %v3291_v5, %v2617_v6  ;;  %v3300_v12 = vld [vmem:[%s3578_s14 + $0xac] sm:$0xf] }
  0x20   : > { %v2624_v11 = vor.u32 %v3294_v8, %v2623_v7  ;;  %v2657_v13 = vld [vmem:[%s3578_s14 + $0xb8] sm:$0xf0]  ;;  %v2631_v15 = vld [vmem:[%s3578_s14 + $0x80] sm:$0xf]  ;;  %v3297_v16 = vld [vmem:[%s3578_s14 + $0x8c] sm:$0xf0] }
  0x21   : > { %1383 = vmatpush.bf16.msra.mxu0 %v3425_v19  ;;  %v2660_v14 = vor.u32 %v3300_v12, %v2657_v13  ;;  %v3295_v17 = vld [vmem:[%s3578_s14 + $0x84] sm:$0xf]  ;;  %v2633_v18 = vld [vmem:[%s3578_s14 + $0x90] sm:$0xf0]  ;;  %v2639_v19 = vld [vmem:[%s3578_s14 + $0x88] sm:$0xf] }
  0x22   : > { %1572 = vmatpush.bf16.msra.mxu1 %v3433_v20  ;;  %v3298_v20 = vld [vmem:[%s3578_s14 + $0x94] sm:$0xf0]  ;;  %v2636_v22 = vor.u32 %v3295_v17, %v2633_v18  ;;  %v2649_v30 = vld [vmem:[%s3578_s14 + $0xb0] sm:$0xf0]  ;;  %v2655_v31 = vld [vmem:[%s3578_s14 + $0xa8] sm:$0xf] }
  0x23   : > { %1761 = vmatpush.bf16.msra.mxu2 %v3441_v21  ;;  %3242 = vmatmul.msk.bf16.gmra.mxu3 %vm1269_vm0, %v2596_v27  ;;  %v2632_v21 = vor.u32 %v3297_v16, %v2631_v15  ;;  %v2640_v23 = vor.u32 %v3298_v20, %v2639_v19  ;;  %v2647_v27 = vld [vmem:[%s3578_s14 + $0xa0] sm:$0xf]  ;;  %v3302_v32 = vld [vmem:[%s3578_s14 + $0xb4] sm:$0xf0]  ;;  %v3308_v36 = vld [vmem:[%s3578_s14 + $0xec] sm:$0xf] }
  0x24   : > { %v2656_v35 = vor.u32 %v3302_v32, %v2655_v31  ;;  %v3305_v40 = vld [vmem:[%s3578_s14 + $0xcc] sm:$0xf0]  ;;  %v3303_v41 = vld [vmem:[%s3578_s14 + $0xc4] sm:$0xf]  ;;  %v2671_v43 = vld [vmem:[%s3578_s14 + $0xc8] sm:$0xf] }
  0x25   : > { %1384 = vmatpush.bf16.msra.mxu0 %v3424_v24  ;;  %v3304_v24 = vld [vmem:[%s3578_s14 + $0xcc] sm:$0xf]  ;;  %v3306_v44 = vld [vmem:[%s3578_s14 + $0xd4] sm:$0xf0]  ;;  %v3309_v52 = vld [vmem:[%s3578_s14 + $0xec] sm:$0xf0] }
  0x26   : > { %1573 = vmatpush.bf16.msra.mxu1 %v3432_v25  ;;  %v2673_v25 = vld [vmem:[%s3578_s14 + $0xd8] sm:$0xf0]  ;;  %v2672_v47 = vor.u32 %v3306_v44, %v2671_v43  ;;  %v3312_v48 = vld [vmem:[%s3578_s14 + $0x10c] sm:$0xf]  ;;  %v3307_v53 = vld [vmem:[%s3578_s14 + $0xe4] sm:$0xf] }
  0x27   : > { %1762 = vmatpush.bf16.msra.mxu2 %v3440_v26  ;;  %v2676_v26 = vor.u32 %v3304_v24, %v2673_v25  ;;  %v2687_v55 = vld [vmem:[%s3578_s14 + $0xe8] sm:$0xf]  ;;  %v3310_v56 = vld [vmem:[%s3578_s14 + $0xf4] sm:$0xf0]  ;;  %v2695_v1 = vld [vmem:[%s3578_s14 + $0x100] sm:$0xf] }
  0x28   : > { %v2688_v59 = vor.u32 %v3310_v56, %v2687_v55  ;;  %v3311_v3 = vld [vmem:[%s3578_s14 + $0x104] sm:$0xf]  ;;  %v2697_v4 = vld [vmem:[%s3578_s14 + $0x110] sm:$0xf0]  ;;  %v2703_v5 = vld [vmem:[%s3578_s14 + $0x108] sm:$0xf] }
  0x29   : > { %1385 = vmatpush.bf16.msra.mxu0 %v3423_v28  ;;  %v3301_v28 = vld [vmem:[%s3578_s14 + $0xac] sm:$0xf0]  ;;  %v3314_v6 = vld [vmem:[%s3578_s14 + $0x114] sm:$0xf0]  ;;  %v2700_v8 = vor.u32 %v3311_v3, %v2697_v4  ;;  %v2737_v15 = vld [vmem:[%s3578_s14 + $0x158] sm:$0xf0] }
  0x2a   : > { %1574 = vmatpush.bf16.msra.mxu1 %v3431_v29  ;;  %v3299_v29 = vld [vmem:[%s3578_s14 + $0xa4] sm:$0xf]  ;;  %v2648_v33 = vor.u32 %v3301_v28, %v2647_v27  ;;  %v2711_v24 = vld [vmem:[%s3578_s14 + $0x120] sm:$0xf]  ;;  %v3317_v25 = vld [vmem:[%s3578_s14 + $0x12c] sm:$0xf0] }
  0x2b   : > { %1763 = vmatpush.bf16.msra.mxu2 %v3439_v34  ;;  %v2652_v34 = vor.u32 %v3299_v29, %v2649_v30  ;;  %v2713_v27 = vld [vmem:[%s3578_s14 + $0x130] sm:$0xf0]  ;;  %v2719_v28 = vld [vmem:[%s3578_s14 + $0x128] sm:$0xf]  ;;  %v3318_v29 = vld [vmem:[%s3578_s14 + $0x134] sm:$0xf0]  ;;  %v2712_v31 = vor.u32 %v3317_v25, %v2711_v24 }
  0x2c   : > { %1386 = vmatmul.bf16.vlgmr.msra.gmra.mxu0 %v2568_v37  ;;  %v2689_v37 = vld [vmem:[%s3578_s14 + $0xf8] sm:$0xf0]  ;;  %v3322_v55 = vld [vmem:[%s3578_s14 + $0x154] sm:$0xf0] }
  0x2d   : > { %1575 = vmatmul.bf16.vlgmr.msra.gmra.mxu1 %v2572_v38  ;;  %v2692_v38 = vor.u32 %v3308_v36, %v2689_v37  ;;  %v2720_v36 = vor.u32 %v3318_v29, %v2719_v28  ;;  %v2769_v3 = vld [vmem:[%s3578_s14 + $0x198] sm:$0xf0]  ;;  %v3332_v29 = vld [vmem:[%s3578_s14 + $0x1ac] sm:$0xf] }
  0x2e   : > { %1764 = vmatmul.bf16.vlgmr.msra.gmra.mxu2 %v2576_v39  ;;  %v2663_v39 = vld [vmem:[%s3578_s14 + $0xc0] sm:$0xf] }
  0x2f   : > { %v2664_v45 = vor.u32 %v3305_v40, %v2663_v39  ;;  %v3324_v40 = vld [vmem:[%s3578_s14 + $0x16c] sm:$0xf] }
  0x33   : > { %3243 = vmatmul.msk.bf16.gmra.mxu3 %vm1269_vm0, %v2612_v42  ;;  %v2665_v42 = vld [vmem:[%s3578_s14 + $0xd0] sm:$0xf0] }
  0x34   : > { %v2668_v46 = vor.u32 %v3303_v41, %v2665_v42  ;;  %v2753_v41 = vld [vmem:[%s3578_s14 + $0x178] sm:$0xf0] }
  0x3c   : > { %1391 = vmatmul.bf16.gmra.mxu0 %v2584_v49  ;;  %v2705_v49 = vld [vmem:[%s3578_s14 + $0x118] sm:$0xf0] }
  0x3d   : > { %1580 = vmatmul.bf16.gmra.mxu1 %v2588_v50  ;;  %v2708_v50 = vor.u32 %v3312_v48, %v2705_v49  ;;  %v2756_v48 = vor.u32 %v3324_v40, %v2753_v41  ;;  %v2759_v40 = vld [vmem:[%s3578_s14 + $0x180] sm:$0xf]  ;;  %v3329_v41 = vld [vmem:[%s3578_s14 + $0x18c] sm:$0xf0] }
  0x3e   : > { %1769 = vmatmul.bf16.gmra.mxu2 %v2592_v51  ;;  %v2679_v51 = vld [vmem:[%s3578_s14 + $0xe0] sm:$0xf] }
  0x3f   : > { %v2680_v57 = vor.u32 %v3309_v52, %v2679_v51  ;;  %v3321_v51 = vld [vmem:[%s3578_s14 + $0x14c] sm:$0xf0]  ;;  %v3319_v52 = vld [vmem:[%s3578_s14 + $0x144] sm:$0xf] }
  0x43   : > { %3244 = vmatmul.msk.bf16.gmra.mxu3 %vm1269_vm0, %v2628_v54  ;;  %v2681_v54 = vld [vmem:[%s3578_s14 + $0xf0] sm:$0xf0] }
  0x44   : > { %v2684_v58 = vor.u32 %v3307_v53, %v2681_v54  ;;  %v2729_v53 = vld [vmem:[%s3578_s14 + $0x150] sm:$0xf0]  ;;  %v2735_v54 = vld [vmem:[%s3578_s14 + $0x148] sm:$0xf] }
  0x4c   : > { %1396 = vmatmul.bf16.gmra.mxu0 %v2600_v61  ;;  %v3316_v61 = vld [vmem:[%s3578_s14 + $0x12c] sm:$0xf] }
  0x4d   : > { %1585 = vmatmul.bf16.gmra.mxu1 %v2604_v62  ;;  %v2721_v62 = vld [vmem:[%s3578_s14 + $0x138] sm:$0xf0] }
  0x4e   : > { %1774 = vmatmul.bf16.gmra.mxu2 %v2608_v63  ;;  %v2724_v0 = vor.u32 %v3316_v61, %v2721_v62  ;;  %v2736_v62 = vor.u32 %v3322_v55, %v2735_v54 }
  0x53   : > { %3245 = vmatmul.msk.bf16.gmra.mxu3 %vm1269_vm0, %v2644_v2  ;;  %v3313_v2 = vld [vmem:[%s3578_s14 + $0x10c] sm:$0xf0] }
  0x54   : > { %v2696_v7 = vor.u32 %v3313_v2, %v2695_v1  ;;  %v3328_v2 = vld [vmem:[%s3578_s14 + $0x18c] sm:$0xf] }
  0x5c   : > { %1401 = vmatmul.bf16.gmra.mxu0 %v2616_v9 }
  0x5d   : > { %1590 = vmatmul.bf16.gmra.mxu1 %v2620_v10 }
  0x5e   : > { %1779 = vmatmul.bf16.gmra.mxu2 %v2624_v11  ;;  %v2704_v11 = vor.u32 %v3314_v6, %v2703_v5 }
  0x63   : > { %3246 = vmatmul.msk.bf16.gmra.mxu3 %vm1269_vm0, %v2660_v14  ;;  %v3320_v14 = vld [vmem:[%s3578_s14 + $0x14c] sm:$0xf] }
  0x6c   : > { %1406 = vmatmul.bf16.gmra.mxu0 %v2632_v21 }
  0x6d   : > { %1595 = vmatmul.bf16.gmra.mxu1 %v2636_v22  ;;  %v2740_v22 = vor.u32 %v3320_v14, %v2737_v15  ;;  %v3323_v14 = vld [vmem:[%s3578_s14 + $0x164] sm:$0xf]  ;;  %v2745_v15 = vld [vmem:[%s3578_s14 + $0x170] sm:$0xf0] }
  0x6e   : > { %1784 = vmatmul.bf16.gmra.mxu2 %v2640_v23 }
  0x73   : > { %3247 = vmatmul.msk.bf16.gmra.mxu3 %vm1269_vm0, %v2676_v26  ;;  %v3315_v26 = vld [vmem:[%s3578_s14 + $0x124] sm:$0xf] }
  0x74   : > { %v2716_v32 = vor.u32 %v3315_v26, %v2713_v27 }
  0x7c   : > { %1411 = vmatmul.bf16.gmra.mxu0 %v2648_v33 }
  0x7d   : > { %1600 = vmatmul.bf16.gmra.mxu1 %v2652_v34 }
  0x7e   : > { %1789 = vmatmul.bf16.gmra.mxu2 %v2656_v35 }
  0x83   : > { %3248 = vmatmul.msk.bf16.gmra.mxu3 %vm1269_vm0, %v2692_v38 }
  0x8c   : > { %1416 = vmatmul.bf16.gmra.mxu0 %v2664_v45 }
  0x8d   : > { %1605 = vmatmul.bf16.gmra.mxu1 %v2668_v46 }
  0x8e   : > { %1794 = vmatmul.bf16.gmra.mxu2 %v2672_v47 }
  0x93   : > { %3249 = vmatmul.msk.bf16.gmra.mxu3 %vm1269_vm0, %v2708_v50  ;;  %v2727_v50 = vld [vmem:[%s3578_s14 + $0x140] sm:$0xf] }
  0x96   : > { %v1954_v60 = vpop.f32.mrf.mxu3 }
  0x9c   : > { %1421 = vmatmul.bf16.gmra.mxu0 %v2680_v57  ;;  %v2728_v57 = vor.u32 %v3321_v51, %v2727_v50 }
  0x9d   : > { %1610 = vmatmul.bf16.gmra.mxu1 %v2684_v58  ;;  %v2732_v58 = vor.u32 %v3319_v52, %v2729_v53 }
  0x9e   : > { %1799 = vmatmul.bf16.gmra.mxu2 %v2688_v59  ;;  %v1956_v63 = vpop.f32.mrf.mxu3 }
  0xa3   : > { %3250 = vmatmul.msk.bf16.gmra.mxu3 %vm1269_vm0, %v2724_v0 }
  0xa6   : > { %v1959_v13 = vpop.f32.mrf.mxu3 }
  0xa9   : > { %v1387_v9 = vpop.f32.mrf.mxu0 }
  0xaa   : > { %v1576_v10 = vpop.f32.mrf.mxu1 }
  0xab   : > { %v1577_v12 = vadd.f32 %v1576_v10, %v1387_v9  ;;  %v2772_v10 = vor.u32 %v3328_v2, %v2769_v3 }
  0xac   : > { %1426 = vmatmul.bf16.gmra.mxu0 %v2696_v7 }
  0xad   : > { %1615 = vmatmul.bf16.gmra.mxu1 %v2700_v8 }
  0xae   : > { %1804 = vmatmul.bf16.gmra.mxu2 %v2704_v11  ;;  %v1961_v21 = vpop.f32.mrf.mxu3 }
  0xb1   : > { %v1765_v16 = vpop.f32.mrf.mxu2  ;;  %v1389_v18 = vpop.f32.mrf.mxu0 }
  0xb2   : > { %v1766_v17 = vadd.f32 %v1765_v16, %v1577_v12  ;;  %v1578_v19 = vpop.f32.mrf.mxu1  ;;  %v2743_v12 = vld [vmem:[%s3578_s14 + $0x160] sm:$0xf]  ;;  %v2751_v16 = vld [vmem:[%s3578_s14 + $0x168] sm:$0xf] }
  0xb3   : > { %v1579_v20 = vadd.f32 %v1578_v19, %v1389_v18  ;;  %3251 = vmatmul.msk.bf16.gmra.mxu3 %vm1269_vm0, %v2740_v22 }
  0xb4   : > { %v3714_v23 = vadd.f32 %v1954_v60, %v1766_v17  ;;  %v3326_v17 = vld [vmem:[%s3578_s14 + $0x174] sm:$0xf0] }
  0xb5   : > { %v2752_v25 = vor.u32 %v3326_v17, %v2751_v16 }
  0xb6   : > { %v1964_v38 = vpop.f32.mrf.mxu3 }
  0xb9   : > { %v1767_v30 = vpop.f32.mrf.mxu2  ;;  %v1392_v34 = vpop.f32.mrf.mxu0 }
  0xba   : > { %v1768_v33 = vadd.f32 %v1767_v30, %v1579_v20  ;;  %v1581_v35 = vpop.f32.mrf.mxu1  ;;  %v2748_v20 = vor.u32 %v3323_v14, %v2745_v15  ;;  %v2785_v30 = vld [vmem:[%s3578_s14 + $0x1b8] sm:$0xf0] }
  0xbb   : > { %v1582_v37 = vadd.f32 %v1581_v35, %v1392_v34 }
  0xbc   : > { %v3723_v39 = vadd.f32 %v1956_v63, %v1768_v33  ;;  %1431 = vmatmul.bf16.gmra.mxu0 %v2712_v31 }
  0xbd   : > { %1620 = vmatmul.bf16.gmra.mxu1 %v2716_v32 }
  0xbe   : > { %1809 = vmatmul.bf16.gmra.mxu2 %v2720_v36  ;;  %v1966_v47 = vpop.f32.mrf.mxu3 }
  0xc1   : > { %v1770_v42 = vpop.f32.mrf.mxu2  ;;  %v1394_v44 = vpop.f32.mrf.mxu0 }
  0xc2   : > { %v1771_v43 = vadd.f32 %v1770_v42, %v1582_v37  ;;  %v1583_v45 = vpop.f32.mrf.mxu1  ;;  %v2788_v37 = vor.u32 %v3332_v29, %v2785_v30  ;;  %v3327_v42 = vld [vmem:[%s3578_s14 + $0x184] sm:$0xf] }
  0xc3   : > { %v1584_v46 = vadd.f32 %v1583_v45, %v1394_v44  ;;  %3252 = vmatmul.msk.bf16.gmra.mxu3 %vm1269_vm0, %v2756_v48  ;;  %v2767_v44 = vld [vmem:[%s3578_s14 + $0x188] sm:$0xf]  ;;  %v3330_v45 = vld [vmem:[%s3578_s14 + $0x194] sm:$0xf0] }
  0xc4   : > { %v3727_v49 = vadd.f32 %v1959_v13, %v1771_v43  ;;  %v3325_v13 = vld [vmem:[%s3578_s14 + $0x16c] sm:$0xf0]  ;;  %v2761_v43 = vld [vmem:[%s3578_s14 + $0x190] sm:$0xf0]  ;;  %v2768_v53 = vor.u32 %v3330_v45, %v2767_v44 }
  0xc5   : > { %v2744_v19 = vor.u32 %v3325_v13, %v2743_v12  ;;  %v2764_v48 = vor.u32 %v3327_v42, %v2761_v43 }
  0xc6   : > { %v1969_v0 = vpop.f32.mrf.mxu3 }
  0xc9   : > { %v1772_v56 = vpop.f32.mrf.mxu2  ;;  %v1397_v60 = vpop.f32.mrf.mxu0 }
  0xca   : > { %v1773_v59 = vadd.f32 %v1772_v56, %v1584_v46  ;;  %v1586_v61 = vpop.f32.mrf.mxu1 }
  0xcb   : > { %v1587_v63 = vadd.f32 %v1586_v61, %v1397_v60 }
  0xcc   : > { %v3736_v1 = vadd.f32 %v1961_v21, %v1773_v59  ;;  %1436 = vmatmul.bf16.gmra.mxu0 %v2728_v57  ;;  %v3336_v57 = vld [vmem:[%s3578_s14 + $0x1cc] sm:$0xf] }
  0xcd   : > { %1625 = vmatmul.bf16.gmra.mxu1 %v2732_v58  ;;  %v2801_v58 = vld [vmem:[%s3578_s14 + $0x1d8] sm:$0xf0] }
  0xce   : > { %1814 = vmatmul.bf16.gmra.mxu2 %v2736_v62  ;;  %v1971_v9 = vpop.f32.mrf.mxu3  ;;  %v2804_v2 = vor.u32 %v3336_v57, %v2801_v58 }
  0xd1   : > { %v1775_v4 = vpop.f32.mrf.mxu2  ;;  %v1399_v6 = vpop.f32.mrf.mxu0 }
  0xd2   : > { %v1776_v5 = vadd.f32 %v1775_v4, %v1587_v63  ;;  %v1588_v7 = vpop.f32.mrf.mxu1  ;;  %v2775_v4 = vld [vmem:[%s3578_s14 + $0x1a0] sm:$0xf] }
  0xd3   : > { %v1589_v8 = vadd.f32 %v1588_v7, %v1399_v6  ;;  %3253 = vmatmul.msk.bf16.gmra.mxu3 %vm1269_vm0, %v2772_v10  ;;  %v3331_v6 = vld [vmem:[%s3578_s14 + $0x1a4] sm:$0xf]  ;;  %v2777_v7 = vld [vmem:[%s3578_s14 + $0x1b0] sm:$0xf0] }
  0xd4   : > { %v3740_v11 = vadd.f32 %v1964_v38, %v1776_v5  ;;  %v3333_v5 = vld [vmem:[%s3578_s14 + $0x1ac] sm:$0xf0]  ;;  %v2780_v13 = vor.u32 %v3331_v6, %v2777_v7  ;;  %v3342_v6 = vld [vmem:[%s3578_s14 + $0x1f4] sm:$0xf0] }
  0xd5   : > { %v2776_v12 = vor.u32 %v3333_v5, %v2775_v4  ;;  %v2809_v4 = vld [vmem:[%s3578_s14 + $0x1f0] sm:$0xf0]  ;;  %v2815_v5 = vld [vmem:[%s3578_s14 + $0x1e8] sm:$0xf] }
  0xd6   : > { %v1974_v27 = vpop.f32.mrf.mxu3 }
  0xd9   : > { %v1777_v18 = vpop.f32.mrf.mxu2  ;;  %v1402_v22 = vpop.f32.mrf.mxu0 }
  0xda   : > { %v1778_v21 = vadd.f32 %v1777_v18, %v1589_v8  ;;  %v1591_v24 = vpop.f32.mrf.mxu1  ;;  %v2783_v8 = vld [vmem:[%s3578_s14 + $0x1a8] sm:$0xf] }
  0xdb   : > { %v1592_v26 = vadd.f32 %v1591_v24, %v1402_v22  ;;  %v2817_v22 = vld [vmem:[%s3578_s14 + $0x1f8] sm:$0xf0] }
  0xdc   : > { %v3749_v28 = vadd.f32 %v1966_v47, %v1778_v21  ;;  %1441 = vmatmul.bf16.gmra.mxu0 %v2744_v19  ;;  %v2760_v47 = vor.u32 %v3329_v41, %v2759_v40  ;;  %v3340_v21 = vld [vmem:[%s3578_s14 + $0x1ec] sm:$0xf]  ;;  %v3338_v40 = vld [vmem:[%s3578_s14 + $0x1d4] sm:$0xf0] }
  0xdd   : > { %1630 = vmatmul.bf16.gmra.mxu1 %v2748_v20 }
  0xde   : > { %1819 = vmatmul.bf16.gmra.mxu2 %v2752_v25  ;;  %v1976_v36 = vpop.f32.mrf.mxu3 }
  0xe1   : > { %v1780_v31 = vpop.f32.mrf.mxu2  ;;  %v1404_v33 = vpop.f32.mrf.mxu0 }
  0xe2   : > { %v1781_v32 = vadd.f32 %v1780_v31, %v1592_v26  ;;  %v1593_v34 = vpop.f32.mrf.mxu1  ;;  %v2820_v31 = vor.u32 %v3340_v21, %v2817_v22 }
  0xe3   : > { %v1594_v35 = vadd.f32 %v1593_v34, %v1404_v33  ;;  %3254 = vmatmul.msk.bf16.gmra.mxu3 %vm1269_vm0, %v2788_v37  ;;  %v2791_v33 = vld [vmem:[%s3578_s14 + $0x1c0] sm:$0xf]  ;;  %v3337_v34 = vld [vmem:[%s3578_s14 + $0x1cc] sm:$0xf0]  ;;  %v2799_v37 = vld [vmem:[%s3578_s14 + $0x1c8] sm:$0xf] }
  0xe4   : > { %v3753_v38 = vadd.f32 %v1969_v0, %v1781_v32  ;;  %v2792_v42 = vor.u32 %v3337_v34, %v2791_v33  ;;  %v3345_v33 = vld [vmem:[%s3578_s14 + $0x20c] sm:$0xf0]  ;;  %v3343_v34 = vld [vmem:[%s3578_s14 + $0x204] sm:$0xf] }
  0xe6   : > { %v1979_v55 = vpop.f32.mrf.mxu3 }
  0xe9   : > { %v1782_v46 = vpop.f32.mrf.mxu2  ;;  %v1407_v51 = vpop.f32.mrf.mxu0 }
  0xea   : > { %v1783_v50 = vadd.f32 %v1782_v46, %v1594_v35  ;;  %v1596_v52 = vpop.f32.mrf.mxu1  ;;  %v3335_v35 = vld [vmem:[%s3578_s14 + $0x1c4] sm:$0xf] }
  0xeb   : > { %v1597_v54 = vadd.f32 %v1596_v52, %v1407_v51  ;;  %v3344_v52 = vld [vmem:[%s3578_s14 + $0x20c] sm:$0xf] }
  0xec   : > { %v3762_v56 = vadd.f32 %v1971_v9, %v1783_v50  ;;  %1446 = vmatmul.bf16.gmra.mxu0 %v2760_v47  ;;  %v3334_v9 = vld [vmem:[%s3578_s14 + $0x1b4] sm:$0xf0]  ;;  %v2800_v47 = vor.u32 %v3338_v40, %v2799_v37 }
  0xed   : > { %1635 = vmatmul.bf16.gmra.mxu1 %v2764_v48  ;;  %v2784_v17 = vor.u32 %v3334_v9, %v2783_v8  ;;  %v3346_v37 = vld [vmem:[%s3578_s14 + $0x214] sm:$0xf0] }
  0xee   : > { %1824 = vmatmul.bf16.gmra.mxu2 %v2768_v53  ;;  %v1981_v0 = vpop.f32.mrf.mxu3  ;;  %v2833_v53 = vld [vmem:[%s3578_s14 + $0x218] sm:$0xf0] }
  0xf1   : > { %v1785_v59 = vpop.f32.mrf.mxu2  ;;  %v1409_v61 = vpop.f32.mrf.mxu0 }
  0xf2   : > { %v1786_v60 = vadd.f32 %v1785_v59, %v1597_v54  ;;  %v1598_v62 = vpop.f32.mrf.mxu1 }
  0xf3   : > { %v1599_v63 = vadd.f32 %v1598_v62, %v1409_v61  ;;  %3255 = vmatmul.msk.bf16.gmra.mxu3 %vm1269_vm0, %v2804_v2  ;;  %v2836_v61 = vor.u32 %v3344_v52, %v2833_v53  ;;  %v3339_v2 = vld [vmem:[%s3578_s14 + $0x1e4] sm:$0xf]  ;;  %v3352_v52 = vld [vmem:[%s3578_s14 + $0x24c] sm:$0xf]  ;;  %v2865_v53 = vld [vmem:[%s3578_s14 + $0x258] sm:$0xf0] }
  0xf4   : > { %v3766_v3 = vadd.f32 %v1974_v27, %v1786_v60  ;;  %v2812_v9 = vor.u32 %v3339_v2, %v2809_v4  ;;  %v3349_v2 = vld [vmem:[%s3578_s14 + $0x22c] sm:$0xf0]  ;;  %v3347_v4 = vld [vmem:[%s3578_s14 + $0x224] sm:$0xf] }
  0xf6   : > { %v1984_v19 = vpop.f32.mrf.mxu3 }
  0xf9   : > { %v1787_v10 = vpop.f32.mrf.mxu2  ;;  %v1412_v15 = vpop.f32.mrf.mxu0 }
  0xfa   : > { %v1788_v14 = vadd.f32 %v1787_v10, %v1599_v63  ;;  %v1601_v16 = vpop.f32.mrf.mxu1  ;;  %v2807_v63 = vld [vmem:[%s3578_s14 + $0x1e0] sm:$0xf] }
  0xfb   : > { %v1602_v18 = vadd.f32 %v1601_v16, %v1412_v15 }
  0xfc   : > { %v3775_v20 = vadd.f32 %v1976_v36, %v1788_v14  ;;  %1451 = vmatmul.bf16.gmra.mxu0 %v2776_v12  ;;  %v2793_v36 = vld [vmem:[%s3578_s14 + $0x1d0] sm:$0xf0]  ;;  %v2816_v14 = vor.u32 %v3342_v6, %v2815_v5  ;;  %v2847_v6 = vld [vmem:[%s3578_s14 + $0x228] sm:$0xf] }
  0xfd   : > { %1640 = vmatmul.bf16.gmra.mxu1 %v2780_v13  ;;  %v2796_v43 = vor.u32 %v3335_v35, %v2793_v36  ;;  %v2825_v35 = vld [vmem:[%s3578_s14 + $0x210] sm:$0xf0]  ;;  %v2831_v36 = vld [vmem:[%s3578_s14 + $0x208] sm:$0xf] }
  0xfe   : > { %1829 = vmatmul.bf16.gmra.mxu2 %v2784_v17  ;;  %v1986_v30 = vpop.f32.mrf.mxu3  ;;  %v2841_v5 = vld [vmem:[%s3578_s14 + $0x230] sm:$0xf0] }
 0x101   : > { %v1790_v24 = vpop.f32.mrf.mxu2  ;;  %v1414_v26 = vpop.f32.mrf.mxu0 }
 0x102   : > { %v1791_v25 = vadd.f32 %v1790_v24, %v1602_v18  ;;  %v1603_v27 = vpop.f32.mrf.mxu1  ;;  %v3348_v18 = vld [vmem:[%s3578_s14 + $0x22c] sm:$0xf] }
 0x103   : > { %v1604_v29 = vadd.f32 %v1603_v27, %v1414_v26  ;;  %3256 = vmatmul.msk.bf16.gmra.mxu3 %vm1269_vm0, %v2820_v31 }
 0x104   : > { %v3779_v32 = vadd.f32 %v1979_v55, %v1791_v25 }
 0x106   : > { %v1989_v50 = vpop.f32.mrf.mxu3 }
 0x109   : > { %v1792_v41 = vpop.f32.mrf.mxu2  ;;  %v1417_v45 = vpop.f32.mrf.mxu0 }
 0x10a   : > { %v1793_v44 = vadd.f32 %v1792_v41, %v1604_v29  ;;  %v1606_v46 = vpop.f32.mrf.mxu1 }
 0x10b   : > { %v1607_v48 = vadd.f32 %v1606_v46, %v1417_v45  ;;  %v2832_v46 = vor.u32 %v3346_v37, %v2831_v36 }
 0x10c   : > { %v3788_v51 = vadd.f32 %v1981_v0, %v1793_v44  ;;  %1456 = vmatmul.bf16.gmra.mxu0 %v2792_v42  ;;  %v3341_v0 = vld [vmem:[%s3578_s14 + $0x1ec] sm:$0xf0]  ;;  %v2828_v42 = vor.u32 %v3343_v34, %v2825_v35 }
 0x10d   : > { %1645 = vmatmul.bf16.gmra.mxu1 %v2796_v43  ;;  %v2808_v8 = vor.u32 %v3341_v0, %v2807_v63  ;;  %v2868_v63 = vor.u32 %v3352_v52, %v2865_v53 }
 0x10e   : > { %1834 = vmatmul.bf16.gmra.mxu2 %v2800_v47  ;;  %v1991_v60 = vpop.f32.mrf.mxu3 }
 0x111   : > { %v1795_v54 = vpop.f32.mrf.mxu2  ;;  %v1419_v57 = vpop.f32.mrf.mxu0 }
 0x112   : > { %v1796_v55 = vadd.f32 %v1795_v54, %v1607_v48  ;;  %v1608_v58 = vpop.f32.mrf.mxu1 }
 0x113   : > { %v1609_v59 = vadd.f32 %v1608_v58, %v1419_v57  ;;  %3257 = vmatmul.msk.bf16.gmra.mxu3 %vm1269_vm0, %v2836_v61 }
 0x114   : > { %v3792_v62 = vadd.f32 %v1984_v19, %v1796_v55  ;;  %v2849_v19 = vld [vmem:[%s3578_s14 + $0x238] sm:$0xf0] }
 0x115   : > { %v2852_v29 = vor.u32 %v3348_v18, %v2849_v19 }
 0x116   : > { %v1994_v16 = vpop.f32.mrf.mxu3 }
 0x119   : > { %v1797_v7 = vpop.f32.mrf.mxu2  ;;  %v1422_v12 = vpop.f32.mrf.mxu0 }
 0x11a   : > { %v1798_v10 = vadd.f32 %v1797_v7, %v1609_v59  ;;  %v1611_v13 = vpop.f32.mrf.mxu1  ;;  %v3350_v7 = vld [vmem:[%s3578_s14 + $0x234] sm:$0xf0] }
 0x11b   : > { %v1612_v15 = vadd.f32 %v1611_v13, %v1422_v12 }
 0x11c   : > { %v3801_v17 = vadd.f32 %v1986_v30, %v1798_v10  ;;  %1461 = vmatmul.bf16.gmra.mxu0 %v2808_v8  ;;  %v2823_v30 = vld [vmem:[%s3578_s14 + $0x200] sm:$0xf]  ;;  %v2844_v10 = vor.u32 %v3347_v4, %v2841_v5 }
 0x11d   : > { %1650 = vmatmul.bf16.gmra.mxu1 %v2812_v9  ;;  %v2824_v41 = vor.u32 %v3345_v33, %v2823_v30 }
 0x11e   : > { %1839 = vmatmul.bf16.gmra.mxu2 %v2816_v14  ;;  %v1996_v27 = vpop.f32.mrf.mxu3 }
 0x121   : > { %v1800_v21 = vpop.f32.mrf.mxu2  ;;  %v1424_v24 = vpop.f32.mrf.mxu0 }
 0x122   : > { %v1801_v22 = vadd.f32 %v1800_v21, %v1612_v15  ;;  %v1613_v25 = vpop.f32.mrf.mxu1  ;;  %v2848_v15 = vor.u32 %v3350_v7, %v2847_v6  ;;  %v3832_v21 = vld [vmem:[%s4568_s2] ss:$0 sm:$0xff] }
 0x123   : > { %v1614_v26 = vadd.f32 %v1613_v25, %v1424_v24  ;;  %3258 = vmatmul.msk.bf16.gmra.mxu3 %vm1269_vm0, %v2852_v29  ;;  %v2881_v24 = vld [vmem:[%s3578_s14 + $0x278] sm:$0xf0]  ;;  %v2138_v25 = vmul.f32 %v3832_v21, %v3714_v23  ;;  %v2855_v23 = vld [vmem:[%s3578_s14 + $0x240] sm:$0xf] }
 0x124   : > { %v3805_v31 = vadd.f32 %v1989_v50, %v1801_v22  ;;  %v3356_v22 = vld [vmem:[%s3578_s14 + $0x26c] sm:$0xf] }
 0x125   : > { %v2884_v36 = vor.u32 %v3356_v22, %v2881_v24 }
 0x126   : > { %v1999_v48 = vpop.f32.mrf.mxu3 }
 0x129   : > { %v1802_v40 = vpop.f32.mrf.mxu2  ;;  %v1427_v44 = vpop.f32.mrf.mxu0 }
 0x12a   : > { %v1803_v43 = vadd.f32 %v1802_v40, %v1614_v26  ;;  %v1616_v45 = vpop.f32.mrf.mxu1  ;;  %v3841_v26 = vld [vmem:[%s4569_s3] ss:$0 sm:$0xff] }
 0x12b   : > { %v1617_v47 = vadd.f32 %v1616_v45, %v1427_v44  ;;  %v2214_v40 = vadd.f32 %v3841_v26, %v2138_v25  ;;  %v2857_v44 = vld [vmem:[%s3578_s14 + $0x250] sm:$0xf0]  ;;  %v2863_v45 = vld [vmem:[%s3578_s14 + $0x248] sm:$0xf] }
 0x12c   : > { %v3814_v50 = vadd.f32 %v1991_v60, %v1803_v43  ;;  %1466 = vmatmul.bf16.gmra.mxu0 %v2824_v41  ;;  %v2839_v60 = vld [vmem:[%s3578_s14 + $0x220] sm:$0xf]  ;;  %v3351_v43 = vld [vmem:[%s3578_s14 + $0x244] sm:$0xf] }
 0x12d   : > { %1655 = vmatmul.bf16.gmra.mxu1 %v2828_v42  ;;  %v2840_v9 = vor.u32 %v3349_v2, %v2839_v60  ;;  %v3353_v42 = vld [vmem:[%s3578_s14 + $0x24c] sm:$0xf0]  ;;  %v3856_v52 = vsel %vm2286_vm1, %v2214_v40, -inf  ;;  %v2873_v40 = vld [vmem:[%s3578_s14 + $0x270] sm:$0xf0] }
 0x12e   : > { %1844 = vmatmul.bf16.gmra.mxu2 %v2832_v46  ;;  %v2001_v61 = vpop.f32.mrf.mxu3  ;;  %v3354_v46 = vld [vmem:[%s3578_s14 + $0x254] sm:$0xf0] }
 0x12f   : > { %v2864_v60 = vor.u32 %v3354_v46, %v2863_v45  ;;  %v2141_v46 = vmul.f32 %v3832_v21, %v3736_v1 }
 0x131   : > { %v1805_v54 = vpop.f32.mrf.mxu2  ;;  %v1429_v57 = vpop.f32.mrf.mxu0  ;;  %v2217_v1 = vadd.f32 %v3841_v26, %v2141_v46 }
 0x132   : > { %v1806_v55 = vadd.f32 %v1805_v54, %v1617_v47  ;;  %v1618_v58 = vpop.f32.mrf.mxu1  ;;  %v2860_v54 = vor.u32 %v3351_v43, %v2857_v44 }
 0x133   : > { %v1619_v59 = vadd.f32 %v1618_v58, %v1429_v57  ;;  %3259 = vmatmul.msk.bf16.gmra.mxu3 %vm1269_vm0, %v2868_v63 }
 0x134   : > { %v3818_v0 = vadd.f32 %v1994_v16, %v1806_v55  ;;  %v2139_v55 = vmul.f32 %v3832_v21, %v3723_v39 }
 0x136   : > { %v2004_v16 = vpop.f32.mrf.mxu3  ;;  %v2215_v39 = vadd.f32 %v3841_v26, %v2139_v55 }
 0x139   : > { %v1807_v8 = vpop.f32.mrf.mxu2  ;;  %v1432_v13 = vpop.f32.mrf.mxu0 }
 0x13a   : > { %v1808_v12 = vadd.f32 %v1807_v8, %v1619_v59  ;;  %v1621_v14 = vpop.f32.mrf.mxu1 }
 0x13b   : > { %v1622_v18 = vadd.f32 %v1621_v14, %v1432_v13 }
 0x13c   : > { %v3827_v19 = vadd.f32 %v1996_v27, %v1808_v12  ;;  %1471 = vmatmul.bf16.gmra.mxu0 %v2840_v9  ;;  %v3360_v9 = vld [vmem:[%s3578_s14 + $0x28c] sm:$0xf]  ;;  %v2140_v12 = vmul.f32 %v3832_v21, %v3727_v49 }
 0x13d   : > { %1660 = vmatmul.bf16.gmra.mxu1 %v2844_v10  ;;  %v2897_v10 = vld [vmem:[%s3578_s14 + $0x298] sm:$0xf0] }
 0x13e   : > { %1849 = vmatmul.bf16.gmra.mxu2 %v2848_v15  ;;  %v3843_v35 = vpop.f32.mrf.mxu3  ;;  %v2900_v49 = vor.u32 %v3360_v9, %v2897_v10 }
 0x141   : > { %v1810_v27 = vpop.f32.mrf.mxu2  ;;  %v1434_v30 = vpop.f32.mrf.mxu0 }
 0x142   : > { %v1811_v29 = vadd.f32 %v1810_v27, %v1622_v18  ;;  %v1623_v33 = vpop.f32.mrf.mxu1 }
 0x143   : > { %v1624_v34 = vadd.f32 %v1623_v33, %v1434_v30  ;;  %3260 = vmatmul.msk.bf16.gmra.mxu3 %vm1269_vm0, %v2884_v36  ;;  %v2216_v30 = vadd.f32 %v3841_v26, %v2140_v12  ;;  %v2871_v33 = vld [vmem:[%s3578_s14 + $0x260] sm:$0xf]  ;;  %v3357_v36 = vld [vmem:[%s3578_s14 + $0x26c] sm:$0xf0] }
 0x144   : > { %v2000_v37 = vadd.f32 %v1999_v48, %v1811_v29  ;;  %v2856_v48 = vor.u32 %v3353_v42, %v2855_v23  ;;  %v2879_v23 = vld [vmem:[%s3578_s14 + $0x268] sm:$0xf]  ;;  %v2872_v45 = vor.u32 %v3357_v36, %v2871_v33  ;;  %v3359_v36 = vld [vmem:[%s3578_s14 + $0x284] sm:$0xf] }
 0x145   : > { %v3895_v43 = vsel %vm2286_vm1, %v2216_v30, -inf  ;;  %v2887_v30 = vld [vmem:[%s3578_s14 + $0x280] sm:$0xf] }
 0x146   : > { %v2156_v41 = vmul.f32 %v3832_v21, %v2000_v37  ;;  %v3865_v5 = vpop.f32.mrf.mxu3  ;;  %v3355_v37 = vld [vmem:[%s3578_s14 + $0x264] sm:$0xf] }
 0x148   : > { %v2232_v47 = vadd.f32 %v3841_v26, %v2156_v41  ;;  %v3358_v41 = vld [vmem:[%s3578_s14 + $0x274] sm:$0xf0] }
 0x149   : > { %v1812_v53 = vpop.f32.mrf.mxu2  ;;  %v1437_v59 = vpop.f32.mrf.mxu0  ;;  %v2880_v55 = vor.u32 %v3358_v41, %v2879_v23  ;;  %v3362_v23 = vld [vmem:[%s3578_s14 + $0x294] sm:$0xf0] }
 0x14a   : > { %v3861_v57 = vsel %vm2286_vm1, %v2232_v47, -inf  ;;  %v1813_v58 = vadd.f32 %v1812_v53, %v1624_v34  ;;  %v1626_v63 = vpop.f32.mrf.mxu1 }
 0x14b   : > { %v2289_v2 = vmax.f32 %v3856_v52, %v3861_v57  ;;  %v1627_v4 = vadd.f32 %v1626_v63, %v1437_v59 }
 0x14c   : > { %v2002_v6 = vadd.f32 %v2001_v61, %v1813_v58  ;;  %1476 = vmatmul.bf16.gmra.mxu0 %v2856_v48  ;;  %v3875_v61 = vsel %vm2286_vm1, %v2215_v39, -inf  ;;  %v3364_v39 = vld [vmem:[%s3578_s14 + $0x2ac] sm:$0xf] }
 0x14d   : > { %1665 = vmatmul.bf16.gmra.mxu1 %v2860_v54 }
 0x14e   : > { %v2157_v7 = vmul.f32 %v3832_v21, %v2002_v6  ;;  %1854 = vmatmul.bf16.gmra.mxu2 %v2864_v60  ;;  %v3882_v27 = vpop.f32.mrf.mxu3 }
 0x150   : > { %v2233_v8 = vadd.f32 %v3841_v26, %v2157_v7  ;;  %v2913_v7 = vld [vmem:[%s3578_s14 + $0x2b8] sm:$0xf0] }
 0x151   : > { %v1815_v13 = vpop.f32.mrf.mxu2  ;;  %v1439_v18 = vpop.f32.mrf.mxu0 }
 0x152   : > { %v3878_v14 = vsel %vm2286_vm1, %v2233_v8, -inf  ;;  %v1816_v15 = vadd.f32 %v1815_v13, %v1627_v4  ;;  %v1628_v22 = vpop.f32.mrf.mxu1  ;;  %v2142_v8 = vmul.f32 %v3832_v21, %v3740_v11  ;;  %v2916_v11 = vor.u32 %v3364_v39, %v2913_v7  ;;  %v3368_v7 = vld [vmem:[%s3578_s14 + $0x2cc] sm:$0xf] }
 0x153   : > { %v2296_v24 = vmax.f32 %v3875_v61, %v3878_v14  ;;  %v1629_v25 = vadd.f32 %v1628_v22, %v1439_v18  ;;  %3261 = vmatmul.msk.bf16.gmra.mxu3 %vm1269_vm0, %v2900_v49 }
 0x154   : > { %v2005_v29 = vadd.f32 %v2004_v16, %v1816_v15  ;;  %v2876_v16 = vor.u32 %v3355_v37, %v2873_v40  ;;  %v2889_v37 = vld [vmem:[%s3578_s14 + $0x290] sm:$0xf0]  ;;  %v2895_v40 = vld [vmem:[%s3578_s14 + $0x288] sm:$0xf] }
 0x156   : > { %v2158_v34 = vmul.f32 %v3832_v21, %v2005_v29  ;;  %v3904_v63 = vpop.f32.mrf.mxu3  ;;  %v2218_v29 = vadd.f32 %v3841_v26, %v2142_v8  ;;  %v2929_v8 = vld [vmem:[%s3578_s14 + $0x2d8] sm:$0xf0] }
 0x158   : > { %v2234_v42 = vadd.f32 %v3841_v26, %v2158_v34  ;;  %v3361_v34 = vld [vmem:[%s3578_s14 + $0x28c] sm:$0xf0] }
 0x159   : > { %v1817_v44 = vpop.f32.mrf.mxu2  ;;  %v1442_v48 = vpop.f32.mrf.mxu0 }
 0x15a   : > { %v3900_v47 = vsel %vm2286_vm1, %v2234_v42, -inf  ;;  %v1818_v53 = vadd.f32 %v1817_v44, %v1629_v25  ;;  %v1631_v54 = vpop.f32.mrf.mxu1  ;;  %v3936_v42 = vsel %vm2286_vm1, %v2218_v29, -inf }
 0x15b   : > { %v2303_v58 = vmax.f32 %v3895_v43, %v3900_v47  ;;  %v1632_v59 = vadd.f32 %v1631_v54, %v1442_v48 }
 0x15c   : > { %v2007_v60 = vadd.f32 %v3843_v35, %v1818_v53  ;;  %1481 = vmatmul.bf16.gmra.mxu0 %v2872_v45  ;;  %v3915_v35 = vsel %vm2286_vm1, %v2217_v1, -inf  ;;  %v2888_v45 = vor.u32 %v3361_v34, %v2887_v30 }
 0x15d   : > { %1670 = vmatmul.bf16.gmra.mxu1 %v2876_v16  ;;  %v2143_v16 = vmul.f32 %v3832_v21, %v3749_v28 }
 0x15e   : > { %v2159_v4 = vmul.f32 %v3832_v21, %v2007_v60  ;;  %1859 = vmatmul.bf16.gmra.mxu2 %v2880_v55  ;;  %v3922_v25 = vpop.f32.mrf.mxu3  ;;  %v2896_v55 = vor.u32 %v3362_v23, %v2895_v40  ;;  %v3365_v40 = vld [vmem:[%s3578_s14 + $0x2ac] sm:$0xf0]  ;;  %v3363_v23 = vld [vmem:[%s3578_s14 + $0x2a4] sm:$0xf] }
 0x15f   : > { %v2219_v28 = vadd.f32 %v3841_v26, %v2143_v16 }
 0x160   : > { %v2235_v6 = vadd.f32 %v3841_v26, %v2159_v4 }
 0x161   : > { %v1820_v9 = vpop.f32.mrf.mxu2  ;;  %v1444_v13 = vpop.f32.mrf.mxu0 }
 0x162   : > { %v3918_v10 = vsel %vm2286_vm1, %v2235_v6, -inf  ;;  %v1821_v12 = vadd.f32 %v1820_v9, %v1632_v59  ;;  %v1633_v15 = vpop.f32.mrf.mxu1  ;;  %v2144_v9 = vmul.f32 %v3832_v21, %v3753_v38  ;;  %v2932_v38 = vor.u32 %v3368_v7, %v2929_v8  ;;  %v3007_v59 = vld [vmem:[%s3578_s14 + $0x368] sm:$0xf] }
 0x163   : > { %v1634_v22 = vadd.f32 %v1633_v15, %v1444_v13  ;;  %3262 = vmatmul.msk.bf16.gmra.mxu3 %vm1269_vm0, %v2916_v11 }
 0x164   : > { %v2010_v49 = vadd.f32 %v3865_v5, %v1821_v12  ;;  %v2892_v5 = vor.u32 %v3359_v36, %v2889_v37  ;;  %v2220_v34 = vadd.f32 %v3841_v26, %v2144_v9  ;;  %v2903_v36 = vld [vmem:[%s3578_s14 + $0x2a0] sm:$0xf] }
 0x166   : > { %v2160_v33 = vmul.f32 %v3832_v21, %v2010_v49  ;;  %v3945_v1 = vpop.f32.mrf.mxu3  ;;  %v3977_v16 = vsel %vm2286_vm1, %v2220_v34, -inf }
 0x168   : > { %v2236_v41 = vadd.f32 %v3841_v26, %v2160_v33 }
 0x169   : > { %v1822_v44 = vpop.f32.mrf.mxu2  ;;  %v1447_v48 = vpop.f32.mrf.mxu0 }
 0x16a   : > { %v3941_v46 = vsel %vm2286_vm1, %v2236_v41, -inf  ;;  %v1823_v53 = vadd.f32 %v1822_v44, %v1634_v22  ;;  %v1636_v54 = vpop.f32.mrf.mxu1  ;;  %v2905_v41 = vld [vmem:[%s3578_s14 + $0x2b0] sm:$0xf0]  ;;  %v2911_v44 = vld [vmem:[%s3578_s14 + $0x2a8] sm:$0xf] }
 0x16b   : > { %v1637_v60 = vadd.f32 %v1636_v54, %v1447_v48  ;;  %v2904_v48 = vor.u32 %v3365_v40, %v2903_v36  ;;  %v2145_v54 = vmul.f32 %v3832_v21, %v3762_v56 }
 0x16c   : > { %v2012_v4 = vadd.f32 %v3882_v27, %v1823_v53  ;;  %1486 = vmatmul.bf16.gmra.mxu0 %v2888_v45  ;;  %v3956_v27 = vsel %vm2286_vm1, %v2219_v28, -inf  ;;  %v3366_v45 = vld [vmem:[%s3578_s14 + $0x2b4] sm:$0xf0] }
 0x16d   : > { %1675 = vmatmul.bf16.gmra.mxu1 %v2892_v5  ;;  %v2221_v56 = vadd.f32 %v3841_v26, %v2145_v54  ;;  %v2921_v54 = vld [vmem:[%s3578_s14 + $0x2d0] sm:$0xf0] }
 0x16e   : > { %v2161_v6 = vmul.f32 %v3832_v21, %v2012_v4  ;;  %1864 = vmatmul.bf16.gmra.mxu2 %v2896_v55  ;;  %v3963_v30 = vpop.f32.mrf.mxu3 }
 0x170   : > { %v2237_v39 = vadd.f32 %v3841_v26, %v2161_v6  ;;  %v2912_v6 = vor.u32 %v3366_v45, %v2911_v44 }
 0x171   : > { %v1825_v12 = vpop.f32.mrf.mxu2  ;;  %v1449_v22 = vpop.f32.mrf.mxu0 }
 0x172   : > { %v3959_v13 = vsel %vm2286_vm1, %v2237_v39, -inf  ;;  %v1826_v15 = vadd.f32 %v1825_v12, %v1637_v60  ;;  %v1638_v11 = vpop.f32.mrf.mxu1 }
 0x173   : > { %v1639_v29 = vadd.f32 %v1638_v11, %v1449_v22  ;;  %3263 = vmatmul.msk.bf16.gmra.mxu3 %vm1269_vm0, %v2932_v38  ;;  %v3372_v22 = vld [vmem:[%s3578_s14 + $0x2ec] sm:$0xf]  ;;  %v2945_v11 = vld [vmem:[%s3578_s14 + $0x2f8] sm:$0xf0] }
 0x174   : > { %v2015_v33 = vadd.f32 %v3904_v63, %v1826_v15  ;;  %v2908_v63 = vor.u32 %v3363_v23, %v2905_v41 }
 0x176   : > { %v2162_v37 = vmul.f32 %v3832_v21, %v2015_v33  ;;  %v3986_v8 = vpop.f32.mrf.mxu3 }
 0x178   : > { %v2238_v5 = vadd.f32 %v3841_v26, %v2162_v37 }
 0x179   : > { %v1827_v53 = vpop.f32.mrf.mxu2  ;;  %v1452_v4 = vpop.f32.mrf.mxu0 }
 0x17a   : > { %v3982_v55 = vsel %vm2286_vm1, %v2238_v5, -inf  ;;  %v1828_v60 = vadd.f32 %v1827_v53, %v1639_v29  ;;  %v1641_v28 = vpop.f32.mrf.mxu1  ;;  %v2146_v29 = vmul.f32 %v3832_v21, %v3766_v3  ;;  %v2948_v3 = vor.u32 %v3372_v22, %v2945_v11  ;;  %v2919_v5 = vld [vmem:[%s3578_s14 + $0x2c0] sm:$0xf] }
 0x17b   : > { %v1642_v7 = vadd.f32 %v1641_v28, %v1452_v4  ;;  %v3370_v4 = vld [vmem:[%s3578_s14 + $0x2d4] sm:$0xf0] }
 0x17c   : > { %v2017_v9 = vadd.f32 %v3922_v25, %v1828_v60  ;;  %1491 = vmatmul.bf16.gmra.mxu0 %v2904_v48  ;;  %v3997_v25 = vsel %vm2286_vm1, %v2221_v56, -inf  ;;  %v2222_v45 = vadd.f32 %v3841_v26, %v2146_v29  ;;  %v3369_v48 = vld [vmem:[%s3578_s14 + $0x2cc] sm:$0xf0]  ;;  %v2927_v60 = vld [vmem:[%s3578_s14 + $0x2c8] sm:$0xf]  ;;  %v2147_v56 = vmul.f32 %v3832_v21, %v3775_v20 }
 0x17d   : > { %1680 = vmatmul.bf16.gmra.mxu1 %v2908_v63  ;;  %v3367_v63 = vld [vmem:[%s3578_s14 + $0x2c4] sm:$0xf]  ;;  %v2928_v29 = vor.u32 %v3370_v4, %v2927_v60 }
 0x17e   : > { %v2163_v12 = vmul.f32 %v3832_v21, %v2017_v9  ;;  %1869 = vmatmul.bf16.gmra.mxu2 %v2912_v6  ;;  %v4004_v41 = vpop.f32.mrf.mxu3  ;;  %v4018_v6 = vsel %vm2286_vm1, %v2222_v45, -inf  ;;  %v2920_v9 = vor.u32 %v3369_v48, %v2919_v5  ;;  %v2223_v20 = vadd.f32 %v3841_v26, %v2147_v56  ;;  %v2961_v45 = vld [vmem:[%s3578_s14 + $0x318] sm:$0xf0]  ;;  %v2935_v56 = vld [vmem:[%s3578_s14 + $0x2e0] sm:$0xf] }
 0x17f   : > { %v2148_v5 = vmul.f32 %v3832_v21, %v3779_v32 }
 0x180   : > { %v2239_v15 = vadd.f32 %v3841_v26, %v2163_v12 }
 0x181   : > { %v1830_v38 = vpop.f32.mrf.mxu2  ;;  %v1454_v36 = vpop.f32.mrf.mxu0 }
 0x182   : > { %v4000_v33 = vsel %vm2286_vm1, %v2239_v15, -inf  ;;  %v1831_v34 = vadd.f32 %v1830_v38, %v1642_v7  ;;  %v1643_v37 = vpop.f32.mrf.mxu1 }
 0x183   : > { %v1644_v23 = vadd.f32 %v1643_v37, %v1454_v36  ;;  %3264 = vmatmul.msk.bf16.gmra.mxu3 %vm1269_vm0, %v2948_v3 }
 0x184   : > { %v2020_v44 = vadd.f32 %v3945_v1, %v1831_v34  ;;  %v2924_v1 = vor.u32 %v3367_v63, %v2921_v54 }
 0x186   : > { %v2164_v53 = vmul.f32 %v3832_v21, %v2020_v44  ;;  %v4027_v36 = vpop.f32.mrf.mxu3  ;;  %v3376_v44 = vld [vmem:[%s3578_s14 + $0x30c] sm:$0xf] }
 0x187   : > { %v2964_v32 = vor.u32 %v3376_v44, %v2961_v45  ;;  %v2149_v45 = vmul.f32 %v3832_v21, %v3788_v51 }
 0x188   : > { %v2240_v28 = vadd.f32 %v3841_v26, %v2164_v53 }
 0x189   : > { %v1832_v7 = vpop.f32.mrf.mxu2  ;;  %v1457_v22 = vpop.f32.mrf.mxu0  ;;  %v2225_v51 = vadd.f32 %v3841_v26, %v2149_v45 }
 0x18a   : > { %v4023_v12 = vsel %vm2286_vm1, %v2240_v28, -inf  ;;  %v1833_v15 = vadd.f32 %v1832_v7, %v1644_v23  ;;  %v1646_v11 = vpop.f32.mrf.mxu1 }
 0x18b   : > { %v1647_v34 = vadd.f32 %v1646_v11, %v1457_v22  ;;  %v3373_v22 = vld [vmem:[%s3578_s14 + $0x2ec] sm:$0xf0]  ;;  %v3371_v11 = vld [vmem:[%s3578_s14 + $0x2e4] sm:$0xf] }
 0x18c   : > { %v2022_v37 = vadd.f32 %v3963_v30, %v1833_v15  ;;  %1496 = vmatmul.bf16.gmra.mxu0 %v2920_v9  ;;  %v4038_v30 = vsel %vm2286_vm1, %v2223_v20, -inf  ;;  %v2936_v44 = vor.u32 %v3373_v22, %v2935_v56  ;;  %v3380_v22 = vld [vmem:[%s3578_s14 + $0x32c] sm:$0xf] }
 0x18d   : > { %1685 = vmatmul.bf16.gmra.mxu1 %v2924_v1  ;;  %v2224_v1 = vadd.f32 %v3841_v26, %v2148_v5 }
 0x18e   : > { %v2165_v3 = vmul.f32 %v3832_v21, %v2022_v37  ;;  %1874 = vmatmul.bf16.gmra.mxu2 %v2928_v29  ;;  %v4045_v7 = vpop.f32.mrf.mxu3  ;;  %v2937_v29 = vld [vmem:[%s3578_s14 + $0x2f0] sm:$0xf0]  ;;  %v3374_v37 = vld [vmem:[%s3578_s14 + $0x2f4] sm:$0xf0] }
 0x190   : > { %v2241_v23 = vadd.f32 %v3841_v26, %v2165_v3  ;;  %v4059_v3 = vsel %vm2286_vm1, %v2224_v1, -inf }
 0x191   : > { %v1835_v53 = vpop.f32.mrf.mxu2  ;;  %v1459_v54 = vpop.f32.mrf.mxu0 }
 0x192   : > { %v4041_v48 = vsel %vm2286_vm1, %v2241_v23, -inf  ;;  %v1836_v63 = vadd.f32 %v1835_v53, %v1647_v34  ;;  %v1648_v60 = vpop.f32.mrf.mxu1  ;;  %v2943_v34 = vld [vmem:[%s3578_s14 + $0x2e8] sm:$0xf] }
 0x193   : > { %v1649_v28 = vadd.f32 %v1648_v60, %v1459_v54  ;;  %3265 = vmatmul.msk.bf16.gmra.mxu3 %vm1269_vm0, %v2964_v32  ;;  %v2944_v60 = vor.u32 %v3374_v37, %v2943_v34 }
 0x194   : > { %v2025_v9 = vadd.f32 %v3986_v8, %v1836_v63  ;;  %v2940_v8 = vor.u32 %v3371_v11, %v2937_v29  ;;  %v2977_v11 = vld [vmem:[%s3578_s14 + $0x338] sm:$0xf0]  ;;  %v2150_v29 = vmul.f32 %v3832_v21, %v3792_v62 }
 0x195   : > { %v2980_v62 = vor.u32 %v3380_v22, %v2977_v11 }
 0x196   : > { %v2166_v15 = vmul.f32 %v3832_v21, %v2025_v9  ;;  %v4068_v1 = vpop.f32.mrf.mxu3 }
 0x198   : > { %v2242_v20 = vadd.f32 %v3841_v26, %v2166_v15 }
 0x199   : > { %v1837_v23 = vpop.f32.mrf.mxu2  ;;  %v1462_v63 = vpop.f32.mrf.mxu0 }
 0x19a   : > { %v4064_v5 = vsel %vm2286_vm1, %v2242_v20, -inf  ;;  %v1838_v53 = vadd.f32 %v1837_v23, %v1649_v28  ;;  %v1651_v54 = vpop.f32.mrf.mxu1 }
 0x19b   : > { %v1652_v9 = vadd.f32 %v1651_v54, %v1462_v63  ;;  %v2226_v54 = vadd.f32 %v3841_v26, %v2150_v29  ;;  %v2151_v29 = vmul.f32 %v3832_v21, %v3801_v17 }
 0x19c   : > { %v2027_v56 = vadd.f32 %v4004_v41, %v1838_v53  ;;  %1501 = vmatmul.bf16.gmra.mxu0 %v2936_v44  ;;  %v4079_v41 = vsel %vm2286_vm1, %v2225_v51, -inf  ;;  %v3377_v51 = vld [vmem:[%s3578_s14 + $0x30c] sm:$0xf0] }
 0x19d   : > { %1690 = vmatmul.bf16.gmra.mxu1 %v2940_v8  ;;  %v2227_v17 = vadd.f32 %v3841_v26, %v2151_v29 }
 0x19e   : > { %v2167_v15 = vmul.f32 %v3832_v21, %v2027_v56  ;;  %1879 = vmatmul.bf16.gmra.mxu2 %v2944_v60  ;;  %v4086_v53 = vpop.f32.mrf.mxu3  ;;  %v2951_v60 = vld [vmem:[%s3578_s14 + $0x300] sm:$0xf] }
 0x19f   : > { %v2952_v11 = vor.u32 %v3377_v51, %v2951_v60  ;;  %v3384_v51 = vld [vmem:[%s3578_s14 + $0x34c] sm:$0xf] }
 0x1a0   : > { %v2243_v28 = vadd.f32 %v3841_v26, %v2167_v15  ;;  %v3375_v15 = vld [vmem:[%s3578_s14 + $0x304] sm:$0xf] }
 0x1a1   : > { %v1840_v34 = vpop.f32.mrf.mxu2  ;;  %v1464_v23 = vpop.f32.mrf.mxu0 }
 0x1a2   : > { %v4082_v37 = vsel %vm2286_vm1, %v2243_v28, -inf  ;;  %v1841_v20 = vadd.f32 %v1840_v34, %v1652_v9  ;;  %v1653_v44 = vpop.f32.mrf.mxu1  ;;  %v2953_v28 = vld [vmem:[%s3578_s14 + $0x310] sm:$0xf0]  ;;  %v2959_v9 = vld [vmem:[%s3578_s14 + $0x308] sm:$0xf] }
 0x1a3   : > { %v1654_v45 = vadd.f32 %v1653_v44, %v1464_v23  ;;  %v3378_v34 = vld [vmem:[%s3578_s14 + $0x314] sm:$0xf0]  ;;  %3266 = vmatmul.msk.bf16.gmra.mxu3 %vm1269_vm0, %v2980_v62  ;;  %v4100_v23 = vsel %vm2286_vm1, %v2226_v54, -inf }
 0x1a4   : > { %v2030_v63 = vadd.f32 %v4027_v36, %v1841_v20  ;;  %v2956_v36 = vor.u32 %v3375_v15, %v2953_v28  ;;  %v2960_v62 = vor.u32 %v3378_v34, %v2959_v9  ;;  %v2993_v15 = vld [vmem:[%s3578_s14 + $0x358] sm:$0xf0] }
 0x1a6   : > { %v2168_v56 = vmul.f32 %v3832_v21, %v2030_v63  ;;  %v4109_v4 = vpop.f32.mrf.mxu3 }
 0x1a8   : > { %v2244_v8 = vadd.f32 %v3841_v26, %v2168_v56  ;;  %v2969_v56 = vld [vmem:[%s3578_s14 + $0x330] sm:$0xf0] }
 0x1a9   : > { %v1842_v22 = vpop.f32.mrf.mxu2  ;;  %v1467_v63 = vpop.f32.mrf.mxu0 }
 0x1aa   : > { %v4105_v20 = vsel %vm2286_vm1, %v2244_v8, -inf  ;;  %v1843_v44 = vadd.f32 %v1842_v22, %v1654_v45  ;;  %v1656_v32 = vpop.f32.mrf.mxu1 }
 0x1ab   : > { %v1657_v54 = vadd.f32 %v1656_v32, %v1467_v63  ;;  %v2152_v32 = vmul.f32 %v3832_v21, %v3805_v31  ;;  %v2996_v31 = vor.u32 %v3384_v51, %v2993_v15 }
 0x1ac   : > { %v2032_v60 = vadd.f32 %v4045_v7, %v1843_v44  ;;  %1506 = vmatmul.bf16.gmra.mxu0 %v2952_v11  ;;  %v4120_v7 = vsel %vm2286_vm1, %v2227_v17, -inf }
 0x1ad   : > { %1695 = vmatmul.bf16.gmra.mxu1 %v2956_v36 }
 0x1ae   : > { %v2169_v8 = vmul.f32 %v3832_v21, %v2032_v60  ;;  %1884 = vmatmul.bf16.gmra.mxu2 %v2960_v62  ;;  %v4127_v44 = vpop.f32.mrf.mxu3  ;;  %v2228_v62 = vadd.f32 %v3841_v26, %v2152_v32  ;;  %v2967_v60 = vld [vmem:[%s3578_s14 + $0x320] sm:$0xf]  ;;  %v2153_v32 = vmul.f32 %v3832_v21, %v3814_v50 }
 0x1b0   : > { %v2245_v45 = vadd.f32 %v3841_v26, %v2169_v8  ;;  %v3381_v8 = vld [vmem:[%s3578_s14 + $0x32c] sm:$0xf0]  ;;  %v2229_v50 = vadd.f32 %v3841_v26, %v2153_v32 }
 0x1b1   : > { %v1845_v28 = vpop.f32.mrf.mxu2  ;;  %v1469_v22 = vpop.f32.mrf.mxu0  ;;  %v2968_v15 = vor.u32 %v3381_v8, %v2967_v60  ;;  %v3388_v60 = vld [vmem:[%s3578_s14 + $0x36c] sm:$0xf]  ;;  %v3009_v8 = vld [vmem:[%s3578_s14 + $0x378] sm:$0xf0] }
 0x1b2   : > { %v4123_v9 = vsel %vm2286_vm1, %v2245_v45, -inf  ;;  %v1846_v34 = vadd.f32 %v1845_v28, %v1657_v54  ;;  %v1658_v11 = vpop.f32.mrf.mxu1  ;;  %v3379_v45 = vld [vmem:[%s3578_s14 + $0x324] sm:$0xf]  ;;  %v2975_v54 = vld [vmem:[%s3578_s14 + $0x328] sm:$0xf] }
 0x1b3   : > { %v1659_v29 = vadd.f32 %v1658_v11, %v1469_v22  ;;  %v3382_v28 = vld [vmem:[%s3578_s14 + $0x334] sm:$0xf0]  ;;  %3267 = vmatmul.msk.bf16.gmra.mxu3 %vm1269_vm0, %v2996_v31  ;;  %v4141_v22 = vsel %vm2286_vm1, %v2228_v62, -inf }
 0x1b4   : > { %v2035_v63 = vadd.f32 %v4068_v1, %v1846_v34  ;;  %v2972_v1 = vor.u32 %v3379_v45, %v2969_v56  ;;  %v2976_v31 = vor.u32 %v3382_v28, %v2975_v54 }
 0x1b6   : > { %v2170_v17 = vmul.f32 %v3832_v21, %v2035_v63  ;;  %v4150_v40 = vpop.f32.mrf.mxu3 }
 0x1b8   : > { %v2246_v36 = vadd.f32 %v3841_v26, %v2170_v17  ;;  %v2985_v17 = vld [vmem:[%s3578_s14 + $0x350] sm:$0xf0] }
 0x1b9   : > { %v1847_v51 = vpop.f32.mrf.mxu2  ;;  %v1472_v63 = vpop.f32.mrf.mxu0 }
 0x1ba   : > { %v4146_v34 = vsel %vm2286_vm1, %v2246_v36, -inf  ;;  %v1848_v11 = vadd.f32 %v1847_v51, %v1659_v29  ;;  %v1661_v38 = vpop.f32.mrf.mxu1 }
 0x1bb   : > { %v1662_v62 = vadd.f32 %v1661_v38, %v1472_v63  ;;  %v2154_v38 = vmul.f32 %v3832_v21, %v3818_v0  ;;  %v3012_v0 = vor.u32 %v3388_v60, %v3009_v8 }
 0x1bc   : > { %v2037_v56 = vadd.f32 %v4086_v53, %v1848_v11  ;;  %1511 = vmatmul.bf16.gmra.mxu0 %v2968_v15  ;;  %v4161_v53 = vsel %vm2286_vm1, %v2229_v50, -inf }
 0x1bd   : > { %1700 = vmatmul.bf16.gmra.mxu1 %v2972_v1 }
 0x1be   : > { %v2171_v36 = vmul.f32 %v3832_v21, %v2037_v56  ;;  %1889 = vmatmul.bf16.gmra.mxu2 %v2976_v31  ;;  %v4168_v11 = vpop.f32.mrf.mxu3  ;;  %v2230_v31 = vadd.f32 %v3841_v26, %v2154_v38  ;;  %v2983_v56 = vld [vmem:[%s3578_s14 + $0x340] sm:$0xf]  ;;  %v2155_v38 = vmul.f32 %v3832_v21, %v3827_v19 }
 0x1c0   : > { %v2247_v29 = vadd.f32 %v3841_v26, %v2171_v36  ;;  %v3385_v36 = vld [vmem:[%s3578_s14 + $0x34c] sm:$0xf0]  ;;  %v2231_v19 = vadd.f32 %v3841_v26, %v2155_v38 }
 0x1c1   : > { %v1850_v45 = vpop.f32.mrf.mxu2  ;;  %v1474_v51 = vpop.f32.mrf.mxu0  ;;  %v2984_v8 = vor.u32 %v3385_v36, %v2983_v56  ;;  %v3025_v36 = vld [vmem:[%s3578_s14 + $0x398] sm:$0xf0] }
 0x1c2   : > { %v4164_v54 = vsel %vm2286_vm1, %v2247_v29, -inf  ;;  %v1851_v28 = vadd.f32 %v1850_v45, %v1662_v62  ;;  %v1663_v15 = vpop.f32.mrf.mxu1  ;;  %v3383_v29 = vld [vmem:[%s3578_s14 + $0x344] sm:$0xf]  ;;  %v2991_v62 = vld [vmem:[%s3578_s14 + $0x348] sm:$0xf] }
 0x1c3   : > { %v1664_v32 = vadd.f32 %v1663_v15, %v1474_v51  ;;  %v3386_v45 = vld [vmem:[%s3578_s14 + $0x354] sm:$0xf0]  ;;  %3268 = vmatmul.msk.bf16.gmra.mxu3 %vm1269_vm0, %v3012_v0  ;;  %v4182_v51 = vsel %vm2286_vm1, %v2230_v31, -inf }
 0x1c4   : > { %v2040_v63 = vadd.f32 %v4109_v4, %v1851_v28  ;;  %v2988_v4 = vor.u32 %v3383_v29, %v2985_v17  ;;  %v2992_v0 = vor.u32 %v3386_v45, %v2991_v62 }
 0x1c6   : > { %v2172_v50 = vmul.f32 %v3832_v21, %v2040_v63  ;;  %v2049_v49 = vpop.f32.mrf.mxu3 }
 0x1c8   : > { %v2248_v1 = vadd.f32 %v3841_v26, %v2172_v50  ;;  %v3001_v50 = vld [vmem:[%s3578_s14 + $0x370] sm:$0xf0] }
 0x1c9   : > { %v1852_v60 = vpop.f32.mrf.mxu2  ;;  %v1477_v63 = vpop.f32.mrf.mxu0 }
 0x1ca   : > { %v4187_v28 = vsel %vm2286_vm1, %v2248_v1, -inf  ;;  %v1853_v15 = vadd.f32 %v1852_v60, %v1664_v32  ;;  %v1666_v39 = vpop.f32.mrf.mxu1  ;;  %v3392_v32 = vld [vmem:[%s3578_s14 + $0x38c] sm:$0xf] }
 0x1cb   : > { %v1667_v31 = vadd.f32 %v1666_v39, %v1477_v63  ;;  %v4198_v39 = vsel %vm2286_vm1, %v2231_v19, -inf  ;;  %v3389_v19 = vld [vmem:[%s3578_s14 + $0x36c] sm:$0xf0] }
 0x1cc   : > { %v2042_v56 = vadd.f32 %v4127_v44, %v1853_v15  ;;  %1516 = vmatmul.bf16.gmra.mxu0 %v2984_v8  ;;  %v3028_v15 = vor.u32 %v3392_v32, %v3025_v36 }
 0x1cd   : > { %1705 = vmatmul.bf16.gmra.mxu1 %v2988_v4 }
 0x1ce   : > { %v2173_v17 = vmul.f32 %v3832_v21, %v2042_v56  ;;  %1894 = vmatmul.bf16.gmra.mxu2 %v2992_v0  ;;  %v2051_v38 = vpop.f32.mrf.mxu3  ;;  %v2999_v0 = vld [vmem:[%s3578_s14 + $0x360] sm:$0xf] }
 0x1cf   : > { %v3000_v18 = vor.u32 %v3389_v19, %v2999_v0  ;;  %v3041_v0 = vld [vmem:[%s3578_s14 + $0x3b8] sm:$0xf0] }
 0x1d0   : > { %v2249_v1 = vadd.f32 %v3841_v26, %v2173_v17  ;;  %v3387_v17 = vld [vmem:[%s3578_s14 + $0x364] sm:$0xf] }
 0x1d1   : > { %v1855_v29 = vpop.f32.mrf.mxu2  ;;  %v1479_v45 = vpop.f32.mrf.mxu0 }
 0x1d2   : > { %v4201_v44 = vsel %vm2286_vm1, %v2249_v1, -inf  ;;  %v1856_v62 = vadd.f32 %v1855_v29, %v1667_v31  ;;  %v1668_v60 = vpop.f32.mrf.mxu1  ;;  %v3390_v1 = vld [vmem:[%s3578_s14 + $0x374] sm:$0xf0] }
 0x1d3   : > { %v1669_v4 = vadd.f32 %v1668_v60, %v1479_v45  ;;  %3269 = vmatmul.msk.bf16.gmra.mxu3 %vm1269_vm0, %v3028_v15  ;;  %v3004_v45 = vor.u32 %v3387_v17, %v3001_v50  ;;  %v3008_v60 = vor.u32 %v3390_v1, %v3007_v59  ;;  %v3396_v59 = vld [vmem:[%s3578_s14 + $0x3ac] sm:$0xf] }
 0x1d4   : > { %v2045_v63 = vadd.f32 %v4150_v40, %v1856_v62 }
 0x1d6   : > { %v2174_v56 = vmul.f32 %v3832_v21, %v2045_v63  ;;  %v2054_v15 = vpop.f32.mrf.mxu3 }
 0x1d8   : > { %v2250_v31 = vadd.f32 %v3841_v26, %v2174_v56 }
 0x1d9   : > { %v1857_v29 = vpop.f32.mrf.mxu2  ;;  %v1482_v36 = vpop.f32.mrf.mxu0 }
 0x1da   : > { %v2290_v32 = vsel %vm2286_vm1, %v2250_v31, -inf  ;;  %v1858_v40 = vadd.f32 %v1857_v29, %v1669_v4  ;;  %v1671_v62 = vpop.f32.mrf.mxu1  ;;  %v3044_v31 = vor.u32 %v3396_v59, %v3041_v0 }
 0x1db   : > { %v4219_v63 = vmax.f32 %v2289_v2, %v2290_v32  ;;  %v1672_v8 = vadd.f32 %v1671_v62, %v1482_v36  ;;  %v3391_v36 = vld [vmem:[%s3578_s14 + $0x384] sm:$0xf]  ;;  %v3017_v62 = vld [vmem:[%s3578_s14 + $0x390] sm:$0xf0] }
 0x1dc   : > { %v2047_v56 = vadd.f32 %v4168_v11, %v1858_v40  ;;  %1521 = vmatmul.bf16.gmra.mxu0 %v3000_v18  ;;  %v3393_v40 = vld [vmem:[%s3578_s14 + $0x38c] sm:$0xf0]  ;;  %v3020_v14 = vor.u32 %v3391_v36, %v3017_v62 }
 0x1dd   : > { %1710 = vmatmul.bf16.gmra.mxu1 %v3004_v45  ;;  %v3015_v45 = vld [vmem:[%s3578_s14 + $0x380] sm:$0xf] }
 0x1de   : > { %v2175_v50 = vmul.f32 %v3832_v21, %v2047_v56  ;;  %1899 = vmatmul.bf16.gmra.mxu2 %v3008_v60  ;;  %v2056_v1 = vpop.f32.mrf.mxu3  ;;  %v3023_v60 = vld [vmem:[%s3578_s14 + $0x388] sm:$0xf]  ;;  %v3394_v56 = vld [vmem:[%s3578_s14 + $0x394] sm:$0xf0]  ;;  %v3016_v61 = vor.u32 %v3393_v40, %v3015_v45 }
 0x1df   : > { %v3024_v0 = vor.u32 %v3394_v56, %v3023_v60 }
 0x1e0   : > { %v2251_v4 = vadd.f32 %v3841_v26, %v2175_v50 }
 0x1e1   : > { %v1860_v52 = vpop.f32.mrf.mxu2  ;;  %v1484_v11 = vpop.f32.mrf.mxu0 }
 0x1e2   : > { %v2297_v57 = vsel %vm2286_vm1, %v2251_v4, -inf  ;;  %v1861_v2 = vadd.f32 %v1860_v52, %v1672_v8  ;;  %v1673_v18 = vpop.f32.mrf.mxu1 }
 0x1e3   : > { %v4230_v19 = vmax.f32 %v2296_v24, %v2297_v57  ;;  %v1674_v17 = vadd.f32 %v1673_v18, %v1484_v11  ;;  %3270 = vmatmul.msk.bf16.gmra.mxu3 %vm1269_vm0, %v3044_v31  ;;  %v3400_v31 = vld [vmem:[%s3578_s14 + $0x3cc] sm:$0xf] }
 0x1e4   : > { %v2050_v29 = vadd.f32 %v2049_v49, %v1861_v2 }
 0x1e6   : > { %v2176_v32 = vmul.f32 %v3832_v21, %v2050_v29  ;;  %v2059_v2 = vpop.f32.mrf.mxu3  ;;  %v3057_v29 = vld [vmem:[%s3578_s14 + $0x3d8] sm:$0xf0] }
 0x1e7   : > { %v3060_v60 = vor.u32 %v3400_v31, %v3057_v29  ;;  %v4572_v31 = vmax.f32 %v3936_v42, %v3941_v46 }
 0x1e8   : > { %v2252_v8 = vadd.f32 %v3841_v26, %v2176_v32  ;;  %v4571_v32 = vmax.f32 %v3915_v35, %v3918_v10 }
 0x1e9   : > { %v1862_v50 = vpop.f32.mrf.mxu2  ;;  %v1487_v4 = vpop.f32.mrf.mxu0 }
 0x1ea   : > { %v2304_v24 = vsel %vm2286_vm1, %v2252_v8, -inf  ;;  %v1863_v49 = vadd.f32 %v1862_v50, %v1674_v17  ;;  %v1676_v59 = vpop.f32.mrf.mxu1  ;;  %v3031_v8 = vld [vmem:[%s3578_s14 + $0x3a0] sm:$0xf] }
 0x1eb   : > { %v4245_v52 = vmax.f32 %v2303_v58, %v2304_v24  ;;  %v1677_v57 = vadd.f32 %v1676_v59, %v1487_v4  ;;  %v3033_v24 = vld [vmem:[%s3578_s14 + $0x3b0] sm:$0xf0]  ;;  %v3398_v4 = vld [vmem:[%s3578_s14 + $0x3b4] sm:$0xf0] }
 0x1ec   : > { %v2052_v11 = vadd.f32 %v2051_v38, %v1863_v49  ;;  %1526 = vmatmul.bf16.gmra.mxu0 %v3016_v61  ;;  %v3397_v61 = vld [vmem:[%s3578_s14 + $0x3ac] sm:$0xf0]  ;;  %v3039_v49 = vld [vmem:[%s3578_s14 + $0x3a8] sm:$0xf] }
 0x1ed   : > { %1715 = vmatmul.bf16.gmra.mxu1 %v3020_v14  ;;  %v3395_v14 = vld [vmem:[%s3578_s14 + $0x3a4] sm:$0xf]  ;;  %v3032_v10 = vor.u32 %v3397_v61, %v3031_v8  ;;  %v4573_v8 = vmax.f32 %v3956_v27, %v3959_v13  ;;  %v3402_v27 = vld [vmem:[%s3578_s14 + $0x3d4] sm:$0xf0]  ;;  %v4302_v13 = vld [vmem:[%s4569_s3] ss:$0 sm:$0xff] }
 0x1ee   : > { %v2177_v18 = vmul.f32 %v3832_v21, %v2052_v11  ;;  %1904 = vmatmul.bf16.gmra.mxu2 %v3024_v0  ;;  %v4257_v62 = vpop.f32.mrf.mxu3  ;;  %v3036_v0 = vor.u32 %v3395_v14, %v3033_v24  ;;  %v3047_v24 = vld [vmem:[%s3578_s14 + $0x3c0] sm:$0xf] }
 0x1f0   : > { %v2253_v17 = vadd.f32 %v3841_v26, %v2177_v18 }
 0x1f1   : > { %v1865_v43 = vpop.f32.mrf.mxu2  ;;  %v1489_v38 = vpop.f32.mrf.mxu0 }
 0x1f2   : > { %v2311_v47 = vsel %vm2286_vm1, %v2253_v17, -inf  ;;  %v1866_v58 = vadd.f32 %v1865_v43, %v1677_v57  ;;  %v1678_v45 = vpop.f32.mrf.mxu1  ;;  %v3040_v17 = vor.u32 %v3398_v4, %v3039_v49  ;;  %v4290_v49 = vld [vmem:[%s4568_s2] ss:$0 sm:$0xff] }
 0x1f3   : > { %v4255_v40 = vmax.f32 %v4571_v32, %v2311_v47  ;;  %v1679_v36 = vadd.f32 %v1678_v45, %v1489_v38  ;;  %3271 = vmatmul.msk.bf16.gmra.mxu3 %vm1269_vm0, %v3060_v60  ;;  %v3404_v32 = vld [vmem:[%s3578_s14 + $0x3ec] sm:$0xf] }
 0x1f4   : > { %v2055_v56 = vadd.f32 %v2054_v15, %v1866_v58 }
 0x1f6   : > { %v2178_v50 = vmul.f32 %v3832_v21, %v2055_v56  ;;  %v2064_v47 = vpop.f32.mrf.mxu3 }
 0x1f8   : > { %v2254_v59 = vadd.f32 %v3841_v26, %v2178_v50 }
 0x1f9   : > { %v1867_v35 = vpop.f32.mrf.mxu2  ;;  %v1492_v11 = vpop.f32.mrf.mxu0 }
 0x1fa   : > { %v2318_v57 = vsel %vm2286_vm1, %v2254_v59, -inf  ;;  %v1868_v15 = vadd.f32 %v1867_v35, %v1679_v36  ;;  %v1681_v18 = vpop.f32.mrf.mxu1  ;;  %v3073_v36 = vld [vmem:[%s3578_s14 + $0x3f8] sm:$0xf0]  ;;  %v3401_v59 = vld [vmem:[%s3578_s14 + $0x3cc] sm:$0xf0] }
 0x1fb   : > { %v4272_v29 = vmax.f32 %v4572_v31, %v2318_v57  ;;  %v1682_v43 = vadd.f32 %v1681_v18, %v1492_v11  ;;  %v3076_v61 = vor.u32 %v3404_v32, %v3073_v36  ;;  %v3399_v35 = vld [vmem:[%s3578_s14 + $0x3c4] sm:$0xf] }
 0x1fc   : > { %v2057_v58 = vadd.f32 %v2056_v1, %v1868_v15  ;;  %1531 = vmatmul.bf16.gmra.mxu0 %v3032_v10  ;;  %v3049_v10 = vld [vmem:[%s3578_s14 + $0x3d0] sm:$0xf0]  ;;  %v3048_v15 = vor.u32 %v3401_v59, %v3047_v24 }
 0x1fd   : > { %1720 = vmatmul.bf16.gmra.mxu1 %v3036_v0  ;;  %v3055_v0 = vld [vmem:[%s3578_s14 + $0x3c8] sm:$0xf]  ;;  %v3052_v11 = vor.u32 %v3399_v35, %v3049_v10  ;;  %v3063_v10 = vld [vmem:[%s3578_s14 + $0x3e0] sm:$0xf] }
 0x1fe   : > { %v2179_v38 = vmul.f32 %v3832_v21, %v2057_v58  ;;  %1909 = vmatmul.bf16.gmra.mxu2 %v3040_v17  ;;  %v3056_v58 = vor.u32 %v3402_v27, %v3055_v0  ;;  %v3405_v27 = vld [vmem:[%s3578_s14 + $0x3ec] sm:$0xf0] }
 0x200   : > { %v2255_v45 = vadd.f32 %v3841_v26, %v2179_v38  ;;  %v4284_v26 = vpop.f32.mrf.mxu3  ;;  %v4574_v38 = vmax.f32 %v3977_v16, %v3982_v55 }
 0x201   : > { %v1870_v60 = vpop.f32.mrf.mxu2  ;;  %v1494_v1 = vpop.f32.mrf.mxu0 }
 0x202   : > { %v2325_v42 = vsel %vm2286_vm1, %v2255_v45, -inf  ;;  %v1871_v46 = vadd.f32 %v1870_v60, %v1682_v43  ;;  %v1683_v56 = vpop.f32.mrf.mxu1 }
 0x203   : > { %v4282_v21 = vmax.f32 %v4573_v8, %v2325_v42  ;;  %v1684_v50 = vadd.f32 %v1683_v56, %v1494_v1  ;;  %3272 = vmatmul.msk.bf16.gmra.mxu3 %vm1269_vm0, %v3076_v61  ;;  %v3408_v1 = vld [vmem:[%s3578_s14 + $0x40c] sm:$0xf]  ;;  %v3089_v56 = vld [vmem:[%s3578_s14 + $0x418] sm:$0xf0]  ;;  %v4575_v61 = vmax.f32 %v3997_v25, %v4000_v33  ;;  %v3064_v25 = vor.u32 %v3405_v27, %v3063_v10  ;;  %v3079_v27 = vld [vmem:[%s3578_s14 + $0x400] sm:$0xf] }
 0x204   : > { %v2060_v14 = vadd.f32 %v2059_v2, %v1871_v46  ;;  %v3092_v59 = vor.u32 %v3408_v1, %v3089_v56 }
 0x206   : > { %v2180_v4 = vmul.f32 %v4290_v49, %v2060_v14 }
 0x208   : > { %v2256_v2 = vadd.f32 %v4302_v13, %v2180_v4  ;;  %v2069_v36 = vpop.f32.mrf.mxu3 }
 0x209   : > { %v1872_v57 = vpop.f32.mrf.mxu2  ;;  %v1497_v31 = vpop.f32.mrf.mxu0 }
 0x20a   : > { %v2332_v18 = vsel %vm2286_vm1, %v2256_v2, -inf  ;;  %v1873_v17 = vadd.f32 %v1872_v57, %v1684_v50  ;;  %v1686_v43 = vpop.f32.mrf.mxu1  ;;  %v3403_v2 = vld [vmem:[%s3578_s14 + $0x3e4] sm:$0xf]  ;;  %v3065_v57 = vld [vmem:[%s3578_s14 + $0x3f0] sm:$0xf0] }
 0x20b   : > { %v4309_v45 = vmax.f32 %v4574_v38, %v2332_v18  ;;  %v1687_v32 = vadd.f32 %v1686_v43, %v1497_v31  ;;  %v3068_v33 = vor.u32 %v3403_v2, %v3065_v57  ;;  %v3409_v57 = vld [vmem:[%s3578_s14 + $0x40c] sm:$0xf0] }
 0x20c   : > { %v2062_v60 = vadd.f32 %v4257_v62, %v1873_v17  ;;  %1536 = vmatmul.bf16.gmra.mxu0 %v3048_v15  ;;  %v3071_v15 = vld [vmem:[%s3578_s14 + $0x3e8] sm:$0xf] }
 0x20d   : > { %1725 = vmatmul.bf16.gmra.mxu1 %v3052_v11  ;;  %v3406_v11 = vld [vmem:[%s3578_s14 + $0x3f4] sm:$0xf0] }
 0x20e   : > { %v2181_v42 = vmul.f32 %v4290_v49, %v2062_v60  ;;  %1914 = vmatmul.bf16.gmra.mxu2 %v3056_v58  ;;  %v3072_v38 = vor.u32 %v3406_v11, %v3071_v15  ;;  %v3407_v15 = vld [vmem:[%s3578_s14 + $0x404] sm:$0xf]  ;;  %v3081_v11 = vld [vmem:[%s3578_s14 + $0x410] sm:$0xf0] }
 0x210   : > { %v2257_v46 = vadd.f32 %v4302_v13, %v2181_v42  ;;  %v2071_v4 = vpop.f32.mrf.mxu3 }
 0x211   : > { %v1875_v16 = vpop.f32.mrf.mxu2  ;;  %v1499_v62 = vpop.f32.mrf.mxu0 }
 0x212   : > { %v2339_v55 = vsel %vm2286_vm1, %v2257_v46, -inf  ;;  %v1876_v8 = vadd.f32 %v1875_v16, %v1687_v32  ;;  %v1688_v50 = vpop.f32.mrf.mxu1  ;;  %v4576_v32 = vmax.f32 %v4018_v6, %v4023_v12 }
 0x213   : > { %v4320_v14 = vmax.f32 %v4575_v61, %v2339_v55  ;;  %v1689_v24 = vadd.f32 %v1688_v50, %v1499_v62  ;;  %3273 = vmatmul.msk.bf16.gmra.mxu3 %vm1269_vm0, %v3092_v59  ;;  %v3412_v55 = vld [vmem:[%s3578_s14 + $0x42c] sm:$0xf]  ;;  %v4577_v61 = vmax.f32 %v4038_v30, %v4041_v48  ;;  %v3080_v30 = vor.u32 %v3409_v57, %v3079_v27  ;;  %v3095_v27 = vld [vmem:[%s3578_s14 + $0x420] sm:$0xf]  ;;  %v3413_v57 = vld [vmem:[%s3578_s14 + $0x42c] sm:$0xf0] }
 0x214   : > { %v2065_v35 = vadd.f32 %v2064_v47, %v1876_v8  ;;  %v3105_v8 = vld [vmem:[%s3578_s14 + $0x438] sm:$0xf0]  ;;  %v3084_v48 = vor.u32 %v3407_v15, %v3081_v11  ;;  %v3411_v15 = vld [vmem:[%s3578_s14 + $0x424] sm:$0xf]  ;;  %v3097_v11 = vld [vmem:[%s3578_s14 + $0x430] sm:$0xf0] }
 0x215   : > { %v3108_v10 = vor.u32 %v3412_v55, %v3105_v8  ;;  %v3416_v8 = vld [vmem:[%s3578_s14 + $0x44c] sm:$0xf] }
 0x216   : > { %v2182_v0 = vmul.f32 %v4290_v49, %v2065_v35 }
 0x218   : > { %v2258_v18 = vadd.f32 %v4302_v13, %v2182_v0  ;;  %v2074_v46 = vpop.f32.mrf.mxu3 }
 0x219   : > { %v1877_v17 = vpop.f32.mrf.mxu2  ;;  %v1502_v43 = vpop.f32.mrf.mxu0 }
 0x21a   : > { %v2346_v31 = vsel %vm2286_vm1, %v2258_v18, -inf  ;;  %v1878_v47 = vadd.f32 %v1877_v17, %v1689_v24  ;;  %v1691_v58 = vpop.f32.mrf.mxu1  ;;  %v3087_v18 = vld [vmem:[%s3578_s14 + $0x408] sm:$0xf]  ;;  %v3410_v17 = vld [vmem:[%s3578_s14 + $0x414] sm:$0xf0] }
 0x21b   : > { %v4335_v60 = vmax.f32 %v4576_v32, %v2346_v31  ;;  %v1692_v42 = vadd.f32 %v1691_v58, %v1502_v43  ;;  %v3088_v58 = vor.u32 %v3410_v17, %v3087_v18  ;;  %v3103_v18 = vld [vmem:[%s3578_s14 + $0x428] sm:$0xf]  ;;  %v3414_v17 = vld [vmem:[%s3578_s14 + $0x434] sm:$0xf0] }
 0x21c   : > { %v2067_v1 = vadd.f32 %v4284_v26, %v1878_v47  ;;  %1541 = vmatmul.bf16.gmra.mxu0 %v3064_v25 }
 0x21d   : > { %1730 = vmatmul.bf16.gmra.mxu1 %v3068_v33 }
 0x21e   : > { %v2183_v56 = vmul.f32 %v4290_v49, %v2067_v1  ;;  %1919 = vmatmul.bf16.gmra.mxu2 %v3072_v38  ;;  %v4578_v38 = vmax.f32 %v4059_v3, %v4064_v5 }
 0x220   : > { %v2259_v16 = vadd.f32 %v4302_v13, %v2183_v56  ;;  %v2076_v35 = vpop.f32.mrf.mxu3 }
 0x221   : > { %v1880_v6 = vpop.f32.mrf.mxu2  ;;  %v1504_v26 = vpop.f32.mrf.mxu0 }
 0x222   : > { %v2353_v12 = vsel %vm2286_vm1, %v2259_v16, -inf  ;;  %v1881_v62 = vadd.f32 %v1880_v6, %v1692_v42  ;;  %v1693_v50 = vpop.f32.mrf.mxu1  ;;  %v3121_v6 = vld [vmem:[%s3578_s14 + $0x458] sm:$0xf0] }
 0x223   : > { %v4346_v24 = vmax.f32 %v4577_v61, %v2353_v12  ;;  %v1694_v59 = vadd.f32 %v1693_v50, %v1504_v26  ;;  %3274 = vmatmul.msk.bf16.gmra.mxu3 %vm1269_vm0, %v3108_v10  ;;  %v4579_v26 = vmax.f32 %v4079_v41, %v4082_v37  ;;  %v3124_v10 = vor.u32 %v3416_v8, %v3121_v6  ;;  %v3137_v8 = vld [vmem:[%s3578_s14 + $0x478] sm:$0xf0] }
 0x224   : > { %v2070_v0 = vadd.f32 %v2069_v36, %v1881_v62  ;;  %v3096_v41 = vor.u32 %v3413_v57, %v3095_v27  ;;  %v3100_v37 = vor.u32 %v3411_v15, %v3097_v11  ;;  %v3417_v27 = vld [vmem:[%s3578_s14 + $0x44c] sm:$0xf0]  ;;  %v3113_v57 = vld [vmem:[%s3578_s14 + $0x450] sm:$0xf0]  ;;  %v3119_v15 = vld [vmem:[%s3578_s14 + $0x448] sm:$0xf] }
 0x225   : > { %v3418_v11 = vld [vmem:[%s3578_s14 + $0x454] sm:$0xf0] }
 0x226   : > { %v2184_v2 = vmul.f32 %v4290_v49, %v2070_v0 }
 0x228   : > { %v2260_v25 = vadd.f32 %v4302_v13, %v2184_v2  ;;  %v2079_v1 = vpop.f32.mrf.mxu3 }
 0x229   : > { %v1882_v33 = vpop.f32.mrf.mxu2  ;;  %v1507_v47 = vpop.f32.mrf.mxu0 }
 0x22a   : > { %v2360_v31 = vsel %vm2286_vm1, %v2260_v25, -inf  ;;  %v1883_v36 = vadd.f32 %v1882_v33, %v1694_v59  ;;  %v1696_v43 = vpop.f32.mrf.mxu1 }
 0x22b   : > { %v4361_v32 = vmax.f32 %v4578_v38, %v2360_v31  ;;  %v1697_v42 = vadd.f32 %v1696_v43, %v1507_v47  ;;  %v4580_v47 = vmax.f32 %v4100_v23, %v4105_v20 }
 0x22c   : > { %v2072_v56 = vadd.f32 %v2071_v4, %v1883_v36  ;;  %1546 = vmatmul.bf16.gmra.mxu0 %v3080_v30  ;;  %v3104_v36 = vor.u32 %v3414_v17, %v3103_v18 }
 0x22d   : > { %1735 = vmatmul.bf16.gmra.mxu1 %v3084_v48 }
 0x22e   : > { %v2185_v16 = vmul.f32 %v4290_v49, %v2072_v56  ;;  %1924 = vmatmul.bf16.gmra.mxu2 %v3088_v58 }
 0x230   : > { %v2261_v55 = vadd.f32 %v4302_v13, %v2185_v16  ;;  %v2081_v59 = vpop.f32.mrf.mxu3 }
 0x231   : > { %v1885_v3 = vpop.f32.mrf.mxu2  ;;  %v1509_v4 = vpop.f32.mrf.mxu0 }
 0x232   : > { %v2367_v5 = vsel %vm2286_vm1, %v2261_v55, -inf  ;;  %v1886_v12 = vadd.f32 %v1885_v3, %v1697_v42  ;;  %v1698_v62 = vpop.f32.mrf.mxu1  ;;  %v3420_v55 = vld [vmem:[%s3578_s14 + $0x46c] sm:$0xf] }
 0x233   : > { %v4371_v50 = vmax.f32 %v4579_v26, %v2367_v5  ;;  %v1699_v61 = vadd.f32 %v1698_v62, %v1509_v4  ;;  %3275 = vmatmul.msk.bf16.gmra.mxu3 %vm1269_vm0, %v3124_v10  ;;  %v4581_v5 = vmax.f32 %v4120_v7, %v4123_v9  ;;  %v3140_v26 = vor.u32 %v3420_v55, %v3137_v8  ;;  %v3111_v10 = vld [vmem:[%s3578_s14 + $0x440] sm:$0xf] }
 0x234   : > { %v2075_v0 = vadd.f32 %v2074_v46, %v1886_v12  ;;  %v3112_v7 = vor.u32 %v3417_v27, %v3111_v10 }
 0x236   : > { %v2186_v2 = vmul.f32 %v4290_v49, %v2075_v0 }
 0x238   : > { %v2262_v25 = vadd.f32 %v4302_v13, %v2186_v2  ;;  %v2084_v38 = vpop.f32.mrf.mxu3  ;;  %v3415_v2 = vld [vmem:[%s3578_s14 + $0x444] sm:$0xf] }
 0x239   : > { %v1887_v33 = vpop.f32.mrf.mxu2  ;;  %v1512_v48 = vpop.f32.mrf.mxu0  ;;  %v3116_v9 = vor.u32 %v3415_v2, %v3113_v57 }
 0x23a   : > { %v2374_v30 = vsel %vm2286_vm1, %v2262_v25, -inf  ;;  %v1888_v46 = vadd.f32 %v1887_v33, %v1699_v61  ;;  %v1701_v31 = vpop.f32.mrf.mxu1 }
 0x23b   : > { %v4386_v43 = vmax.f32 %v4580_v47, %v2374_v30  ;;  %v1702_v58 = vadd.f32 %v1701_v31, %v1512_v48  ;;  %v4582_v30 = vmax.f32 %v4141_v22, %v4146_v34 }
 0x23c   : > { %v2077_v42 = vadd.f32 %v2076_v35, %v1888_v46  ;;  %1551 = vmatmul.bf16.gmra.mxu0 %v3096_v41 }
 0x23d   : > { %1740 = vmatmul.bf16.gmra.mxu1 %v3100_v37  ;;  %v3120_v37 = vor.u32 %v3418_v11, %v3119_v15 }
 0x23e   : > { %v2187_v56 = vmul.f32 %v4290_v49, %v2077_v42  ;;  %1929 = vmatmul.bf16.gmra.mxu2 %v3104_v36 }
 0x240   : > { %v2263_v16 = vadd.f32 %v4302_v13, %v2187_v56  ;;  %v2086_v62 = vpop.f32.mrf.mxu3 }
 0x241   : > { %v1890_v23 = vpop.f32.mrf.mxu2  ;;  %v1514_v35 = vpop.f32.mrf.mxu0 }
 0x242   : > { %v2381_v20 = vsel %vm2286_vm1, %v2263_v16, -inf  ;;  %v1891_v6 = vadd.f32 %v1890_v23, %v1702_v58  ;;  %v1703_v3 = vpop.f32.mrf.mxu1 }
 0x243   : > { %v4396_v12 = vmax.f32 %v4581_v5, %v2381_v20  ;;  %v1704_v4 = vadd.f32 %v1703_v3, %v1514_v35  ;;  %3276 = vmatmul.msk.bf16.gmra.mxu3 %vm1269_vm0, %v3140_v26  ;;  %v3421_v3 = vld [vmem:[%s3578_s14 + $0x46c] sm:$0xf0]  ;;  %v3419_v5 = vld [vmem:[%s3578_s14 + $0x464] sm:$0xf]  ;;  %v3135_v26 = vld [vmem:[%s3578_s14 + $0x468] sm:$0xf] }
 0x244   : > { %v2080_v61 = vadd.f32 %v2079_v1, %v1891_v6  ;;  %v3127_v6 = vld [vmem:[%s3578_s14 + $0x460] sm:$0xf] }
 0x245   : > { %v3128_v27 = vor.u32 %v3421_v3, %v3127_v6 }
 0x246   : > { %v2188_v0 = vmul.f32 %v4290_v49, %v2080_v61  ;;  %v3422_v61 = vld [vmem:[%s3578_s14 + $0x474] sm:$0xf0] }
 0x247   : > { %v3136_v11 = vor.u32 %v3422_v61, %v3135_v26 }
 0x248   : > { %v2264_v18 = vadd.f32 %v4302_v13, %v2188_v0  ;;  %v2089_v31 = vpop.f32.mrf.mxu3 }
 0x249   : > { %v1892_v17 = vpop.f32.mrf.mxu2  ;;  %v1517_v41 = vpop.f32.mrf.mxu0 }
 0x24a   : > { %v2388_v25 = vsel %vm2286_vm1, %v2264_v18, -inf  ;;  %v1893_v33 = vadd.f32 %v1892_v17, %v1704_v4  ;;  %v1706_v1 = vpop.f32.mrf.mxu1  ;;  %v3129_v4 = vld [vmem:[%s3578_s14 + $0x470] sm:$0xf0]  ;;  %s3449_s14 = smul.u32 72, %s4591_s15 }
 0x24b   : > { %v4411_v46 = vmax.f32 %v4582_v30, %v2388_v25  ;;  %v1707_v48 = vadd.f32 %v1706_v1, %v1517_v41  ;;  %v3132_v2 = vor.u32 %v3419_v5, %v3129_v4 }
 0x24c   : > { %v2082_v36 = vadd.f32 %v2081_v59, %v1893_v33  ;;  %1556 = vmatmul.bf16.gmra.mxu0 %v3112_v7  ;;  %v4583_v59 = vmax.f32 %v4161_v53, %v4164_v54  ;;  %s4451_s19 = scalar_lea.vmem %s4570_s4, %s3449_s14 }
 0x24d   : > { %1745 = vmatmul.bf16.gmra.mxu1 %v3116_v9 }
 0x24e   : > { %v2189_v47 = vmul.f32 %v4290_v49, %v2082_v36  ;;  %1934 = vmatmul.bf16.gmra.mxu2 %v3120_v37 }
 0x250   : > { %v2265_v58 = vadd.f32 %v4302_v13, %v2189_v47  ;;  %v2091_v23 = vpop.f32.mrf.mxu3 }
 0x251   : > { %v1895_v42 = vpop.f32.mrf.mxu2  ;;  %v1519_v56 = vpop.f32.mrf.mxu0 }
 0x252   : > { %v2395_v22 = vsel %vm2286_vm1, %v2265_v58, -inf  ;;  %v1896_v34 = vadd.f32 %v1895_v42, %v1707_v48  ;;  %v1708_v16 = vpop.f32.mrf.mxu1 }
 0x253   : > { %v4419_v55 = vmax.f32 %v4583_v59, %v2395_v22  ;;  %v1709_v8 = vadd.f32 %v1708_v16, %v1519_v56 }
 0x254   : > { %v2085_v20 = vadd.f32 %v2084_v38, %v1896_v34  ;;  %v4584_v38 = vmax.f32 %v4182_v51, %v4187_v28  ;;  %v4585_v51 = vmax.f32 %v4198_v39, %v4201_v44 }
 0x256   : > { %v2190_v35 = vmul.f32 %v4290_v49, %v2085_v20 }
 0x258   : > { %v2266_v10 = vadd.f32 %v4302_v13, %v2190_v35  ;;  %v2094_v17 = vpop.f32.mrf.mxu3 }
 0x259   : > { %v1897_v0 = vpop.f32.mrf.mxu2  ;;  %v1522_v57 = vpop.f32.mrf.mxu0 }
 0x25a   : > { %v2402_v53 = vsel %vm2286_vm1, %v2266_v10, -inf  ;;  %v1898_v54 = vadd.f32 %v1897_v0, %v1709_v8  ;;  %v1711_v15 = vpop.f32.mrf.mxu1 }
 0x25b   : > { %v4433_v18 = vmax.f32 %v4584_v38, %v2402_v53  ;;  %v1712_v25 = vadd.f32 %v1711_v15, %v1522_v57 }
 0x25c   : > { %v2087_v7 = vadd.f32 %v2086_v62, %v1898_v54  ;;  %1561 = vmatmul.bf16.gmra.mxu0 %v3128_v27 }
 0x25d   : > { %1750 = vmatmul.bf16.gmra.mxu1 %v3132_v2 }
 0x25e   : > { %v2191_v9 = vmul.f32 %v4290_v49, %v2087_v7  ;;  %1939 = vmatmul.bf16.gmra.mxu2 %v3136_v11 }
 0x260   : > { %v2267_v33 = vadd.f32 %v4302_v13, %v2191_v9  ;;  %v2096_v62 = vpop.f32.mrf.mxu3 }
 0x261   : > { %v1900_v41 = vpop.f32.mrf.mxu2  ;;  %v1524_v30 = vpop.f32.mrf.mxu0 }
 0x262   : > { %v2409_v1 = vsel %vm2286_vm1, %v2267_v33, -inf  ;;  %v1901_v37 = vadd.f32 %v1900_v41, %v1712_v25  ;;  %v1713_v48 = vpop.f32.mrf.mxu1 }
 0x263   : > { %v4441_v28 = vmax.f32 %v4585_v51, %v2409_v1  ;;  %v1714_v42 = vadd.f32 %v1713_v48, %v1524_v30 }
 0x264   : > { %v2090_v36 = vadd.f32 %v2089_v31, %v1901_v37 }
 0x266   : > { %v2192_v47 = vmul.f32 %v4290_v49, %v2090_v36 }
 0x268   : > { %v2268_v58 = vadd.f32 %v4302_v13, %v2192_v47  ;;  %v2099_v20 = vpop.f32.mrf.mxu3 }
 0x269   : > { %v1902_v22 = vpop.f32.mrf.mxu2  ;;  %v1527_v16 = vpop.f32.mrf.mxu0 }
 0x26a   : > { %v2292_v34 = vsel %vm2286_vm1, %v2268_v58, -inf  ;;  %v1903_v56 = vadd.f32 %v1902_v22, %v1714_v42  ;;  %v1716_v59 = vpop.f32.mrf.mxu1 }
 0x26b   : > { %v2293_v8 = vmax.f32 %v4219_v63, %v2292_v34  ;;  %v1717_v6 = vadd.f32 %v1716_v59, %v1527_v16 }
 0x26c   : > { %v2092_v39 = vadd.f32 %v2091_v23, %v1903_v56 }
 0x26d   : > { %v2413_v44 = vmax.f32 %v2293_v8, 0.0 }
 0x26e   : > { %v2193_v31 = vmul.f32 %v4290_v49, %v2092_v39 }
 0x26f   : > { %v2431_v35 = vpack.c.bf16 %v2413_v44, %v2413_v44 }
 0x270   : > { %v2269_v3 = vadd.f32 %v4302_v13, %v2193_v31  ;;  %v2101_v10 = vpop.f32.mrf.mxu3 }
 0x271   : > { %2450 = vst.msk [vmem:[%s4451_s19] sm:$0xf] %vm2449_vm2, %v2431_v35  ;;  %v1905_v63 = vpop.f32.mrf.mxu2  ;;  %v1529_v4 = vpop.f32.mrf.mxu0 }
 0x272   : > { %v2299_v23 = vsel %vm2286_vm1, %v2269_v3, -inf  ;;  %v1906_v5 = vadd.f32 %v1905_v63, %v1717_v6  ;;  %v1718_v26 = vpop.f32.mrf.mxu1 }
 0x273   : > { %v2300_v61 = vmax.f32 %v4230_v19, %v2299_v23  ;;  %v1719_v57 = vadd.f32 %v1718_v26, %v1529_v4 }
 0x274   : > { %v2095_v0 = vadd.f32 %v2094_v17, %v1906_v5 }
 0x275   : > { %v2414_v27 = vmax.f32 %v2300_v61, 0.0 }
 0x276   : > { %v2194_v2 = vmul.f32 %v4290_v49, %v2095_v0 }
 0x277   : > { %v2432_v53 = vpack.c.bf16 %v2414_v27, %v2414_v27 }
 0x278   : > { %v2270_v54 = vadd.f32 %v4302_v13, %v2194_v2  ;;  %v2104_v33 = vpop.f32.mrf.mxu3 }
 0x279   : > { %2451 = vst.msk [vmem:[%s4451_s19 + $0x4] sm:$0xf] %vm2449_vm2, %v2432_v53  ;;  %v1907_v15 = vpop.f32.mrf.mxu2  ;;  %v1532_v7 = vpop.f32.mrf.mxu0 }
 0x27a   : > { %v2306_v11 = vsel %vm2286_vm1, %v2270_v54, -inf  ;;  %v1908_v38 = vadd.f32 %v1907_v15, %v1719_v57  ;;  %v1721_v9 = vpop.f32.mrf.mxu1 }
 0x27b   : > { %v2307_v19 = vmax.f32 %v4245_v52, %v2306_v11  ;;  %v1722_v1 = vadd.f32 %v1721_v9, %v1532_v7 }
 0x27c   : > { %v2097_v25 = vadd.f32 %v2096_v62, %v1908_v38 }
 0x27d   : > { %v2415_v17 = vmax.f32 %v2307_v19, 0.0 }
 0x27e   : > { %v2195_v41 = vmul.f32 %v4290_v49, %v2097_v25 }
 0x27f   : > { %v2433_v37 = vpack.c.bf16 %v2415_v17, %v2415_v17 }
 0x280   : > { %v2271_v30 = vadd.f32 %v4302_v13, %v2195_v41  ;;  %v2106_v56 = vpop.f32.mrf.mxu3 }
 0x281   : > { %2452 = vst.msk [vmem:[%s4451_s19 + $0x8] sm:$0xf] %vm2449_vm2, %v2433_v37  ;;  %v1910_v48 = vpop.f32.mrf.mxu2  ;;  %v1534_v47 = vpop.f32.mrf.mxu0 }
 0x282   : > { %v2313_v51 = vsel %vm2286_vm1, %v2271_v30, -inf  ;;  %v1911_v36 = vadd.f32 %v1910_v48, %v1722_v1  ;;  %v1723_v58 = vpop.f32.mrf.mxu1 }
 0x283   : > { %v2314_v52 = vmax.f32 %v4255_v40, %v2313_v51  ;;  %v1724_v59 = vadd.f32 %v1723_v58, %v1534_v47 }
 0x284   : > { %v2100_v62 = vadd.f32 %v2099_v20, %v1911_v36 }
 0x285   : > { %v2416_v42 = vmax.f32 %v2314_v52, 0.0 }
 0x286   : > { %v2196_v22 = vmul.f32 %v4290_v49, %v2100_v62 }
 0x287   : > { %v2434_v34 = vpack.c.bf16 %v2416_v42, %v2416_v42 }
 0x288   : > { %v2272_v16 = vadd.f32 %v4302_v13, %v2196_v22  ;;  %v2109_v26 = vpop.f32.mrf.mxu3 }
 0x289   : > { %2453 = vst.msk [vmem:[%s4451_s19 + $0xc] sm:$0xf] %vm2449_vm2, %v2434_v34  ;;  %v1912_v8 = vpop.f32.mrf.mxu2  ;;  %v1537_v31 = vpop.f32.mrf.mxu0 }
 0x28a   : > { %v2320_v39 = vsel %vm2286_vm1, %v2272_v16, -inf  ;;  %v1913_v44 = vadd.f32 %v1912_v8, %v1724_v59  ;;  %v1726_v6 = vpop.f32.mrf.mxu1 }
 0x28b   : > { %v2321_v40 = vmax.f32 %v4272_v29, %v2320_v39  ;;  %v1727_v63 = vadd.f32 %v1726_v6, %v1537_v31 }
 0x28c   : > { %v2102_v20 = vadd.f32 %v2101_v10, %v1913_v44 }
 0x28d   : > { %v2417_v35 = vmax.f32 %v2321_v40, 0.0 }
 0x28e   : > { %v2197_v3 = vmul.f32 %v4290_v49, %v2102_v20 }
 0x28f   : > { %v2435_v23 = vpack.c.bf16 %v2417_v35, %v2417_v35 }
 0x290   : > { %v2273_v5 = vadd.f32 %v4302_v13, %v2197_v3 }
 0x291   : > { %2454 = vst.msk [vmem:[%s4451_s19 + $0x10] sm:$0xf] %vm2449_vm2, %v2435_v23  ;;  %v1915_v4 = vpop.f32.mrf.mxu2  ;;  %v1539_v27 = vpop.f32.mrf.mxu0 }
 0x292   : > { %v2327_v61 = vsel %vm2286_vm1, %v2273_v5, -inf  ;;  %v1916_v0 = vadd.f32 %v1915_v4, %v1727_v63  ;;  %v1728_v2 = vpop.f32.mrf.mxu1 }
 0x293   : > { %v2328_v29 = vmax.f32 %v4282_v21, %v2327_v61  ;;  %v1729_v11 = vadd.f32 %v1728_v2, %v1539_v27  ;;  %v2111_v21 = vpop.f32.mrf.mxu3 }
 0x294   : > { %v2105_v10 = vadd.f32 %v2104_v33, %v1916_v0 }
 0x295   : > { %v2418_v53 = vmax.f32 %v2328_v29, 0.0 }
 0x296   : > { %v2198_v54 = vmul.f32 %v4290_v49, %v2105_v10 }
 0x297   : > { %v2436_v57 = vpack.c.bf16 %v2418_v53, %v2418_v53 }
 0x298   : > { %v2274_v15 = vadd.f32 %v4302_v13, %v2198_v54 }
 0x299   : > { %2455 = vst.msk [vmem:[%s4451_s19 + $0x14] sm:$0xf] %vm2449_vm2, %v2436_v57  ;;  %v1917_v38 = vpop.f32.mrf.mxu2  ;;  %v1542_v19 = vpop.f32.mrf.mxu0 }
 0x29a   : > { %v2334_v7 = vsel %vm2286_vm1, %v2274_v15, -inf  ;;  %v1918_v9 = vadd.f32 %v1917_v38, %v1729_v11  ;;  %v1731_v25 = vpop.f32.mrf.mxu1 }
 0x29b   : > { %v2335_v17 = vmax.f32 %v4309_v45, %v2334_v7  ;;  %v1732_v37 = vadd.f32 %v1731_v25, %v1542_v19  ;;  %v2114_v22 = vpop.f32.mrf.mxu3 }
 0x29c   : > { %v2107_v33 = vadd.f32 %v2106_v56, %v1918_v9 }
 0x29d   : > { %v2419_v41 = vmax.f32 %v2335_v17, 0.0 }
 0x29e   : > { %v2199_v1 = vmul.f32 %v4290_v49, %v2107_v33 }
 0x29f   : > { %v2437_v30 = vpack.c.bf16 %v2419_v41, %v2419_v41 }
 0x2a0   : > { %v2275_v48 = vadd.f32 %v4302_v13, %v2199_v1 }
 0x2a1   : > { %2456 = vst.msk [vmem:[%s4451_s19 + $0x18] sm:$0xf] %vm2449_vm2, %v2437_v30  ;;  %v1920_v51 = vpop.f32.mrf.mxu2  ;;  %v1544_v58 = vpop.f32.mrf.mxu0 }
 0x2a2   : > { %v2341_v36 = vsel %vm2286_vm1, %v2275_v48, -inf  ;;  %v1921_v47 = vadd.f32 %v1920_v51, %v1732_v37  ;;  %v1733_v52 = vpop.f32.mrf.mxu1 }
 0x2a3   : > { %v2342_v45 = vmax.f32 %v4320_v14, %v2341_v36  ;;  %v1734_v59 = vadd.f32 %v1733_v52, %v1544_v58  ;;  %v2116_v23 = vpop.f32.mrf.mxu3 }
 0x2a4   : > { %v2110_v62 = vadd.f32 %v2109_v26, %v1921_v47 }
 0x2a5   : > { %v2420_v42 = vmax.f32 %v2342_v45, 0.0 }
 0x2a6   : > { %v2200_v34 = vmul.f32 %v4290_v49, %v2110_v62 }
 0x2a7   : > { %v2438_v56 = vpack.c.bf16 %v2420_v42, %v2420_v42 }
 0x2a8   : > { %v2276_v16 = vadd.f32 %v4302_v13, %v2200_v34 }
 0x2a9   : > { %2457 = vst.msk [vmem:[%s4451_s19 + $0x1c] sm:$0xf] %vm2449_vm2, %v2438_v56  ;;  %v1922_v8 = vpop.f32.mrf.mxu2  ;;  %v1547_v31 = vpop.f32.mrf.mxu0 }
 0x2aa   : > { %v2348_v39 = vsel %vm2286_vm1, %v2276_v16, -inf  ;;  %v1923_v44 = vadd.f32 %v1922_v8, %v1734_v59  ;;  %v1736_v6 = vpop.f32.mrf.mxu1 }
 0x2ab   : > { %v2349_v14 = vmax.f32 %v4335_v60, %v2348_v39  ;;  %v1737_v3 = vadd.f32 %v1736_v6, %v1547_v31  ;;  %v2119_v11 = vpop.f32.mrf.mxu3 }
 0x2ac   : > { %v2112_v40 = vadd.f32 %v2111_v21, %v1923_v44 }
 0x2ad   : > { %v2421_v20 = vmax.f32 %v2349_v14, 0.0 }
 0x2ae   : > { %v2201_v35 = vmul.f32 %v4290_v49, %v2112_v40 }
 0x2af   : > { %v2439_v63 = vpack.c.bf16 %v2421_v20, %v2421_v20 }
 0x2b0   : > { %v2277_v5 = vadd.f32 %v4302_v13, %v2201_v35 }
 0x2b1   : > { %2458 = vst.msk [vmem:[%s4451_s19 + $0x20] sm:$0xf] %vm2449_vm2, %v2439_v63  ;;  %v1925_v4 = vpop.f32.mrf.mxu2  ;;  %v1549_v0 = vpop.f32.mrf.mxu0 }
 0x2b2   : > { %v2355_v26 = vsel %vm2286_vm1, %v2277_v5, -inf  ;;  %v1926_v61 = vadd.f32 %v1925_v4, %v1737_v3  ;;  %v1738_v27 = vpop.f32.mrf.mxu1 }
 0x2b3   : > { %v2356_v60 = vmax.f32 %v4346_v24, %v2355_v26  ;;  %v1739_v57 = vadd.f32 %v1738_v27, %v1549_v0 }
 0x2b4   : > { %v2115_v2 = vadd.f32 %v2114_v22, %v1926_v61 }
 0x2b5   : > { %v2422_v29 = vmax.f32 %v2356_v60, 0.0 }
 0x2b6   : > { %v2202_v10 = vmul.f32 %v4290_v49, %v2115_v2 }
 0x2b7   : > { %v2440_v53 = vpack.c.bf16 %v2422_v29, %v2422_v29 }
 0x2b8   : > { %v2278_v54 = vadd.f32 %v4302_v13, %v2202_v10 }
 0x2b9   : > { %2459 = vst.msk [vmem:[%s4451_s19 + $0x24] sm:$0xf] %vm2449_vm2, %v2440_v53  ;;  %v1927_v15 = vpop.f32.mrf.mxu2  ;;  %v1552_v9 = vpop.f32.mrf.mxu0 }
 0x2ba   : > { %v2362_v38 = vsel %vm2286_vm1, %v2278_v54, -inf  ;;  %v1928_v7 = vadd.f32 %v1927_v15, %v1739_v57  ;;  %v1741_v19 = vpop.f32.mrf.mxu1 }
 0x2bb   : > { %v2363_v24 = vmax.f32 %v4361_v32, %v2362_v38  ;;  %v1742_v33 = vadd.f32 %v1741_v19, %v1552_v9  ;;  %v2121_v32 = vpop.f32.mrf.mxu3 }
 0x2bc   : > { %v2117_v25 = vadd.f32 %v2116_v23, %v1928_v7 }
 0x2bd   : > { %v2423_v17 = vmax.f32 %v2363_v24, 0.0 }
 0x2be   : > { %v2203_v21 = vmul.f32 %v4290_v49, %v2117_v25 }
 0x2bf   : > { %v2441_v41 = vpack.c.bf16 %v2423_v17, %v2423_v17 }
 0x2c0   : > { %v2279_v1 = vadd.f32 %v4302_v13, %v2203_v21 }
 0x2c1   : > { %2460 = vst.msk [vmem:[%s4451_s19 + $0x28] sm:$0xf] %vm2449_vm2, %v2441_v41  ;;  %v1930_v37 = vpop.f32.mrf.mxu2  ;;  %v1554_v51 = vpop.f32.mrf.mxu0 }
 0x2c2   : > { %v2369_v30 = vsel %vm2286_vm1, %v2279_v1, -inf  ;;  %v1931_v48 = vadd.f32 %v1930_v37, %v1742_v33  ;;  %v1743_v36 = vpop.f32.mrf.mxu1 }
 0x2c3   : > { %v2370_v47 = vmax.f32 %v4371_v50, %v2369_v30  ;;  %v1744_v22 = vadd.f32 %v1743_v36, %v1554_v51  ;;  %v2124_v31 = vpop.f32.mrf.mxu3 }
 0x2c4   : > { %v2120_v58 = vadd.f32 %v2119_v11, %v1931_v48 }
 0x2c5   : > { %v2424_v52 = vmax.f32 %v2370_v47, 0.0 }
 0x2c6   : > { %v2204_v45 = vmul.f32 %v4290_v49, %v2120_v58 }
 0x2c7   : > { %v2442_v62 = vpack.c.bf16 %v2424_v52, %v2424_v52 }
 0x2c8   : > { %v2280_v42 = vadd.f32 %v4302_v13, %v2204_v45 }
 0x2c9   : > { %2461 = vst.msk [vmem:[%s4451_s19 + $0x2c] sm:$0xf] %vm2449_vm2, %v2442_v62  ;;  %v1932_v34 = vpop.f32.mrf.mxu2  ;;  %v1557_v59 = vpop.f32.mrf.mxu0 }
 0x2ca   : > { %v2376_v56 = vsel %vm2286_vm1, %v2280_v42, -inf  ;;  %v1933_v16 = vadd.f32 %v1932_v34, %v1744_v22  ;;  %v1746_v8 = vpop.f32.mrf.mxu1 }
 0x2cb   : > { %v2377_v50 = vmax.f32 %v4386_v43, %v2376_v56  ;;  %v1747_v14 = vadd.f32 %v1746_v8, %v1557_v59  ;;  %v2126_v27 = vpop.f32.mrf.mxu3 }
 0x2cc   : > { %v2122_v39 = vadd.f32 %v2121_v32, %v1933_v16 }
 0x2cd   : > { %v2425_v44 = vmax.f32 %v2377_v50, 0.0 }
 0x2ce   : > { %v2205_v6 = vmul.f32 %v4290_v49, %v2122_v39 }
 0x2cf   : > { %v2443_v40 = vpack.c.bf16 %v2425_v44, %v2425_v44 }
 0x2d0   : > { %v2281_v20 = vadd.f32 %v4302_v13, %v2205_v6 }
 0x2d1   : > { %2462 = vst.msk [vmem:[%s4451_s19 + $0x30] sm:$0xf] %vm2449_vm2, %v2443_v40  ;;  %v1935_v35 = vpop.f32.mrf.mxu2  ;;  %v1559_v23 = vpop.f32.mrf.mxu0 }
 0x2d2   : > { %v2383_v3 = vsel %vm2286_vm1, %v2281_v20, -inf  ;;  %v1936_v63 = vadd.f32 %v1935_v35, %v1747_v14  ;;  %v1748_v5 = vpop.f32.mrf.mxu1 }
 0x2d3   : > { %v2384_v43 = vmax.f32 %v4396_v12, %v2383_v3  ;;  %v1749_v2 = vadd.f32 %v1748_v5, %v1559_v23  ;;  %v2129_v24 = vpop.f32.mrf.mxu3 }
 0x2d4   : > { %v2125_v4 = vadd.f32 %v2124_v31, %v1936_v63 }
 0x2d5   : > { %v2426_v26 = vmax.f32 %v2384_v43, 0.0 }
 0x2d6   : > { %v2206_v61 = vmul.f32 %v4290_v49, %v2125_v4 }
 0x2d7   : > { %v2444_v0 = vpack.c.bf16 %v2426_v26, %v2426_v26 }
 0x2d8   : > { %v2282_v60 = vadd.f32 %v4302_v13, %v2206_v61 }
 0x2d9   : > { %2463 = vst.msk [vmem:[%s4451_s19 + $0x34] sm:$0xf] %vm2449_vm2, %v2444_v0  ;;  %v1937_v29 = vpop.f32.mrf.mxu2  ;;  %v1562_v57 = vpop.f32.mrf.mxu0 }
 0x2da   : > { %v2390_v10 = vsel %vm2286_vm1, %v2282_v60, -inf  ;;  %v1938_v53 = vadd.f32 %v1937_v29, %v1749_v2  ;;  %v1751_v12 = vpop.f32.mrf.mxu1 }
 0x2db   : > { %v2391_v54 = vmax.f32 %v4411_v46, %v2390_v10  ;;  %v1752_v7 = vadd.f32 %v1751_v12, %v1562_v57  ;;  %v2131_v52 = vpop.f32.mrf.mxu3 }
 0x2dc   : > { %v2127_v15 = vadd.f32 %v2126_v27, %v1938_v53 }
 0x2dd   : > { %v2427_v11 = vmax.f32 %v2391_v54, 0.0 }
 0x2de   : > { %v2207_v38 = vmul.f32 %v4290_v49, %v2127_v15 }
 0x2df   : > { %v2445_v9 = vpack.c.bf16 %v2427_v11, %v2427_v11 }
 0x2e0   : > { %v2283_v19 = vadd.f32 %v4302_v13, %v2207_v38 }
 0x2e1   : > { %2464 = vst.msk [vmem:[%s4451_s19 + $0x38] sm:$0xf] %vm2449_vm2, %v2445_v9  ;;  %v1940_v25 = vpop.f32.mrf.mxu2  ;;  %v1564_v1 = vpop.f32.mrf.mxu0 }
 0x2e2   : > { %v2397_v17 = vsel %vm2286_vm1, %v2283_v19, -inf  ;;  %v1941_v21 = vadd.f32 %v1940_v25, %v1752_v7  ;;  %v1753_v37 = vpop.f32.mrf.mxu1 }
 0x2e3   : > { %v2398_v46 = vmax.f32 %v4419_v55, %v2397_v17  ;;  %v1754_v36 = vadd.f32 %v1753_v37, %v1564_v1 }
 0x2e4   : > { %v2130_v33 = vadd.f32 %v2129_v24, %v1941_v21 }
 0x2e5   : > { %v2428_v41 = vmax.f32 %v2398_v46, 0.0 }
 0x2e6   : > { %v2208_v30 = vmul.f32 %v4290_v49, %v2130_v33 }
 0x2e7   : > { %v2446_v48 = vpack.c.bf16 %v2428_v41, %v2428_v41 }
 0x2e8   : > { %v2284_v51 = vadd.f32 %v4302_v13, %v2208_v30 }
 0x2e9   : > { %2465 = vst.msk [vmem:[%s4451_s19 + $0x3c] sm:$0xf] %vm2449_vm2, %v2446_v48  ;;  %v1942_v47 = vpop.f32.mrf.mxu2 }
 0x2ea   : > { %v2404_v32 = vsel %vm2286_vm1, %v2284_v51, -inf  ;;  %v1943_v58 = vadd.f32 %v1942_v47, %v1754_v36 }
 0x2eb   : > { %v2405_v55 = vmax.f32 %v4433_v18, %v2404_v32 }
 0x2ec   : > { %v2132_v45 = vadd.f32 %v2131_v52, %v1943_v58 }
 0x2ed   : > { %v2429_v62 = vmax.f32 %v2405_v55, 0.0 }
 0x2ee   : > { %v2209_v42 = vmul.f32 %v4290_v49, %v2132_v45 }
 0x2ef   : > { %v2447_v22 = vpack.c.bf16 %v2429_v62, %v2429_v62 }
 0x2f0   : > { %v2285_v34 = vadd.f32 %v4302_v13, %v2209_v42 }
 0x2f1   : > { %2466 = vst.msk [vmem:[%s4451_s19 + $0x40] sm:$0xf] %vm2449_vm2, %v2447_v22 }
 0x2f2   : > { %v2411_v56 = vsel %vm2286_vm1, %v2285_v34, -inf }
 0x2f3   : > { %v2412_v16 = vmax.f32 %v4441_v28, %v2411_v56 }
 0x2f5   : > { %v2430_v59 = vmax.f32 %v2412_v16, 0.0 }
 0x2f7   : > { %v2448_v8 = vpack.c.bf16 %v2430_v59, %v2430_v59 }
 0x2f9   : > { %2467 = vst.msk [vmem:[%s4451_s19 + $0x44] sm:$0xf] %vm2449_vm2, %v2448_v8 }
 0x2fa PF: > { %s14_s17 = sadd.s32 1, %s3500_s17   ;;  %s4586_s15 = smov %s3496_s16 }
 0x2fb   : > { %p11_p5 = scmp.ge.s32.totalorder %s14_s17, 4   ;;  %s4587_s16 = smov %s4589_s18 }
 0x2fd   :  { %13 = sbr.rel (!%p11_p5) target bundleno = 2 (0x2), region = 66 }

// kernel: convnet_forward.5
= control target key start
LH: loop header
LB: loop body
LE: loop exit
PB: predicated region body
PF: predicated region fallthrough
CT: control target
= control target key end

     0   :  { %8 = vsyncpa [#allocation4], 0  ;;  %s1423_s12 = smov 0   ;;  %s1543_s0 = inlined_call_operand.vmem [shape: bf16[2,4608], index: 0, kind: input, shape index: {}]   ;;  %s1544_s1 = inlined_call_operand.vmem [shape: bf16[4608,7], index: 1, kind: input, shape index: {}]   ;;  %s1545_s2 = inlined_call_operand.vmem [shape: f32[1,7], index: 2, kind: input, shape index: {}]   ;;  %s1546_s3 = inlined_call_operand.hbm [shape: f32[2,7], index: 3, kind: output, shape index: {}]  }
   0x1 LB: > { %s1429_s13 = sadd.s32 4294967295, %s1399_s12   ;;  %p976_p0 = scmp.ge.s32.totalorder %s1399_s12, 1  ;;  %s1399_s12 = sphi %s1423_s12, %s14_s12  }
   0x2   : > { %p144_p1 = scmp.lt.s32.totalorder %s1399_s12, 5 }
   0x4   : > { %p145_p2 = pnand %p976_p0, %p144_p1 }
   0x5   : > { %s167_s14 = smul.u32 (!%p145_p2), 9, %s1429_s13  ;;  %p978_p5 = scmp.ne.s32.totalorder (!%p145_p2), %s1429_s13, 0 }
   0x6   : > { %148 = sbr.rel (%p145_p2) target bundleno = 262 (0x106), region = 32 }
   0x7   : > { %s172_s15 = smul.u32 (!%p145_p2), 144, %s1429_s13  ;;  %p168_p3 = scmp.lt.s32.totalorder (!%p145_p2), %s167_s14, 35 }
   0x9   : > { %p173_p4 = scmp.lt.s32.totalorder (!%p145_p2), %s172_s15, 575 }
   0xb   : > { %s1548_s14 = smov (!%p168_p3, %s167_s14), 35  ;;  %s1550_s15 = smov (!%p173_p4, %s172_s15), 575 }
   0xc   : > { %s1438_s18 = scalar_lea.vmem %s1543_s0, %s1548_s14  ;;  %s977_s19 = sshll.u32 %s1550_s15, 2 }
   0xd   : > { %s1443_s22 = scalar_lea.vmem %s1544_s1, %s977_s19  ;;  %181 = sbr.rel (%p978_p5) target bundleno = 20 (0x14), region = 36 }
  0x12   : > { %vm182_vm0 = vcmask 50176   ;;  %v1401_v0 = vmov 0.0  }
  0x13   : > { %183 = vst.msk [vmem:[#allocation2] sm:$0x3] %vm182_vm0, %v1401_v0 }
  0x14 PF: > { %v1279_v1 = vld [vmem:[%s1443_s22 + $0x38] sm:$0xff]  ;;  %v1278_v5 = vld [vmem:[%s1443_s22 + $0x30] sm:$0xff]  ;;  %v1277_v9 = vld [vmem:[%s1443_s22 + $0x28] sm:$0xff]  ;;  %vm903_vm1 = vcmask 50176   ;;  %p1267_p6 = scmp.ne.s32.totalorder %s1429_s13, 3 }
  0x15   : > { %v1295_v2 = vld [vmem:[%s1443_s22 + $0xb8] sm:$0xff]  ;;  %785 = vmatpush.bf16.msra.mxu0 %v1279_v1  ;;  %v1294_v6 = vld [vmem:[%s1443_s22 + $0xb0] sm:$0xff]  ;;  %v1293_v10 = vld [vmem:[%s1443_s22 + $0xa8] sm:$0xff] }
  0x16   : > { %v1303_v3 = vld [vmem:[%s1443_s22 + $0xf8] sm:$0xff]  ;;  %811 = vmatpush.bf16.msra.mxu2 %v1295_v2  ;;  %v1302_v7 = vld [vmem:[%s1443_s22 + $0xf0] sm:$0xff]  ;;  %v1301_v11 = vld [vmem:[%s1443_s22 + $0xe8] sm:$0xff] }
  0x17   : > { %v1287_v4 = vld [vmem:[%s1443_s22 + $0x78] sm:$0xff]  ;;  %824 = vmatpush.bf16.msra.mxu3 %v1303_v3  ;;  %v1286_v8 = vld [vmem:[%s1443_s22 + $0x70] sm:$0xff]  ;;  %v1285_v12 = vld [vmem:[%s1443_s22 + $0x68] sm:$0xff] }
  0x18   : > { %798 = vmatpush.bf16.msra.mxu1 %v1287_v4  ;;  %v1276_v13 = vld [vmem:[%s1443_s22 + $0x20] sm:$0xff]  ;;  %v1275_v17 = vld [vmem:[%s1443_s22 + $0x18] sm:$0xff]  ;;  %v1274_v22 = vld [vmem:[%s1443_s22 + $0x10] sm:$0xff] }
  0x19   : > { %786 = vmatpush.bf16.msra.mxu0 %v1278_v5  ;;  %v1292_v14 = vld [vmem:[%s1443_s22 + $0xa0] sm:$0xff]  ;;  %v1291_v18 = vld [vmem:[%s1443_s22 + $0x98] sm:$0xff]  ;;  %v1290_v23 = vld [vmem:[%s1443_s22 + $0x90] sm:$0xff] }
  0x1a   : > { %812 = vmatpush.bf16.msra.mxu2 %v1294_v6  ;;  %v1300_v15 = vld [vmem:[%s1443_s22 + $0xe0] sm:$0xff]  ;;  %v1299_v19 = vld [vmem:[%s1443_s22 + $0xd8] sm:$0xff]  ;;  %v1298_v24 = vld [vmem:[%s1443_s22 + $0xd0] sm:$0xff] }
  0x1b   : > { %825 = vmatpush.bf16.msra.mxu3 %v1302_v7  ;;  %v1284_v16 = vld [vmem:[%s1443_s22 + $0x60] sm:$0xff]  ;;  %v1283_v20 = vld [vmem:[%s1443_s22 + $0x58] sm:$0xff]  ;;  %v1282_v25 = vld [vmem:[%s1443_s22 + $0x50] sm:$0xff] }
  0x1c   : > { %799 = vmatpush.bf16.msra.mxu1 %v1286_v8  ;;  %v185_v21 = vld [vmem:[%s1438_s18] sm:$0xff]  ;;  %v1273_v26 = vld [vmem:[%s1443_s22 + $0x8] sm:$0xff]  ;;  %v1311_v32 = vld [vmem:[%s1443_s22 + $0x138] sm:$0xff] }
  0x1d   : > { %787 = vmatpush.bf16.msra.mxu0 %v1277_v9  ;;  %332 = vst [vmem:[#allocation1] ss:$9 sm:$0xff] %v185_v21  ;;  %v1289_v27 = vld [vmem:[%s1443_s22 + $0x88] sm:$0xff]  ;;  %v1272_v30 = vld [vmem:[%s1443_s22] sm:$0xff]  ;;  %v1327_v33 = vld [vmem:[%s1443_s22 + $0x1b8] sm:$0xff] }
  0x1e   : > { %813 = vmatpush.bf16.msra.mxu2 %v1293_v10  ;;  %v1297_v28 = vld [vmem:[%s1443_s22 + $0xc8] sm:$0xff]  ;;  %v1288_v31 = vld [vmem:[%s1443_s22 + $0x80] sm:$0xff]  ;;  %v1335_v36 = vld [vmem:[%s1443_s22 + $0x1f8] sm:$0xff] }
  0x1f   : > { %826 = vmatpush.bf16.msra.mxu3 %v1301_v11  ;;  %v1281_v29 = vld [vmem:[%s1443_s22 + $0x48] sm:$0xff]  ;;  %v1296_v34 = vld [vmem:[%s1443_s22 + $0xc0] sm:$0xff]  ;;  %v1319_v37 = vld [vmem:[%s1443_s22 + $0x178] sm:$0xff] }
  0x20   : > { %800 = vmatpush.bf16.msra.mxu1 %v1285_v12  ;;  %v1280_v35 = vld [vmem:[%s1443_s22 + $0x40] sm:$0xff]  ;;  %v1310_v38 = vld [vmem:[%s1443_s22 + $0x130] sm:$0xff]  ;;  %v186_v47 = vld [vmem:[%s1438_s18 + $0x8] sm:$0x1] }
  0x21   : > { %788 = vmatpush.bf16.msra.mxu0 %v1276_v13  ;;  %v1326_v39 = vld [vmem:[%s1443_s22 + $0x1b0] sm:$0xff]  ;;  %v1309_v51 = vld [vmem:[%s1443_s22 + $0x128] sm:$0xff]  ;;  %v1308_v55 = vld [vmem:[%s1443_s22 + $0x120] sm:$0xff] }
  0x22   : > { %814 = vmatpush.bf16.msra.mxu2 %v1292_v14  ;;  %v1334_v40 = vld [vmem:[%s1443_s22 + $0x1f0] sm:$0xff]  ;;  %v1325_v52 = vld [vmem:[%s1443_s22 + $0x1a8] sm:$0xff]  ;;  %v1324_v56 = vld [vmem:[%s1443_s22 + $0x1a0] sm:$0xff] }
  0x23   : > { %827 = vmatpush.bf16.msra.mxu3 %v1300_v15  ;;  %v1318_v41 = vld [vmem:[%s1443_s22 + $0x170] sm:$0xff]  ;;  %v1333_v53 = vld [vmem:[%s1443_s22 + $0x1e8] sm:$0xff]  ;;  %v1332_v57 = vld [vmem:[%s1443_s22 + $0x1e0] sm:$0xff] }
  0x24   : > { %801 = vmatpush.bf16.msra.mxu1 %v1284_v16  ;;  %v335_v42 = vld [vmem:[#allocation1 + $0x12] sm:$0xff]  ;;  %v333_v43 = vld [vmem:[#allocation1] sm:$0xff]  ;;  %v334_v45 = vld [vmem:[#allocation1 + $0x9] sm:$0xff] }
  0x25   : > { %789 = vmatpush.bf16.msra.mxu0 %v1275_v17  ;;  %v336_v44 = vld [vmem:[#allocation1 + $0x1b] sm:$0xff]  ;;  %v1490_v48 = vld [vmem:[#allocation1 + $0x24] sm:$0xff]  ;;  %v1494_v50 = vld [vmem:[#allocation1 + $0x2d] sm:$0xff] }
  0x26   : > { %815 = vmatpush.bf16.msra.mxu2 %v1291_v18  ;;  %v1487_v46 = vld [vmem:[#allocation1 + $0x36] sm:$0xff]  ;;  %v1492_v49 = vld [vmem:[#allocation1 + $0x3f] sm:$0xff]  ;;  %v1317_v54 = vld [vmem:[%s1443_s22 + $0x168] sm:$0xff] }
  0x27   : > { %828 = vmatpush.bf16.msra.mxu3 %v1299_v19  ;;  %342 = vst [vmem:[#allocation1] ss:$9 sm:$0xff] %v186_v47  ;;  %v1316_v58 = vld [vmem:[%s1443_s22 + $0x160] sm:$0xff]  ;;  %v1307_v59 = vld [vmem:[%s1443_s22 + $0x118] sm:$0xff]  ;;  %v1306_v63 = vld [vmem:[%s1443_s22 + $0x110] sm:$0xff] }
  0x28   : > { %802 = vmatpush.bf16.msra.mxu1 %v1283_v20  ;;  %v1323_v60 = vld [vmem:[%s1443_s22 + $0x198] sm:$0xff]  ;;  %v1322_v0 = vld [vmem:[%s1443_s22 + $0x190] sm:$0xff]  ;;  %v1305_v3 = vld [vmem:[%s1443_s22 + $0x108] sm:$0xff] }
  0x29   : > { %790 = vmatpush.bf16.msra.mxu0 %v1274_v22  ;;  %v1331_v61 = vld [vmem:[%s1443_s22 + $0x1d8] sm:$0xff]  ;;  %v1330_v1 = vld [vmem:[%s1443_s22 + $0x1d0] sm:$0xff]  ;;  %v1321_v4 = vld [vmem:[%s1443_s22 + $0x188] sm:$0xff] }
  0x2a   : > { %816 = vmatpush.bf16.msra.mxu2 %v1290_v23  ;;  %v1315_v62 = vld [vmem:[%s1443_s22 + $0x158] sm:$0xff]  ;;  %v1314_v2 = vld [vmem:[%s1443_s22 + $0x150] sm:$0xff]  ;;  %v1329_v5 = vld [vmem:[%s1443_s22 + $0x1c8] sm:$0xff] }
  0x2b   : > { %829 = vmatpush.bf16.msra.mxu3 %v1298_v24  ;;  %v1313_v6 = vld [vmem:[%s1443_s22 + $0x148] sm:$0xff]  ;;  %v1304_v7 = vld [vmem:[%s1443_s22 + $0x100] sm:$0xff]  ;;  %v1343_v9 = vld [vmem:[%s1443_s22 + $0x238] sm:$0xff] }
  0x2c   : > { %803 = vmatpush.bf16.msra.mxu1 %v1282_v25  ;;  %v1320_v8 = vld [vmem:[%s1443_s22 + $0x180] sm:$0xff]  ;;  %v1342_v12 = vld [vmem:[%s1443_s22 + $0x230] sm:$0xff]  ;;  %v1341_v13 = vld [vmem:[%s1443_s22 + $0x228] sm:$0xff] }
  0x2d   : > { %791 = vmatpush.bf16.msra.mxu0 %v1273_v26  ;;  %v1328_v10 = vld [vmem:[%s1443_s22 + $0x1c0] sm:$0xff]  ;;  %v1339_v15 = vld [vmem:[%s1443_s22 + $0x218] sm:$0xff]  ;;  %v1338_v16 = vld [vmem:[%s1443_s22 + $0x210] sm:$0xff] }
  0x2e   : > { %817 = vmatpush.bf16.msra.mxu2 %v1289_v27  ;;  %v1312_v11 = vld [vmem:[%s1443_s22 + $0x140] sm:$0xff]  ;;  %v1337_v17 = vld [vmem:[%s1443_s22 + $0x208] sm:$0xff] }
  0x2f   : > { %830 = vmatpush.bf16.msra.mxu3 %v1297_v28  ;;  %v1340_v14 = vld [vmem:[%s1443_s22 + $0x220] sm:$0xff] }
  0x30   : > { %804 = vmatpush.bf16.msra.mxu1 %v1281_v29  ;;  %v1336_v18 = vld [vmem:[%s1443_s22 + $0x200] sm:$0xff] }
  0x31   : > { %792 = vmatpush.bf16.msra.mxu0 %v1272_v30  ;;  %v343_v19 = vld [vmem:[#allocation1] sm:$0xff] }
  0x32   : > { %818 = vmatpush.bf16.msra.mxu2 %v1288_v31 }
  0x33   : > { %831 = vmatpush.bf16.msra.mxu3 %v1296_v34 }
  0x34   : > { %805 = vmatpush.bf16.msra.mxu1 %v1280_v35  ;;  %793 = vmatmul.bf16.vlgmr.msra.gmra.mxu0 %v333_v43  ;;  %v184_v43 = vld [vmem:[#allocation2] sm:$0x3] }
  0x35   : > { %837 = vmatpush.bf16.msrb.mxu0 %v1311_v32  ;;  %819 = vmatmul.bf16.vlgmr.msra.gmra.mxu2 %v335_v42 }
  0x36   : > { %863 = vmatpush.bf16.msrb.mxu2 %v1327_v33  ;;  %832 = vmatmul.bf16.vlgmr.msra.gmra.mxu3 %v336_v44 }
  0x37   : > { %876 = vmatpush.bf16.msrb.mxu3 %v1335_v36  ;;  %806 = vmatmul.bf16.vlgmr.msra.gmra.mxu1 %v334_v45 }
  0x38   : > { %850 = vmatpush.bf16.msrb.mxu1 %v1319_v37 }
  0x39   : > { %838 = vmatpush.bf16.msrb.mxu0 %v1310_v38 }
  0x3a   : > { %864 = vmatpush.bf16.msrb.mxu2 %v1326_v39 }
  0x3b   : > { %877 = vmatpush.bf16.msrb.mxu3 %v1334_v40 }
  0x3c   : > { %851 = vmatpush.bf16.msrb.mxu1 %v1318_v41 }
  0x3d   : > { %839 = vmatpush.bf16.msrb.mxu0 %v1309_v51 }
  0x3e   : > { %865 = vmatpush.bf16.msrb.mxu2 %v1325_v52 }
  0x3f   : > { %878 = vmatpush.bf16.msrb.mxu3 %v1333_v53 }
  0x40   : > { %852 = vmatpush.bf16.msrb.mxu1 %v1317_v54 }
  0x41   : > { %840 = vmatpush.bf16.msrb.mxu0 %v1308_v55 }
  0x42   : > { %866 = vmatpush.bf16.msrb.mxu2 %v1324_v56 }
  0x43   : > { %879 = vmatpush.bf16.msrb.mxu3 %v1332_v57 }
  0x44   : > { %853 = vmatpush.bf16.msrb.mxu1 %v1316_v58 }
  0x45   : > { %841 = vmatpush.bf16.msrb.mxu0 %v1307_v59 }
  0x46   : > { %867 = vmatpush.bf16.msrb.mxu2 %v1323_v60 }
  0x47   : > { %880 = vmatpush.bf16.msrb.mxu3 %v1331_v61 }
  0x48   : > { %854 = vmatpush.bf16.msrb.mxu1 %v1315_v62 }
  0x49   : > { %842 = vmatpush.bf16.msrb.mxu0 %v1306_v63 }
  0x4a   : > { %868 = vmatpush.bf16.msrb.mxu2 %v1322_v0 }
  0x4b   : > { %881 = vmatpush.bf16.msrb.mxu3 %v1330_v1 }
  0x4c   : > { %855 = vmatpush.bf16.msrb.mxu1 %v1314_v2 }
  0x4d   : > { %843 = vmatpush.bf16.msrb.mxu0 %v1305_v3 }
  0x4e   : > { %869 = vmatpush.bf16.msrb.mxu2 %v1321_v4 }
  0x4f   : > { %882 = vmatpush.bf16.msrb.mxu3 %v1329_v5 }
  0x50   : > { %856 = vmatpush.bf16.msrb.mxu1 %v1313_v6 }
  0x51   : > { %844 = vmatpush.bf16.msrb.mxu0 %v1304_v7 }
  0x52   : > { %870 = vmatpush.bf16.msrb.mxu2 %v1320_v8 }
  0x53   : > { %883 = vmatpush.bf16.msrb.mxu3 %v1328_v10 }
  0x54   : > { %857 = vmatpush.bf16.msrb.mxu1 %v1312_v11  ;;  %845 = vmatmul.bf16.vlgmr.msrb.gmra.mxu0 %v1490_v48 }
  0x55   : > { %889 = vmatpush.bf16.msra.mxu0 %v1343_v9  ;;  %871 = vmatmul.bf16.vlgmr.msrb.gmra.mxu2 %v1487_v46 }
  0x56   : > { %884 = vmatmul.bf16.vlgmr.msrb.gmra.mxu3 %v1492_v49 }
  0x57   : > { %858 = vmatmul.bf16.vlgmr.msrb.gmra.mxu1 %v1494_v50 }
  0x59   : > { %890 = vmatpush.bf16.msra.mxu0 %v1342_v12 }
  0x5d   : > { %891 = vmatpush.bf16.msra.mxu0 %v1341_v13 }
  0x61   : > { %892 = vmatpush.bf16.msra.mxu0 %v1340_v14 }
  0x65   : > { %893 = vmatpush.bf16.msra.mxu0 %v1339_v15 }
  0x69   : > { %894 = vmatpush.bf16.msra.mxu0 %v1338_v16 }
  0x6d   : > { %895 = vmatpush.bf16.msra.mxu0 %v1337_v17 }
  0x71   : > { %896 = vmatpush.bf16.msra.mxu0 %v1336_v18 }
  0x74   : > { %897 = vmatmul.bf16.vlgmr.msra.gmra.mxu0 %v343_v19 }
  0xb1   : > { %v794_v20 = vpop.f32.mrf.mxu0 }
  0xb4   : > { %v807_v21 = vpop.f32.mrf.mxu1 }
  0xb5   : > { %v808_v30 = vadd.f32 %v807_v21, %v794_v20 }
  0xb8   : > { %v820_v22 = vpop.f32.mrf.mxu2 }
  0xb9   : > { %v833_v23 = vpop.f32.mrf.mxu3  ;;  %v796_v24 = vpop.f32.mrf.mxu0  ;;  %v821_v32 = vadd.f32 %v820_v22, %v808_v30 }
  0xbb   : > { %v834_v36 = vadd.f32 %v833_v23, %v821_v32 }
  0xbc   : > { %v809_v25 = vpop.f32.mrf.mxu1 }
  0xc0   : > { %v822_v26 = vpop.f32.mrf.mxu2 }
  0xc1   : > { %v835_v27 = vpop.f32.mrf.mxu3 }
  0xd1   : > { %v846_v28 = vpop.f32.mrf.mxu0 }
  0xd2   : > { %v847_v38 = vadd.f32 %v846_v28, %v834_v36 }
  0xd4   : > { %v859_v29 = vpop.f32.mrf.mxu1 }
  0xd5   : > { %v860_v40 = vadd.f32 %v859_v29, %v847_v38 }
  0xd8   : > { %v872_v31 = vpop.f32.mrf.mxu2 }
  0xd9   : > { %v885_v33 = vpop.f32.mrf.mxu3  ;;  %v848_v34 = vpop.f32.mrf.mxu0  ;;  %v873_v41 = vadd.f32 %v872_v31, %v860_v40 }
  0xdb   : > { %v886_v42 = vadd.f32 %v885_v33, %v873_v41 }
  0xdc   : > { %v861_v35 = vpop.f32.mrf.mxu1 }
  0xe0   : > { %v874_v37 = vpop.f32.mrf.mxu2 }
  0xe1   : > { %v887_v39 = vpop.f32.mrf.mxu3 }
  0xf1   : > { %v898_v44 = vpop.f32.mrf.mxu0 }
  0xf2   : > { %v899_v45 = vadd.f32 %v898_v44, %v886_v42 }
  0xf4   : > { %v902_v46 = vadd.f32 %v899_v45, %v184_v43 }
  0xf5   : > { %908 = sbr.rel (%p1267_p6) target bundleno = 257 (0x101), region = 40 }
  0xf6   : > { %904 = vst.msk [vmem:[#allocation2] sm:$0x3] %vm903_vm1, %v902_v46 }
  0xf9   : > { %v900_v47 = vpop.f32.mrf.mxu0 }
  0xfa   : > { %v1360_v49 = vld [vmem:[%s1545_s2] ss:$0 sm:$0xff] }
  0xfd   : > { %v909_v48 = vld [vmem:[#allocation2] sm:$0x3] }
  0xfe   : > { %v914_v50 = vadd.f32 %v1360_v49, %v909_v48 }
 0x100   : > { %915 = vst.msk [vmem:[#allocation3] sm:$0x3] %vm903_vm1, %v914_v50 }
 0x101 PF: > { %p1348_p7 = scmp.eq.s32.totalorder %s1429_s13, 3  ;;  %s1402_s25 = smov [#allocation3]  }
 0x102   : > { %s922_s26 = sshll.u32 %s1402_s25, 4  ;;  %s924_s29 = sshll.u32 %s1546_s3, 4  ;;  %s923_s26 = int_to_ptr.vmem [resolvable:$true] %s922_s26  ;;  %s925_s29 = int_to_ptr.hbm [resolvable:$true] %s924_s29 }
 0x103   : > { %1345 = dma.vmem_to_hbm [thread:$0]  (%p1348_p7), %s923_s26, 32, %s925_s29, [#allocation4]  }
 0x104   : > { %1394 = dma.done.wait (%p1348_p7), [#allocation4], 32  }
 0x105   : > { %1396 = vsyncadd (%p1348_p7), [#allocation4], 4294967264 }
 0x106 PF: > { %s14_s12 = sadd.s32 1, %s1399_s12  }
 0x107   : > { %p11_p8 = scmp.ge.s32.totalorder %s14_s12, 6  }
 0x109   :  { %13 = sbr.rel (!%p11_p8) target bundleno = 1 (0x1), region = 70 }
 0x10e   :  { %938 = vsyncpa [#allocation4], 1 }
 0x10f   :  { %940 = vsyncpa [#allocation4 + $0x1], 1 }

</bundles_post_ra>
